<compile_context>
chip_gen: v7x
topology: tpu7x:2x2x1
jax: 0.10.0
libtpu: 0.0.40
codegen_flags: <defaults>
</compile_context>

<pallas_src>
import functools

import jax
import jax.numpy as jnp
from jax.experimental import pallas as pl
from jax.experimental.pallas import tpu as pltpu

# SELU constants (match torch.nn.SELU)
_SELU_ALPHA = 1.6732632423543772
_SELU_SCALE = 1.0507009873554805

# SELU after every layer except the encoder output (idx 4) and the decoder
# output (idx 9) — matches the nn.Sequential definitions.
_SELU_AFTER = (True, True, True, True, False, True, True, True, True, False)


def _layer_dims(input_shape, latent_shape):
    enc = [(input_shape, 64), (64, 32), (32, 16), (16, 8), (8, latent_shape)]
    dec = [(latent_shape, 8), (8, 16), (16, 32), (32, 64), (64, input_shape)]
    return enc + dec


def _selu(x):
    # exp only on the clamped (negative) range; positive branch never feeds exp.
    neg = _SELU_ALPHA * (jnp.exp(jnp.minimum(x, 0.0)) - 1.0)
    return _SELU_SCALE * jnp.where(x > 0, x, neg)


def _cdiv(a, b):
    return -(-a // b)


def _round_up(x, m):
    return _cdiv(x, m) * m


def _tensorcores_per_chip():
    """2 on megacore chips (v4/v5p/v7x), 1 on v5e/v6e. Safe fallback: 1."""
    try:
        kind = jax.devices()[0].device_kind.lower().replace(" ", "")
    except Exception:
        return 1
    if any(tag in kind for tag in ("v4", "v5p", "v7", "7x")):
        return 2
    return 1


def _choose_batch_tile(batch, num_tc, max_tile=2048):
    """Single step on 1-TC chips; balanced multiple-of-num_tc steps otherwise."""
    if batch <= 256:
        return batch                     # block == full array (always legal)
    steps = _cdiv(batch, max_tile)       # respect the tile cap for huge batches
    steps = _cdiv(steps, num_tc) * num_tc
    if steps <= 1:
        return batch                     # one grid step, no padding needed
    return _round_up(_cdiv(batch, steps), 128)


# ---------------------------------------------------------------------------
# Kernel
# ---------------------------------------------------------------------------
def _autoencoder_kernel(x_ref, w_ref, b_ref, o_ref, *,
                        selu_after, in_features, out_features):
    n_layers = w_ref.shape[0]
    compute_dtype = w_ref.dtype                      # bf16 (or f32 fallback)
    b_all = b_ref[...]                               # (P, n_layers) f32, tiny

    # Layer 0: fuse the activation transpose into the matmul. x block is the
    # un-transposed (bt, F) tile; contracting both last axes computes
    # W0[:, :F] @ x^T -> (P, bt), i.e. batch lands on the lane axis for the
    # rest of the chain without an explicit transpose.
    w0 = w_ref[0][:, :in_features]                   # (P, F)
    h = jax.lax.dot_general(
        w0, x_ref[...].astype(compute_dtype),
        dimension_numbers=(((1,), (1,)), ((), ())),
        preferred_element_type=jnp.float32)          # (P, bt) f32 accumulation
    h = h + b_all[:, 0:1]
    if selu_after[0]:
        h = _selu(h)

    # Middle layers: uniform (P, P) @ (P, bt) MXU matmuls, f32 accumulation,
    # f32 elementwise (safe on v5e which has no bf16 VPU/EUP).
    for li in range(1, n_layers - 1):                # static unroll
        h = jnp.dot(w_ref[li], h.astype(compute_dtype),
                    preferred_element_type=jnp.float32)
        h = h + b_all[:, li:li + 1]
        if selu_after[li]:
            h = _selu(h)

    # Last layer: slice the weight to its real output rows so the MXU only
    # produces (out_features, bt); no SELU on the decoder output.
    last = n_layers - 1
    w_last = w_ref[last][:out_features, :]           # (F_out, P)
    h = jnp.dot(w_last, h.astype(compute_dtype),
                preferred_element_type=jnp.float32)  # (F_out, bt)
    h = h + b_all[:out_features, last:last + 1]
    if selu_after[last]:
        h = _selu(h)

    # One small in-kernel XLU transpose; store in the caller's (batch, feat)
    # layout so the wrapper needs no pad/transpose XLA ops at all.
    o_ref[...] = h.T.astype(o_ref.dtype)             # (bt, F_out)


# ---------------------------------------------------------------------------
# Parameter packing (done ONCE, outside the per-call path)
# ---------------------------------------------------------------------------
def prepare_params(weights, biases, *, compute_dtype=jnp.bfloat16, fuse_latent=True):
    """Pack torch-style (out, in) weights / (out,) biases into padded slabs.

    With fuse_latent=True the activation-free pair (encoder output layer ->
    decoder input layer) is composed in f32 (W' = W5 @ W4, b' = W5 @ b4 + b5),
    which is mathematically identical to the original forward and removes one
    matmul from the serial critical path. Composition happens in f32 BEFORE
    the cast to the compute dtype.
    """
    ws = [jnp.asarray(w, jnp.float32) for w in weights]
    bs = [jnp.asarray(b, jnp.float32) for b in biases]
    selu_after = list(_SELU_AFTER)
    if fuse_latent:
        w_f = ws[5] @ ws[4]                  # (8, latent) @ (latent, 8) -> (8, 8)
        b_f = ws[5] @ bs[4] + bs[5]          # (8,)
        ws = ws[:4] + [w_f] + ws[6:]
        bs = bs[:4] + [b_f] + bs[6:]
        selu_after = selu_after[:4] + [selu_after[5]] + selu_after[6:]

    n_layers = len(ws)
    max_dim = max(max(w.shape) for w in ws)
    pad = _round_up(max_dim, 8)              # stays 64 — do NOT widen further

    w_slab = jnp.zeros((n_layers, pad, pad), compute_dtype)
    b_slab = jnp.zeros((pad, n_layers), jnp.float32)
    for li, (w, b) in enumerate(zip(ws, bs)):
        out_f, in_f = w.shape
        w_slab = w_slab.at[li, :out_f, :in_f].set(w.astype(compute_dtype))
        b_slab = b_slab.at[:out_f, li].set(b)
    return w_slab, b_slab, tuple(selu_after)


# ---------------------------------------------------------------------------
# Forward wrapper
# ---------------------------------------------------------------------------
def autoencoder_selu_forward(x, w_slab, b_slab, selu_after, *, batch_tile=None):
    """x: (B, input_shape) float32. Returns (B, input_shape)."""
    B, F = x.shape
    n_layers, P, _ = w_slab.shape
    assert len(selu_after) == n_layers

    num_tc = _tensorcores_per_chip()
    bt = _choose_batch_tile(B, num_tc) if batch_tile is None else batch_tile
    grid_steps = _cdiv(B, bt)
    Bp = grid_steps * bt

    # Only pad rows when B is not divisible by the chosen tile (rare path).
    x_in = x if Bp == B else jnp.zeros((Bp, F), x.dtype).at[:B].set(x)

    kernel = functools.partial(_autoencoder_kernel, selu_after=tuple(selu_after),
                               in_features=F, out_features=F)

    out = pl.pallas_call(
        kernel,
        out_shape=jax.ShapeDtypeStruct((Bp, F), x.dtype),
        grid=(grid_steps,),
        in_specs=[
            pl.BlockSpec((bt, F), lambda i: (i, 0)),              # activations
            pl.BlockSpec((n_layers, P, P), lambda i: (0, 0, 0)),  # weights (resident)
            pl.BlockSpec((P, n_layers), lambda i: (0, 0)),        # biases  (resident)
        ],
        out_specs=pl.BlockSpec((bt, F), lambda i: (i, 0)),
        compiler_params=pltpu.CompilerParams(
            dimension_semantics=("parallel",),
            vmem_limit_bytes=16 * 1024 * 1024,
        ),
    )(x_in, w_slab, b_slab)

    return out if Bp == B else out[:B]


# ---------------------------------------------------------------------------
# Deterministic init + pure-JAX reference (original, unfused 10-layer math)
# ---------------------------------------------------------------------------
def init_params(key, input_shape, latent_shape):
    dims = _layer_dims(input_shape, latent_shape)
    weights, biases = [], []
    for (fan_in, fan_out) in dims:
        kw, kb, key = jax.random.split(key, 3)
        bound = 1.0 / jnp.sqrt(jnp.float32(fan_in))
        weights.append(jax.random.uniform(kw, (fan_out, fan_in), jnp.float32, -bound, bound))
        biases.append(jax.random.uniform(kb, (fan_out,), jnp.float32, -bound, bound))
    return weights, biases


def _reference_forward(x, weights, biases):
    h = x
    for li, (w, b) in enumerate(zip(weights, biases)):
        h = h @ w.T + b
        if _SELU_AFTER[li]:
            h = _selu(h)
    return h


if __name__ == "__main__":
    input_shape = 32
    latent_shape = 4
    batch = 512  # 1 grid step on v5e/v6e; 2 balanced 256-wide steps on v7x

    key = jax.random.PRNGKey(0)
    kx, kp = jax.random.split(key)
    x = jax.random.normal(kx, (batch, input_shape), jnp.float32)
    weights, biases = init_params(kp, input_shape, latent_shape)
    ref = _reference_forward(x, weights, biases)

    # f32 compute path (fused latent pair composed in f32): tight check.
    w32, b32, selu32 = prepare_params(weights, biases, compute_dtype=jnp.float32)
    fwd32 = jax.jit(lambda xx: autoencoder_selu_forward(xx, w32, b32, selu32))
    out_f32 = jax.block_until_ready(fwd32(x))
    assert out_f32.shape == (batch, input_shape)
    assert jnp.allclose(out_f32, ref, atol=1e-4, rtol=1e-4), "f32 mismatch vs reference"

    # bf16 MXU operands + f32 accumulation (production path): loose check.
    wbf, bbf, selubf = prepare_params(weights, biases, compute_dtype=jnp.bfloat16)
    fwdbf = jax.jit(lambda xx: autoencoder_selu_forward(xx, wbf, bbf, selubf))
    out_bf16 = jax.block_until_ready(fwdbf(x))
    assert out_bf16.shape == (batch, input_shape)
    assert jnp.allclose(out_bf16, ref, atol=5e-2, rtol=5e-2), "bf16 mismatch vs reference"

    print("KERNEL_OK")
</pallas_src>

<mosaic_0001>
module attributes {stable_mosaic.version = 11 : i64} {
  func.func @_autoencoder_kernel(%arg0: i32, %arg1: memref<512x32xf32, #tpu.memory_space<vmem>>, %arg2: memref<9x64x64xf32, #tpu.memory_space<vmem>>, %arg3: memref<64x9xf32, #tpu.memory_space<vmem>>, %arg4: memref<512x32xf32, #tpu.memory_space<vmem>>) attributes {dimension_semantics = [#tpu.dimension_semantics<parallel>], iteration_bounds = array<i64: 1>, scalar_prefetch = 0 : i64, scratch_operands = 0 : i64, tpu.core_type = #tpu.core_type<tc>, window_params = [{transform_indices = @transform_0, window_bounds = array<i64: 512, 32>}, {pipeline_mode = #tpu.pipeline_mode<synchronous>, transform_indices = @transform_1, window_bounds = array<i64: 9, 64, 64>}, {pipeline_mode = #tpu.pipeline_mode<synchronous>, transform_indices = @transform_2, window_bounds = array<i64: 64, 9>}, {transform_indices = @transform_3, window_bounds = array<i64: 512, 32>}]} {
    %c0 = arith.constant 0 : index
    %c0_0 = arith.constant 0 : index
    %0 = vector.load %arg3[%c0, %c0_0] : memref<64x9xf32, #tpu.memory_space<vmem>>, vector<64x9xf32>
    %c0_1 = arith.constant 0 : index
    %c0_2 = arith.constant 0 : index
    %c0_3 = arith.constant 0 : index
    %1 = vector.load %arg2[%c0_1, %c0_2, %c0_3] : memref<9x64x64xf32, #tpu.memory_space<vmem>>, vector<1x64x64xf32>
    %2 = vector.shape_cast %1 : vector<1x64x64xf32> to vector<64x64xf32>
    %3 = vector.extract_strided_slice %2 {offsets = [0, 0], sizes = [64, 32], strides = [1, 1]} : vector<64x64xf32> to vector<64x32xf32>
    %c0_4 = arith.constant 0 : index
    %c0_5 = arith.constant 0 : index
    %4 = vector.load %arg1[%c0_4, %c0_5] : memref<512x32xf32, #tpu.memory_space<vmem>>, vector<512x32xf32>
    %cst = arith.constant dense<0.000000e+00> : vector<64x512xf32>
    %5 = tpu.matmul %3, %4, %cst {dimension_numbers = #tpu.dot_dimension_numbers<[1], [1], [0], [0], [0, 0, 1, 0], [], []>} : vector<64x32xf32>, vector<512x32xf32>, vector<64x512xf32> -> vector<64x512xf32>
    %6 = vector.extract_strided_slice %0 {offsets = [0, 0], sizes = [64, 1], strides = [1, 1]} : vector<64x9xf32> to vector<64x1xf32>
    %7 = vector.broadcast %6 : vector<64x1xf32> to vector<64x512xf32>
    %8 = arith.addf %5, %7 : vector<64x512xf32>
    %cst_6 = arith.constant 0.000000e+00 : f32
    %9 = vector.broadcast %cst_6 : f32 to vector<64x512xf32>
    %10 = arith.minimumf %8, %9 : vector<64x512xf32>
    %11 = math.exp %10 : vector<64x512xf32>
    %cst_7 = arith.constant 1.000000e+00 : f32
    %12 = vector.broadcast %cst_7 : f32 to vector<64x512xf32>
    %13 = arith.subf %11, %12 : vector<64x512xf32>
    %cst_8 = arith.constant 1.67326319 : f32
    %14 = vector.broadcast %cst_8 : f32 to vector<64x512xf32>
    %15 = arith.mulf %14, %13 : vector<64x512xf32>
    %cst_9 = arith.constant 0.000000e+00 : f32
    %16 = vector.broadcast %cst_9 : f32 to vector<64x512xf32>
    %17 = arith.cmpf ogt, %8, %16 : vector<64x512xf32>
    %18 = arith.select %17, %8, %15 : vector<64x512xi1>, vector<64x512xf32>
    %cst_10 = arith.constant 1.05070102 : f32
    %19 = vector.broadcast %cst_10 : f32 to vector<64x512xf32>
    %20 = arith.mulf %19, %18 : vector<64x512xf32>
    %c1 = arith.constant 1 : index
    %c0_11 = arith.constant 0 : index
    %c0_12 = arith.constant 0 : index
    %21 = vector.load %arg2[%c1, %c0_11, %c0_12] : memref<9x64x64xf32, #tpu.memory_space<vmem>>, vector<1x64x64xf32>
    %22 = vector.shape_cast %21 : vector<1x64x64xf32> to vector<64x64xf32>
    %cst_13 = arith.constant dense<0.000000e+00> : vector<64x512xf32>
    %23 = tpu.matmul %22, %20, %cst_13 {dimension_numbers = #tpu.dot_dimension_numbers<[1], [0], [0], [1], [0, 0, 1, 1], [], []>} : vector<64x64xf32>, vector<64x512xf32>, vector<64x512xf32> -> vector<64x512xf32>
    %24 = vector.extract_strided_slice %0 {offsets = [0, 1], sizes = [64, 1], strides = [1, 1]} : vector<64x9xf32> to vector<64x1xf32>
    %25 = vector.broadcast %24 : vector<64x1xf32> to vector<64x512xf32>
    %26 = arith.addf %23, %25 : vector<64x512xf32>
    %cst_14 = arith.constant 0.000000e+00 : f32
    %27 = vector.broadcast %cst_14 : f32 to vector<64x512xf32>
    %28 = arith.minimumf %26, %27 : vector<64x512xf32>
    %29 = math.exp %28 : vector<64x512xf32>
    %cst_15 = arith.constant 1.000000e+00 : f32
    %30 = vector.broadcast %cst_15 : f32 to vector<64x512xf32>
    %31 = arith.subf %29, %30 : vector<64x512xf32>
    %cst_16 = arith.constant 1.67326319 : f32
    %32 = vector.broadcast %cst_16 : f32 to vector<64x512xf32>
    %33 = arith.mulf %32, %31 : vector<64x512xf32>
    %cst_17 = arith.constant 0.000000e+00 : f32
    %34 = vector.broadcast %cst_17 : f32 to vector<64x512xf32>
    %35 = arith.cmpf ogt, %26, %34 : vector<64x512xf32>
    %36 = arith.select %35, %26, %33 : vector<64x512xi1>, vector<64x512xf32>
    %cst_18 = arith.constant 1.05070102 : f32
    %37 = vector.broadcast %cst_18 : f32 to vector<64x512xf32>
    %38 = arith.mulf %37, %36 : vector<64x512xf32>
    %c2 = arith.constant 2 : index
    %c0_19 = arith.constant 0 : index
    %c0_20 = arith.constant 0 : index
    %39 = vector.load %arg2[%c2, %c0_19, %c0_20] : memref<9x64x64xf32, #tpu.memory_space<vmem>>, vector<1x64x64xf32>
    %40 = vector.shape_cast %39 : vector<1x64x64xf32> to vector<64x64xf32>
    %cst_21 = arith.constant dense<0.000000e+00> : vector<64x512xf32>
    %41 = tpu.matmul %40, %38, %cst_21 {dimension_numbers = #tpu.dot_dimension_numbers<[1], [0], [0], [1], [0, 0, 1, 1], [], []>} : vector<64x64xf32>, vector<64x512xf32>, vector<64x512xf32> -> vector<64x512xf32>
    %42 = vector.extract_strided_slice %0 {offsets = [0, 2], sizes = [64, 1], strides = [1, 1]} : vector<64x9xf32> to vector<64x1xf32>
    %43 = vector.broadcast %42 : vector<64x1xf32> to vector<64x512xf32>
    %44 = arith.addf %41, %43 : vector<64x512xf32>
    %cst_22 = arith.constant 0.000000e+00 : f32
    %45 = vector.broadcast %cst_22 : f32 to vector<64x512xf32>
    %46 = arith.minimumf %44, %45 : vector<64x512xf32>
    %47 = math.exp %46 : vector<64x512xf32>
    %cst_23 = arith.constant 1.000000e+00 : f32
    %48 = vector.broadcast %cst_23 : f32 to vector<64x512xf32>
    %49 = arith.subf %47, %48 : vector<64x512xf32>
    %cst_24 = arith.constant 1.67326319 : f32
    %50 = vector.broadcast %cst_24 : f32 to vector<64x512xf32>
    %51 = arith.mulf %50, %49 : vector<64x512xf32>
    %cst_25 = arith.constant 0.000000e+00 : f32
    %52 = vector.broadcast %cst_25 : f32 to vector<64x512xf32>
    %53 = arith.cmpf ogt, %44, %52 : vector<64x512xf32>
    %54 = arith.select %53, %44, %51 : vector<64x512xi1>, vector<64x512xf32>
    %cst_26 = arith.constant 1.05070102 : f32
    %55 = vector.broadcast %cst_26 : f32 to vector<64x512xf32>
    %56 = arith.mulf %55, %54 : vector<64x512xf32>
    %c3 = arith.constant 3 : index
    %c0_27 = arith.constant 0 : index
    %c0_28 = arith.constant 0 : index
    %57 = vector.load %arg2[%c3, %c0_27, %c0_28] : memref<9x64x64xf32, #tpu.memory_space<vmem>>, vector<1x64x64xf32>
    %58 = vector.shape_cast %57 : vector<1x64x64xf32> to vector<64x64xf32>
    %cst_29 = arith.constant dense<0.000000e+00> : vector<64x512xf32>
    %59 = tpu.matmul %58, %56, %cst_29 {dimension_numbers = #tpu.dot_dimension_numbers<[1], [0], [0], [1], [0, 0, 1, 1], [], []>} : vector<64x64xf32>, vector<64x512xf32>, vector<64x512xf32> -> vector<64x512xf32>
    %60 = vector.extract_strided_slice %0 {offsets = [0, 3], sizes = [64, 1], strides = [1, 1]} : vector<64x9xf32> to vector<64x1xf32>
    %61 = vector.broadcast %60 : vector<64x1xf32> to vector<64x512xf32>
    %62 = arith.addf %59, %61 : vector<64x512xf32>
    %cst_30 = arith.constant 0.000000e+00 : f32
    %63 = vector.broadcast %cst_30 : f32 to vector<64x512xf32>
    %64 = arith.minimumf %62, %63 : vector<64x512xf32>
    %65 = math.exp %64 : vector<64x512xf32>
    %cst_31 = arith.constant 1.000000e+00 : f32
    %66 = vector.broadcast %cst_31 : f32 to vector<64x512xf32>
    %67 = arith.subf %65, %66 : vector<64x512xf32>
    %cst_32 = arith.constant 1.67326319 : f32
    %68 = vector.broadcast %cst_32 : f32 to vector<64x512xf32>
    %69 = arith.mulf %68, %67 : vector<64x512xf32>
    %cst_33 = arith.constant 0.000000e+00 : f32
    %70 = vector.broadcast %cst_33 : f32 to vector<64x512xf32>
    %71 = arith.cmpf ogt, %62, %70 : vector<64x512xf32>
    %72 = arith.select %71, %62, %69 : vector<64x512xi1>, vector<64x512xf32>
    %cst_34 = arith.constant 1.05070102 : f32
    %73 = vector.broadcast %cst_34 : f32 to vector<64x512xf32>
    %74 = arith.mulf %73, %72 : vector<64x512xf32>
    %c4 = arith.constant 4 : index
    %c0_35 = arith.constant 0 : index
    %c0_36 = arith.constant 0 : index
    %75 = vector.load %arg2[%c4, %c0_35, %c0_36] : memref<9x64x64xf32, #tpu.memory_space<vmem>>, vector<1x64x64xf32>
    %76 = vector.shape_cast %75 : vector<1x64x64xf32> to vector<64x64xf32>
    %cst_37 = arith.constant dense<0.000000e+00> : vector<64x512xf32>
    %77 = tpu.matmul %76, %74, %cst_37 {dimension_numbers = #tpu.dot_dimension_numbers<[1], [0], [0], [1], [0, 0, 1, 1], [], []>} : vector<64x64xf32>, vector<64x512xf32>, vector<64x512xf32> -> vector<64x512xf32>
    %78 = vector.extract_strided_slice %0 {offsets = [0, 4], sizes = [64, 1], strides = [1, 1]} : vector<64x9xf32> to vector<64x1xf32>
    %79 = vector.broadcast %78 : vector<64x1xf32> to vector<64x512xf32>
    %80 = arith.addf %77, %79 : vector<64x512xf32>
    %cst_38 = arith.constant 0.000000e+00 : f32
    %81 = vector.broadcast %cst_38 : f32 to vector<64x512xf32>
    %82 = arith.minimumf %80, %81 : vector<64x512xf32>
    %83 = math.exp %82 : vector<64x512xf32>
    %cst_39 = arith.constant 1.000000e+00 : f32
    %84 = vector.broadcast %cst_39 : f32 to vector<64x512xf32>
    %85 = arith.subf %83, %84 : vector<64x512xf32>
    %cst_40 = arith.constant 1.67326319 : f32
    %86 = vector.broadcast %cst_40 : f32 to vector<64x512xf32>
    %87 = arith.mulf %86, %85 : vector<64x512xf32>
    %cst_41 = arith.constant 0.000000e+00 : f32
    %88 = vector.broadcast %cst_41 : f32 to vector<64x512xf32>
    %89 = arith.cmpf ogt, %80, %88 : vector<64x512xf32>
    %90 = arith.select %89, %80, %87 : vector<64x512xi1>, vector<64x512xf32>
    %cst_42 = arith.constant 1.05070102 : f32
    %91 = vector.broadcast %cst_42 : f32 to vector<64x512xf32>
    %92 = arith.mulf %91, %90 : vector<64x512xf32>
    %c5 = arith.constant 5 : index
    %c0_43 = arith.constant 0 : index
    %c0_44 = arith.constant 0 : index
    %93 = vector.load %arg2[%c5, %c0_43, %c0_44] : memref<9x64x64xf32, #tpu.memory_space<vmem>>, vector<1x64x64xf32>
    %94 = vector.shape_cast %93 : vector<1x64x64xf32> to vector<64x64xf32>
    %cst_45 = arith.constant dense<0.000000e+00> : vector<64x512xf32>
    %95 = tpu.matmul %94, %92, %cst_45 {dimension_numbers = #tpu.dot_dimension_numbers<[1], [0], [0], [1], [0, 0, 1, 1], [], []>} : vector<64x64xf32>, vector<64x512xf32>, vector<64x512xf32> -> vector<64x512xf32>
    %96 = vector.extract_strided_slice %0 {offsets = [0, 5], sizes = [64, 1], strides = [1, 1]} : vector<64x9xf32> to vector<64x1xf32>
    %97 = vector.broadcast %96 : vector<64x1xf32> to vector<64x512xf32>
    %98 = arith.addf %95, %97 : vector<64x512xf32>
    %cst_46 = arith.constant 0.000000e+00 : f32
    %99 = vector.broadcast %cst_46 : f32 to vector<64x512xf32>
    %100 = arith.minimumf %98, %99 : vector<64x512xf32>
    %101 = math.exp %100 : vector<64x512xf32>
    %cst_47 = arith.constant 1.000000e+00 : f32
    %102 = vector.broadcast %cst_47 : f32 to vector<64x512xf32>
    %103 = arith.subf %101, %102 : vector<64x512xf32>
    %cst_48 = arith.constant 1.67326319 : f32
    %104 = vector.broadcast %cst_48 : f32 to vector<64x512xf32>
    %105 = arith.mulf %104, %103 : vector<64x512xf32>
    %cst_49 = arith.constant 0.000000e+00 : f32
    %106 = vector.broadcast %cst_49 : f32 to vector<64x512xf32>
    %107 = arith.cmpf ogt, %98, %106 : vector<64x512xf32>
    %108 = arith.select %107, %98, %105 : vector<64x512xi1>, vector<64x512xf32>
    %cst_50 = arith.constant 1.05070102 : f32
    %109 = vector.broadcast %cst_50 : f32 to vector<64x512xf32>
    %110 = arith.mulf %109, %108 : vector<64x512xf32>
    %c6 = arith.constant 6 : index
    %c0_51 = arith.constant 0 : index
    %c0_52 = arith.constant 0 : index
    %111 = vector.load %arg2[%c6, %c0_51, %c0_52] : memref<9x64x64xf32, #tpu.memory_space<vmem>>, vector<1x64x64xf32>
    %112 = vector.shape_cast %111 : vector<1x64x64xf32> to vector<64x64xf32>
    %cst_53 = arith.constant dense<0.000000e+00> : vector<64x512xf32>
    %113 = tpu.matmul %112, %110, %cst_53 {dimension_numbers = #tpu.dot_dimension_numbers<[1], [0], [0], [1], [0, 0, 1, 1], [], []>} : vector<64x64xf32>, vector<64x512xf32>, vector<64x512xf32> -> vector<64x512xf32>
    %114 = vector.extract_strided_slice %0 {offsets = [0, 6], sizes = [64, 1], strides = [1, 1]} : vector<64x9xf32> to vector<64x1xf32>
    %115 = vector.broadcast %114 : vector<64x1xf32> to vector<64x512xf32>
    %116 = arith.addf %113, %115 : vector<64x512xf32>
    %cst_54 = arith.constant 0.000000e+00 : f32
    %117 = vector.broadcast %cst_54 : f32 to vector<64x512xf32>
    %118 = arith.minimumf %116, %117 : vector<64x512xf32>
    %119 = math.exp %118 : vector<64x512xf32>
    %cst_55 = arith.constant 1.000000e+00 : f32
    %120 = vector.broadcast %cst_55 : f32 to vector<64x512xf32>
    %121 = arith.subf %119, %120 : vector<64x512xf32>
    %cst_56 = arith.constant 1.67326319 : f32
    %122 = vector.broadcast %cst_56 : f32 to vector<64x512xf32>
    %123 = arith.mulf %122, %121 : vector<64x512xf32>
    %cst_57 = arith.constant 0.000000e+00 : f32
    %124 = vector.broadcast %cst_57 : f32 to vector<64x512xf32>
    %125 = arith.cmpf ogt, %116, %124 : vector<64x512xf32>
    %126 = arith.select %125, %116, %123 : vector<64x512xi1>, vector<64x512xf32>
    %cst_58 = arith.constant 1.05070102 : f32
    %127 = vector.broadcast %cst_58 : f32 to vector<64x512xf32>
    %128 = arith.mulf %127, %126 : vector<64x512xf32>
    %c7 = arith.constant 7 : index
    %c0_59 = arith.constant 0 : index
    %c0_60 = arith.constant 0 : index
    %129 = vector.load %arg2[%c7, %c0_59, %c0_60] : memref<9x64x64xf32, #tpu.memory_space<vmem>>, vector<1x64x64xf32>
    %130 = vector.shape_cast %129 : vector<1x64x64xf32> to vector<64x64xf32>
    %cst_61 = arith.constant dense<0.000000e+00> : vector<64x512xf32>
    %131 = tpu.matmul %130, %128, %cst_61 {dimension_numbers = #tpu.dot_dimension_numbers<[1], [0], [0], [1], [0, 0, 1, 1], [], []>} : vector<64x64xf32>, vector<64x512xf32>, vector<64x512xf32> -> vector<64x512xf32>
    %132 = vector.extract_strided_slice %0 {offsets = [0, 7], sizes = [64, 1], strides = [1, 1]} : vector<64x9xf32> to vector<64x1xf32>
    %133 = vector.broadcast %132 : vector<64x1xf32> to vector<64x512xf32>
    %134 = arith.addf %131, %133 : vector<64x512xf32>
    %cst_62 = arith.constant 0.000000e+00 : f32
    %135 = vector.broadcast %cst_62 : f32 to vector<64x512xf32>
    %136 = arith.minimumf %134, %135 : vector<64x512xf32>
    %137 = math.exp %136 : vector<64x512xf32>
    %cst_63 = arith.constant 1.000000e+00 : f32
    %138 = vector.broadcast %cst_63 : f32 to vector<64x512xf32>
    %139 = arith.subf %137, %138 : vector<64x512xf32>
    %cst_64 = arith.constant 1.67326319 : f32
    %140 = vector.broadcast %cst_64 : f32 to vector<64x512xf32>
    %141 = arith.mulf %140, %139 : vector<64x512xf32>
    %cst_65 = arith.constant 0.000000e+00 : f32
    %142 = vector.broadcast %cst_65 : f32 to vector<64x512xf32>
    %143 = arith.cmpf ogt, %134, %142 : vector<64x512xf32>
    %144 = arith.select %143, %134, %141 : vector<64x512xi1>, vector<64x512xf32>
    %cst_66 = arith.constant 1.05070102 : f32
    %145 = vector.broadcast %cst_66 : f32 to vector<64x512xf32>
    %146 = arith.mulf %145, %144 : vector<64x512xf32>
    %c8 = arith.constant 8 : index
    %c0_67 = arith.constant 0 : index
    %c0_68 = arith.constant 0 : index
    %147 = vector.load %arg2[%c8, %c0_67, %c0_68] : memref<9x64x64xf32, #tpu.memory_space<vmem>>, vector<1x64x64xf32>
    %148 = vector.shape_cast %147 : vector<1x64x64xf32> to vector<64x64xf32>
    %149 = vector.extract_strided_slice %148 {offsets = [0, 0], sizes = [32, 64], strides = [1, 1]} : vector<64x64xf32> to vector<32x64xf32>
    %cst_69 = arith.constant dense<0.000000e+00> : vector<32x512xf32>
    %150 = tpu.matmul %149, %146, %cst_69 {dimension_numbers = #tpu.dot_dimension_numbers<[1], [0], [0], [1], [0, 0, 1, 1], [], []>} : vector<32x64xf32>, vector<64x512xf32>, vector<32x512xf32> -> vector<32x512xf32>
    %151 = vector.extract_strided_slice %0 {offsets = [0, 8], sizes = [32, 1], strides = [1, 1]} : vector<64x9xf32> to vector<32x1xf32>
    %152 = vector.broadcast %151 : vector<32x1xf32> to vector<32x512xf32>
    %153 = arith.addf %150, %152 : vector<32x512xf32>
    %154 = tpu.transpose %153, [1, 0] : vector<32x512xf32> -> vector<512x32xf32>
    %c0_70 = arith.constant 0 : index
    %c0_71 = arith.constant 0 : index
    %155 = vector.load %arg4[%c0_70, %c0_71] : memref<512x32xf32, #tpu.memory_space<vmem>>, vector<512x32xf32>
    tpu.vector_store %arg4[%c0_70, %c0_71], %154 {strides = array<i32>} : memref<512x32xf32, #tpu.memory_space<vmem>>, vector<512x32xf32>,
    return
  }
  func.func @transform_0(%arg0: i32) -> (i32, i32) {
    %c0_i32 = arith.constant 0 : i32
    %c0_i32_0 = arith.constant 0 : i32
    return %arg0, %c0_i32 : i32, i32
  }
  func.func @transform_1(%arg0: i32) -> (i32, i32, i32) {
    %c0_i32 = arith.constant 0 : i32
    %c0_i32_0 = arith.constant 0 : i32
    %c0_i32_1 = arith.constant 0 : i32
    %c0_i32_2 = arith.constant 0 : i32
    return %c0_i32, %c0_i32_0, %c0_i32_1 : i32, i32, i32
  }
  func.func @transform_2(%arg0: i32) -> (i32, i32) {
    %c0_i32 = arith.constant 0 : i32
    %c0_i32_0 = arith.constant 0 : i32
    %c0_i32_1 = arith.constant 0 : i32
    return %c0_i32, %c0_i32_0 : i32, i32
  }
  func.func @transform_3(%arg0: i32) -> (i32, i32) {
    %c0_i32 = arith.constant 0 : i32
    %c0_i32_0 = arith.constant 0 : i32
    return %arg0, %c0_i32 : i32, i32
  }
}

</mosaic_0001>

<bundles_post_ra>
// kernel: _lambda_.1
= control target key start
LH: loop header
LB: loop body
LE: loop exit
PB: predicated region body
PF: predicated region fallthrough
CT: control target
= control target key end

     0   :  { %vm134_vm0 = vcmask 261120   ;;  %v6602_v3 = vmov 0   ;;  %s10419_s0 = inlined_call_operand.vmem [shape: f32[512,32], index: 0, kind: input, shape index: {}]   ;;  %s10420_s1 = inlined_call_operand.vmem [shape: f32[9,64,64], index: 1, kind: input, shape index: {}]   ;;  %s10421_s2 = inlined_call_operand.vmem [shape: f32[64,9], index: 2, kind: input, shape index: {}]   ;;  %s10422_s3 = inlined_call_operand.vmem [shape: f32[512,32], index: 3, kind: output, shape index: {}]  }
   0x1   :  { %v46_v0 = vld [vmem:[%s10419_s0 + $0x80] sm:$0xff]  ;;  %v47_v1 = vld [vmem:[%s10419_s0 + $0x88] sm:$0xff]  ;;  %vm6640_vm1 = vmpackc.low %vm134_vm0, %vm134_vm0  ;;  %6044 = vset.pattern.permute.xlu0 %v6602_v3  ;;  %6045 = vset.pattern.permute.xlu1 %v6602_v3 }
   0x2   :  { %v5682_v4 = vpack.c.bf16 %v47_v1, %v46_v0  ;;  %v78_v5 = vld [vmem:[%s10419_s0 + $0x180] sm:$0xff]  ;;  %v79_v6 = vld [vmem:[%s10419_s0 + $0x188] sm:$0xff]  ;;  %v48_v14 = vld [vmem:[%s10419_s0 + $0x90] sm:$0xff] }
   0x3   :  { %v30_v7 = vld [vmem:[%s10419_s0] sm:$0xff]  ;;  %v5730_v8 = vpack.c.bf16 %v79_v6, %v78_v5  ;;  %v31_v9 = vld [vmem:[%s10419_s0 + $0x8] sm:$0xff]  ;;  %v49_v15 = vld [vmem:[%s10419_s0 + $0x98] sm:$0xff] }
   0x4   :  { %v62_v10 = vld [vmem:[%s10419_s0 + $0x100] sm:$0xff]  ;;  %v63_v11 = vld [vmem:[%s10419_s0 + $0x108] sm:$0xff]  ;;  %5684 = vmatprep.subr.msk.bf16.mxu0 %vm6640_vm1, %v5682_v4  ;;  %v5685_v12 = vpack.c.bf16 %v31_v9, %v30_v7  ;;  %v80_v16 = vld [vmem:[%s10419_s0 + $0x190] sm:$0xff]  ;;  %v5688_v17 = vpack.c.bf16 %v49_v15, %v48_v14 }
   0x5   :  { %v5733_v13 = vpack.c.bf16 %v63_v11, %v62_v10  ;;  %5732 = vmatprep.subr.msk.bf16.mxu1 %vm6640_vm1, %v5730_v8  ;;  %v81_v18 = vld [vmem:[%s10419_s0 + $0x198] sm:$0xff]  ;;  %v32_v20 = vld [vmem:[%s10419_s0 + $0x10] sm:$0xff]  ;;  %v50_v24 = vld [vmem:[%s10419_s0 + $0xa0] sm:$0xff] }
   0x6   :  { %5687 = vmatpush3.bf16.xpose.msk.msra.mxu0 %vm6640_vm1, %v5685_v12  ;;  %v5736_v19 = vpack.c.bf16 %v81_v18, %v80_v16  ;;  %v33_v21 = vld [vmem:[%s10419_s0 + $0x18] sm:$0xff]  ;;  %v64_v22 = vld [vmem:[%s10419_s0 + $0x110] sm:$0xff]  ;;  %v51_v25 = vld [vmem:[%s10419_s0 + $0xa8] sm:$0xff] }
   0x7   :  { %5735 = vmatpush3.bf16.xpose.msk.msra.mxu1 %vm6640_vm1, %v5733_v13  ;;  %5690 = vmatprep.subr.msk.bf16.mxu0 %vm6640_vm1, %v5688_v17  ;;  %v65_v23 = vld [vmem:[%s10419_s0 + $0x118] sm:$0xff]  ;;  %v82_v26 = vld [vmem:[%s10419_s0 + $0x1a0] sm:$0xff]  ;;  %v83_v27 = vld [vmem:[%s10419_s0 + $0x1a8] sm:$0xff]  ;;  %v5691_v28 = vpack.c.bf16 %v33_v21, %v32_v20  ;;  %v5694_v30 = vpack.c.bf16 %v51_v25, %v50_v24 }
   0x8   :  { %5738 = vmatprep.subr.msk.bf16.mxu1 %vm6640_vm1, %v5736_v19  ;;  %v5739_v29 = vpack.c.bf16 %v65_v23, %v64_v22  ;;  %v5742_v31 = vpack.c.bf16 %v83_v27, %v82_v26  ;;  %v34_v32 = vld [vmem:[%s10419_s0 + $0x20] sm:$0xff]  ;;  %v35_v33 = vld [vmem:[%s10419_s0 + $0x28] sm:$0xff]  ;;  %v52_v36 = vld [vmem:[%s10419_s0 + $0xb0] sm:$0xff] }
   0x9   :  { %v66_v34 = vld [vmem:[%s10419_s0 + $0x120] sm:$0xff]  ;;  %v67_v35 = vld [vmem:[%s10419_s0 + $0x128] sm:$0xff]  ;;  %v53_v37 = vld [vmem:[%s10419_s0 + $0xb8] sm:$0xff]  ;;  %v5697_v40 = vpack.c.bf16 %v35_v33, %v34_v32 }
   0xa   :  { %v84_v38 = vld [vmem:[%s10419_s0 + $0x1b0] sm:$0xff]  ;;  %v85_v39 = vld [vmem:[%s10419_s0 + $0x1b8] sm:$0xff]  ;;  %v5745_v41 = vpack.c.bf16 %v67_v35, %v66_v34  ;;  %v5700_v42 = vpack.c.bf16 %v53_v37, %v52_v36  ;;  %v6755_v46 = vld [vmem:[%s10420_s1] sm:$0xff] }
   0xb   :  { %v5748_v43 = vpack.c.bf16 %v85_v39, %v84_v38  ;;  %v36_v44 = vld [vmem:[%s10419_s0 + $0x30] sm:$0xff]  ;;  %v37_v45 = vld [vmem:[%s10419_s0 + $0x38] sm:$0xff]  ;;  %v54_v49 = vld [vmem:[%s10419_s0 + $0xc0] sm:$0xff]  ;;  %5618 = vmatprep.mubr.msk.f32.mxu0 %vm134_vm0, %v6755_v46  ;;  %5666 = vmatprep.mubr.msk.f32.mxu1 %vm134_vm0, %v6755_v46 }
   0xc   :  { %v68_v47 = vld [vmem:[%s10419_s0 + $0x130] sm:$0xff]  ;;  %v69_v48 = vld [vmem:[%s10419_s0 + $0x138] sm:$0xff]  ;;  %v55_v50 = vld [vmem:[%s10419_s0 + $0xc8] sm:$0xff]  ;;  %v5703_v54 = vpack.c.bf16 %v37_v45, %v36_v44 }
   0xd   :  { %v86_v51 = vld [vmem:[%s10419_s0 + $0x1c0] sm:$0xff]  ;;  %v87_v52 = vld [vmem:[%s10419_s0 + $0x1c8] sm:$0xff]  ;;  %v5751_v55 = vpack.c.bf16 %v69_v48, %v68_v47  ;;  %v6792_v56 = vld [vmem:[%s10421_s2 + $0x10] sm:$0xff]  ;;  %v5706_v57 = vpack.c.bf16 %v55_v50, %v54_v49  ;;  %v6603_v50 = vmov 0.0  }
   0xe   :  { %5693 = vmatpush3.bf16.xpose.msk.msra.mxu0 %vm6640_vm1, %v5691_v28  ;;  %v6786_v53 = vld [vmem:[%s10421_s2] sm:$0xff]  ;;  %v5754_v58 = vpack.c.bf16 %v87_v52, %v86_v51  ;;  %106 = vperm.xlu1 %6045, %v6792_v56   ;;  %v6798_v59 = vld [vmem:[%s10421_s2 + $0x8] sm:$0xff]  ;;  %v6803_v60 = vld [vmem:[%s10421_s2 + $0x18] sm:$0xff]  ;;  %v6604_v52 = vmov 1  }
   0xf   :  { %5741 = vmatpush3.bf16.xpose.msk.msra.mxu1 %vm6640_vm1, %v5739_v29  ;;  %5696 = vmatprep.subr.msk.bf16.mxu0 %vm6640_vm1, %v5694_v30  ;;  %v38_v61 = vld [vmem:[%s10419_s0 + $0x40] sm:$0xff]  ;;  %v39_v62 = vld [vmem:[%s10419_s0 + $0x48] sm:$0xff]  ;;  %v56_v1 = vld [vmem:[%s10419_s0 + $0xd0] sm:$0xff] }
  0x10   :  { %5744 = vmatprep.subr.msk.bf16.mxu1 %vm6640_vm1, %v5742_v31  ;;  %96 = vperm.xlu0 %6044, %v6786_v53   ;;  %v70_v63 = vld [vmem:[%s10419_s0 + $0x140] sm:$0xff]  ;;  %v71_v0 = vld [vmem:[%s10419_s0 + $0x148] sm:$0xff]  ;;  %v57_v3 = vld [vmem:[%s10419_s0 + $0xd8] sm:$0xff]  ;;  %v5709_v8 = vpack.c.bf16 %v39_v62, %v38_v61 }
  0x11   :  { %v88_v4 = vld [vmem:[%s10419_s0 + $0x1d0] sm:$0xff]  ;;  %v89_v5 = vld [vmem:[%s10419_s0 + $0x1d8] sm:$0xff]  ;;  %v6842_v6 = vld [vmem:[%s10421_s2 + $0x20] sm:$0xff]  ;;  %v5757_v9 = vpack.c.bf16 %v71_v0, %v70_v63  ;;  %v5712_v10 = vpack.c.bf16 %v57_v3, %v56_v1 }
  0x12   :  { %111 = vperm.xlu1 %6045, %v6803_v60   ;;  %v6847_v7 = vld [vmem:[%s10421_s2 + $0x28] sm:$0xff]  ;;  %v5760_v11 = vpack.c.bf16 %v89_v5, %v88_v4  ;;  %v6854_v12 = vld [vmem:[%s10421_s2 + $0x30] sm:$0xff]  ;;  %v6859_v13 = vld [vmem:[%s10421_s2 + $0x38] sm:$0xff] }
  0x13   :  { %v40_v14 = vld [vmem:[%s10419_s0 + $0x50] sm:$0xff]  ;;  %v41_v15 = vld [vmem:[%s10419_s0 + $0x58] sm:$0xff]  ;;  %v58_v18 = vld [vmem:[%s10419_s0 + $0xe0] sm:$0xff] }
  0x14   :  { %101 = vperm.xlu0 %6044, %v6798_v59   ;;  %v72_v16 = vld [vmem:[%s10419_s0 + $0x150] sm:$0xff]  ;;  %v73_v17 = vld [vmem:[%s10419_s0 + $0x158] sm:$0xff]  ;;  %v59_v19 = vld [vmem:[%s10419_s0 + $0xe8] sm:$0xff]  ;;  %v5715_v22 = vpack.c.bf16 %v41_v15, %v40_v14 }
  0x15   :  { %v90_v20 = vld [vmem:[%s10419_s0 + $0x1e0] sm:$0xff]  ;;  %v91_v21 = vld [vmem:[%s10419_s0 + $0x1e8] sm:$0xff]  ;;  %v5763_v23 = vpack.c.bf16 %v73_v17, %v72_v16  ;;  %v5718_v24 = vpack.c.bf16 %v59_v19, %v58_v18  ;;  %v60_v30 = vld [vmem:[%s10419_s0 + $0xf0] sm:$0xff] }
  0x16   :  { %5699 = vmatpush3.bf16.xpose.msk.msra.mxu0 %vm6640_vm1, %v5697_v40  ;;  %121 = vperm.xlu1 %6045, %v6847_v7   ;;  %v5766_v25 = vpack.c.bf16 %v91_v21, %v90_v20  ;;  %v42_v26 = vld [vmem:[%s10419_s0 + $0x60] sm:$0xff]  ;;  %v43_v27 = vld [vmem:[%s10419_s0 + $0x68] sm:$0xff]  ;;  %v61_v31 = vld [vmem:[%s10419_s0 + $0xf8] sm:$0xff] }
  0x17   :  { %5747 = vmatpush3.bf16.xpose.msk.msra.mxu1 %vm6640_vm1, %v5745_v41  ;;  %5702 = vmatprep.subr.msk.bf16.mxu0 %vm6640_vm1, %v5700_v42  ;;  %v74_v28 = vld [vmem:[%s10419_s0 + $0x160] sm:$0xff]  ;;  %v75_v29 = vld [vmem:[%s10419_s0 + $0x168] sm:$0xff]  ;;  %v92_v32 = vld [vmem:[%s10419_s0 + $0x1f0] sm:$0xff]  ;;  %v5721_v34 = vpack.c.bf16 %v43_v27, %v42_v26  ;;  %v5724_v36 = vpack.c.bf16 %v61_v31, %v60_v30 }
  0x18   :  { %5750 = vmatprep.subr.msk.bf16.mxu1 %vm6640_vm1, %v5748_v43  ;;  %116 = vperm.xlu0 %6044, %v6842_v6   ;;  %v93_v33 = vld [vmem:[%s10419_s0 + $0x1f8] sm:$0xff]  ;;  %v5769_v35 = vpack.c.bf16 %v75_v29, %v74_v28  ;;  %v44_v38 = vld [vmem:[%s10419_s0 + $0x70] sm:$0xff]  ;;  %v23_v44 = vld [vmem:[%s10420_s1 + $0x8] sm:$0xff] }
  0x19   :  { %v5772_v37 = vpack.c.bf16 %v93_v33, %v92_v32  ;;  %v45_v39 = vld [vmem:[%s10419_s0 + $0x78] sm:$0xff]  ;;  %v76_v40 = vld [vmem:[%s10419_s0 + $0x170] sm:$0xff]  ;;  %v27_v47 = vld [vmem:[%s10420_s1 + $0x28] sm:$0xff] }
  0x1a   :  { %131 = vperm.xlu1 %6045, %v6859_v13   ;;  %v77_v41 = vld [vmem:[%s10419_s0 + $0x178] sm:$0xff]  ;;  %v5727_v42 = vpack.c.bf16 %v45_v39, %v44_v38  ;;  %v24_v45 = vld [vmem:[%s10420_s1 + $0x10] sm:$0xff] }
  0x1b   :  { %v5775_v43 = vpack.c.bf16 %v77_v41, %v76_v40  ;;  %v25_v2 = vld [vmem:[%s10420_s1 + $0x18] sm:$0xff]  ;;  %v28_v48 = vld [vmem:[%s10420_s1 + $0x30] sm:$0xff] }
  0x1c   :  { %126 = vperm.xlu0 %6044, %v6854_v12   ;;  %v29_v49 = vld [vmem:[%s10420_s1 + $0x38] sm:$0xff] }
  0x1e   :  { %5705 = vmatpush3.bf16.xpose.msk.msra.mxu0 %vm6640_vm1, %v5703_v54  ;;  %6047 = vset.pattern.permute.xlu1 %v6604_v52 }
  0x1f   :  { %5753 = vmatpush3.bf16.xpose.msk.msra.mxu1 %vm6640_vm1, %v5751_v55  ;;  %5708 = vmatprep.subr.msk.bf16.mxu0 %vm6640_vm1, %v5706_v57 }
  0x20   :  { %5756 = vmatprep.subr.msk.bf16.mxu1 %vm6640_vm1, %v5754_v58  ;;  %6046 = vset.pattern.permute.xlu0 %v6604_v52 }
  0x21   :  { %847 = vperm.xlu1 %6047, %v6798_v59   ;;  %843 = vperm.xlu0 %6046, %v6786_v53  }
  0x25   :  { %851 = vperm.xlu1 %6047, %v6792_v56   ;;  %855 = vperm.xlu0 %6046, %v6803_v60  }
  0x26   :  { %5711 = vmatpush3.bf16.xpose.msk.msra.mxu0 %vm6640_vm1, %v5709_v8 }
  0x27   :  { %5759 = vmatpush3.bf16.xpose.msk.msra.mxu1 %vm6640_vm1, %v5757_v9  ;;  %5714 = vmatprep.subr.msk.bf16.mxu0 %vm6640_vm1, %v5712_v10 }
  0x28   :  { %5762 = vmatprep.subr.msk.bf16.mxu1 %vm6640_vm1, %v5760_v11 }
  0x29   :  { %859 = vperm.xlu1 %6047, %v6842_v6   ;;  %863 = vperm.xlu0 %6046, %v6847_v7  }
  0x2d   :  { %867 = vperm.xlu1 %6047, %v6854_v12   ;;  %871 = vperm.xlu0 %6046, %v6859_v13  }
  0x2e   :  { %5717 = vmatpush3.bf16.xpose.msk.msra.mxu0 %vm6640_vm1, %v5715_v22 }
  0x2f   :  { %5765 = vmatpush3.bf16.xpose.msk.msra.mxu1 %vm6640_vm1, %v5763_v23  ;;  %5720 = vmatprep.subr.msk.bf16.mxu0 %vm6640_vm1, %v5718_v24 }
  0x30   :  { %5768 = vmatprep.subr.msk.bf16.mxu1 %vm6640_vm1, %v5766_v25 }
  0x36   :  { %5723 = vmatpush3.bf16.xpose.msk.msra.mxu0 %vm6640_vm1, %v5721_v34 }
  0x37   :  { %5771 = vmatpush3.bf16.xpose.msk.msra.mxu1 %vm6640_vm1, %v5769_v35  ;;  %5726 = vmatprep.subr.msk.bf16.mxu0 %vm6640_vm1, %v5724_v36 }
  0x38   :  { %5774 = vmatprep.subr.msk.bf16.mxu1 %vm6640_vm1, %v5772_v37 }
  0x3e   :  { %5729 = vmatpush3.bf16.xpose.msk.msra.mxu0 %vm6640_vm1, %v5727_v42 }
  0x3f   :  { %5777 = vmatpush3.bf16.xpose.msk.msra.mxu1 %vm6640_vm1, %v5775_v43 }
  0x45   :  { %5619 = vmatmul.mubr.msk.f32.vlgmr.msra.gmra.mrb[0].mxu0 %vm134_vm0, %v6755_v46 }
  0x46   :  { %5667 = vmatmul.mubr.msk.f32.vlgmr.msra.gmra.mrb[0].mxu1 %vm134_vm0, %v6755_v46  ;;  %5620 = vmatprep.mubr.msk.f32.mxu0 %vm134_vm0, %v23_v44  ;;  %v26_v46 = vld [vmem:[%s10420_s1 + $0x20] sm:$0xff] }
  0x47   :  { %5668 = vmatprep.mubr.msk.f32.mxu1 %vm134_vm0, %v23_v44 }
  0x49   :  { %5621 = vmatmul.mubr.msk.f32.gmra.mrb[2].mxu0 %vm134_vm0, %v23_v44 }
  0x4a   :  { %5669 = vmatmul.mubr.msk.f32.gmra.mrb[2].mxu1 %vm134_vm0, %v23_v44  ;;  %5622 = vmatprep.mubr.msk.f32.mxu0 %vm134_vm0, %v24_v45 }
  0x4b   :  { %5670 = vmatprep.mubr.msk.f32.mxu1 %vm134_vm0, %v24_v45 }
  0x4d   :  { %5623 = vmatmul.mubr.msk.f32.gmra.mrb[4].mxu0 %vm134_vm0, %v24_v45 }
  0x4e   :  { %5671 = vmatmul.mubr.msk.f32.gmra.mrb[4].mxu1 %vm134_vm0, %v24_v45  ;;  %5624 = vmatprep.mubr.msk.f32.mxu0 %vm134_vm0, %v25_v2 }
  0x4f   :  { %5672 = vmatprep.mubr.msk.f32.mxu1 %vm134_vm0, %v25_v2 }
  0x51   :  { %5625 = vmatmul.mubr.msk.f32.gmra.mrb[6].mxu0 %vm134_vm0, %v25_v2 }
  0x52   :  { %5673 = vmatmul.mubr.msk.f32.gmra.mrb[6].mxu1 %vm134_vm0, %v25_v2  ;;  %5626 = vmatprep.mubr.msk.f32.mxu0 %vm134_vm0, %v26_v46 }
  0x53   :  { %5674 = vmatprep.mubr.msk.f32.mxu1 %vm134_vm0, %v26_v46 }
  0x55   :  { %5627 = vmatmul.mubr.msk.f32.gmra.mrb[8].mxu0 %vm134_vm0, %v26_v46 }
  0x56   :  { %5675 = vmatmul.mubr.msk.f32.gmra.mrb[8].mxu1 %vm134_vm0, %v26_v46  ;;  %5628 = vmatprep.mubr.msk.f32.mxu0 %vm134_vm0, %v27_v47 }
  0x57   :  { %5676 = vmatprep.mubr.msk.f32.mxu1 %vm134_vm0, %v27_v47 }
  0x59   :  { %5629 = vmatmul.mubr.msk.f32.gmra.mrb[10].mxu0 %vm134_vm0, %v27_v47 }
  0x5a   :  { %5677 = vmatmul.mubr.msk.f32.gmra.mrb[10].mxu1 %vm134_vm0, %v27_v47  ;;  %5630 = vmatprep.mubr.msk.f32.mxu0 %vm134_vm0, %v28_v48 }
  0x5b   :  { %5678 = vmatprep.mubr.msk.f32.mxu1 %vm134_vm0, %v28_v48 }
  0x5d   :  { %5631 = vmatmul.mubr.msk.f32.gmra.mrb[12].mxu0 %vm134_vm0, %v28_v48 }
  0x5e   :  { %5679 = vmatmul.mubr.msk.f32.gmra.mrb[12].mxu1 %vm134_vm0, %v28_v48  ;;  %5632 = vmatprep.mubr.msk.f32.mxu0 %vm134_vm0, %v29_v49 }
  0x5f   :  { %5680 = vmatprep.mubr.msk.f32.mxu1 %vm134_vm0, %v29_v49 }
  0x61   :  { %5633 = vmatmul.mubr.msk.f32.gmra.mrb[14].mxu0 %vm134_vm0, %v29_v49 }
  0x62   :  { %5681 = vmatmul.mubr.msk.f32.gmra.mrb[14].mxu1 %vm134_vm0, %v29_v49  ;;  %963 = vmatprep.mubr.f32.mxu0 %v6603_v50 }
  0x63   :  { %1076 = vmatprep.mubr.f32.mxu1 %v6603_v50 }
  0x8d   :  { %v107_v60 = vpop.permute.xlu1 %106 }
  0x8f   :  { %v97_v51 = vpop.permute.xlu0 %96 }
  0x91   :  { %v112_v37 = vpop.permute.xlu1 %111 }
  0x93   :  { %v102_v63 = vpop.permute.xlu0 %101 }
 0x118   :  { %v417_v54 = vpop.f32.mrb[0].mxu0 }
 0x119   :  { %v530_v55 = vpop.f32.mrb[0].mxu1  ;;  %v7008_v57 = vadd.f32 %v417_v54, %v97_v51  ;;  %v419_v61 = vpop.f32.mrb[1].mxu0 }
 0x11a   :  { %v7010_v58 = vadd.f32 %v530_v55, %v97_v51  ;;  %v532_v62 = vpop.f32.mrb[1].mxu1  ;;  %v7012_v0 = vadd.f32 %v419_v61, %v97_v51 }
 0x11b   :  { %v7014_v1 = vadd.f32 %v532_v62, %v97_v51  ;;  %v577_v3 = vmin.f32 %v7008_v57, 0.0  ;;  %vm737_vm2 = vcmp.gt.f32.partialorder %v7008_v57, 0.0 }
 0x11c   :  { %v579_v4 = vmin.f32 %v7010_v58, 0.0  ;;  %v578_v53 = vmin.f32 %v7012_v0, 0.0  ;;  %v423_v5 = vpop.f32.mrb[2].mxu0  ;;  %vm739_vm3 = vcmp.gt.f32.partialorder %v7010_v58, 0.0  ;;  %vm738_vm6 = vcmp.gt.f32.partialorder %v7012_v0, 0.0 }
 0x11d   :  { %v580_v59 = vmin.f32 %v7014_v1, 0.0  ;;  %v536_v8 = vpop.f32.mrb[2].mxu1  ;;  %v609_v9 = vmul.f32 1.442695, %v577_v3  ;;  %v7022_v11 = vadd.f32 %v423_v5, %v102_v63  ;;  %v425_v15 = vpop.f32.mrb[3].mxu0  ;;  %vm740_vm7 = vcmp.gt.f32.partialorder %v7014_v1, 0.0 }
 0x11e   :  { %v613_v10 = vmul.f32 1.442695, %v579_v4  ;;  %v7024_v14 = vadd.f32 %v536_v8, %v102_v63  ;;  %v538_v16 = vpop.f32.mrb[3].mxu1  ;;  %v611_v17 = vmul.f32 1.442695, %v578_v53  ;;  %v7026_v18 = vadd.f32 %v425_v15, %v102_v63 }
 0x11f   :  { %v7028_v56 = vadd.f32 %v538_v16, %v102_v63  ;;  %6062 = vpow2.f32 %v609_v9  ;;  %v581_v19 = vmin.f32 %v7022_v11, 0.0  ;;  %v615_v21 = vmul.f32 1.442695, %v580_v59 }
 0x120   :  { %v583_v20 = vmin.f32 %v7024_v14, 0.0  ;;  %6064 = vpow2.f32 %v613_v10  ;;  %v582_v22 = vmin.f32 %v7026_v18, 0.0  ;;  %v429_v23 = vpop.f32.mrb[4].mxu0  ;;  %vm741_vm4 = vcmp.gt.f32.partialorder %v7022_v11, 0.0 }
 0x121   :  { %v542_v24 = vpop.f32.mrb[4].mxu1  ;;  %v617_v25 = vmul.f32 1.442695, %v581_v19  ;;  %v431_v27 = vpop.f32.mrb[5].mxu0  ;;  %6066 = vpow2.f32 %v611_v17  ;;  %v584_v28 = vmin.f32 %v7028_v56, 0.0  ;;  %v7036_v29 = vadd.f32 %v429_v23, %v107_v60 }
 0x122   :  { %v621_v26 = vmul.f32 1.442695, %v583_v20  ;;  %v544_v30 = vpop.f32.mrb[5].mxu1  ;;  %v619_v31 = vmul.f32 1.442695, %v582_v22  ;;  %v7038_v6 = vadd.f32 %v542_v24, %v107_v60  ;;  %v7046_v12 = vadd.f32 %v431_v27, %v107_v60 }
 0x123   :  { %6068 = vpow2.f32 %v617_v25  ;;  %v585_v7 = vmin.f32 %v7036_v29, 0.0  ;;  %v623_v38 = vmul.f32 1.442695, %v584_v28  ;;  %v7054_v45 = vadd.f32 %v544_v30, %v107_v60 }
 0x124   :  { %6070 = vpow2.f32 %v621_v26  ;;  %v435_v32 = vpop.f32.mrb[6].mxu0  ;;  %v587_v34 = vmin.f32 %v7038_v6, 0.0  ;;  %v586_v62 = vmin.f32 %v7046_v12, 0.0  ;;  %vm743_vm5 = vcmp.gt.f32.partialorder %v7024_v14, 0.0 }
 0x125   :  { %v548_v33 = vpop.f32.mrb[6].mxu1  ;;  %6072 = vpow2.f32 %v615_v21  ;;  %v437_v35 = vpop.f32.mrb[7].mxu0  ;;  %v625_v39 = vmul.f32 1.442695, %v585_v7  ;;  %v7044_v41 = vadd.f32 %v435_v32, %v112_v37  ;;  %v588_v53 = vmin.f32 %v7054_v45, 0.0 }
 0x126   :  { %v550_v36 = vpop.f32.mrb[7].mxu1  ;;  %6074 = vpow2.f32 %v619_v31  ;;  %v629_v40 = vmul.f32 1.442695, %v587_v34  ;;  %v7048_v13 = vadd.f32 %v548_v33, %v112_v37  ;;  %v7064_v59 = vadd.f32 %v437_v35, %v112_v37 }
 0x127   :  { %6076 = vpow2.f32 %v625_v39  ;;  %v589_v2 = vmin.f32 %v7044_v41, 0.0  ;;  %v627_v22 = vmul.f32 1.442695, %v586_v62  ;;  %v7080_v23 = vadd.f32 %v550_v36, %v112_v37 }
 0x128   :  { %v7050_v42 = vpop.f32.mrb[8].mxu0  ;;  %6078 = vpow2.f32 %v629_v40  ;;  %v591_v51 = vmin.f32 %v7048_v13, 0.0  ;;  %v631_v27 = vmul.f32 1.442695, %v588_v53  ;;  %vm742_vm8 = vcmp.gt.f32.partialorder %v7026_v18, 0.0 }
 0x129   :  { %v7052_v43 = vpop.f32.mrb[8].mxu1  ;;  %v6063_v44 = vpop.eup %6062  ;;  %6080 = vpow2.f32 %v623_v38  ;;  %v633_v54 = vmul.f32 1.442695, %v589_v2  ;;  %vm745_vm9 = vcmp.gt.f32.partialorder %v7036_v29, 0.0  ;;  %vm747_vm10 = vcmp.gt.f32.partialorder %v7038_v6, 0.0 }
 0x12a   :  { %v7057_v46 = vpop.f32.mrb[9].mxu0  ;;  %v7059_v47 = vpop.f32.mrb[9].mxu1  ;;  %v5150_v49 = vadd.f32 -1.0, %v6063_v44  ;;  %v637_v63 = vmul.f32 1.442695, %v591_v51  ;;  %vm749_vm11 = vcmp.gt.f32.partialorder %v7044_v41, 0.0 }
 0x12b   :  { %v6065_v48 = vpop.eup %6064  ;;  %6082 = vpow2.f32 %v633_v54  ;;  %vm751_vm12 = vcmp.gt.f32.partialorder %v7048_v13, 0.0  ;;  %vm744_vm13 = vcmp.gt.f32.partialorder %v7028_v56, 0.0  ;;  %vm746_vm14 = vcmp.gt.f32.partialorder %v7046_v12, 0.0 }
 0x12c   :  { %v5152_v52 = vadd.f32 -1.0, %v6065_v48  ;;  %v6067_v55 = vpop.eup %6066  ;;  %v705_v61 = vmul.f32 1.6732632, %v5150_v49  ;;  %v7066_v5 = vpop.f32.mrb[10].mxu0  ;;  %6084 = vpow2.f32 %v637_v63  ;;  %vm748_vm15 = vcmp.gt.f32.partialorder %v7054_v45, 0.0 }
 0x12d   :  { %v6069_v3 = vpop.eup %6068  ;;  %v7070_v10 = vpop.f32.mrb[10].mxu1  ;;  %v5151_v7 = vadd.f32 -1.0, %v6067_v55  ;;  %6086 = vpow2.f32 %v627_v22  ;;  %vm750_vm1 = vcmp.gt.f32.partialorder %v7064_v59, 0.0 }
 0x12e   :  { %v707_v4 = vmul.f32 1.6732632, %v5152_v52  ;;  %v6071_v8 = vpop.eup %6070  ;;  %v5154_v9 = vadd.f32 -1.0, %v6069_v3  ;;  %v7072_v15 = vpop.f32.mrb[11].mxu0  ;;  %v769_v17 = vsel %vm737_vm2, %v7008_v57, %v705_v61  ;;  %v590_v57 = vmin.f32 %v7064_v59, 0.0 }
 0x12f   :  { %v6073_v16 = vpop.eup %6072  ;;  %v5156_v60 = vadd.f32 -1.0, %v6071_v8  ;;  %v7077_v19 = vpop.f32.mrb[11].mxu1  ;;  %v7087_v31 = vmul.f32 1.050701, %v769_v17  ;;  %6088 = vpow2.f32 %v631_v27  ;;  %v706_v8 = vmul.f32 1.6732632, %v5151_v7 }
 0x130   :  { %v771_v20 = vsel %vm739_vm3, %v7010_v58, %v707_v4  ;;  %v709_v21 = vmul.f32 1.6732632, %v5154_v9  ;;  %v7082_v24 = vpop.f32.mrb[12].mxu0  ;;  %v6075_v25 = vpop.eup %6074  ;;  %v5153_v32 = vadd.f32 -1.0, %v6073_v16  ;;  %v635_v54 = vmul.f32 1.442695, %v590_v57 }
 0x131   :  { %v711_v26 = vmul.f32 1.6732632, %v5156_v60  ;;  %v7085_v28 = vpop.f32.mrb[12].mxu1  ;;  %v6077_v30 = vpop.eup %6076  ;;  %v7096_v36 = vmul.f32 1.050701, %v771_v20  ;;  %v5155_v3 = vadd.f32 -1.0, %v6075_v25 }
 0x132   :  { %v773_v58 = vsel %vm741_vm4, %v7022_v11, %v709_v21  ;;  %v7092_v33 = vpop.f32.mrb[13].mxu0  ;;  %v7094_v34 = vpop.f32.mrb[13].mxu1  ;;  %v5158_v39 = vadd.f32 -1.0, %v6077_v30  ;;  %v592_v11 = vmin.f32 %v7080_v23, 0.0  ;;  %v708_v60 = vmul.f32 1.6732632, %v5153_v32 }
 0x133   :  { %v6079_v35 = vpop.eup %6078  ;;  %v7098_v37 = vmul.f32 1.050701, %v773_v58  ;;  %v775_v38 = vsel %vm743_vm5, %v7024_v14, %v711_v26  ;;  %v117_v17 = vpop.permute.xlu0 %116  ;;  %6090 = vpow2.f32 %v635_v54  ;;  %v710_v57 = vmul.f32 1.6732632, %v5155_v3 }
 0x134   :  { %v6081_v40 = vpop.eup %6080  ;;  %v7103_v44 = vmul.f32 1.050701, %v775_v38  ;;  %v5160_v2 = vadd.f32 -1.0, %v6079_v35  ;;  %v7106_v48 = vpop.f32.mrb[14].mxu0  ;;  %v713_v52 = vmul.f32 1.6732632, %v5158_v39  ;;  %v7133_v26 = vadd.f32 %v7050_v42, %v117_v17 }
 0x135   :  { %v7108_v49 = vpop.f32.mrb[14].mxu1  ;;  %v5780_v51 = vpack.c.bf16 %v7098_v37, %v7087_v31  ;;  %v7113_v14 = vpop.f32.mrb[15].mxu0  ;;  %v5157_v4 = vadd.f32 -1.0, %v6081_v40  ;;  %v639_v16 = vmul.f32 1.442695, %v592_v11  ;;  %v7136_v27 = vadd.f32 %v7052_v43, %v117_v17 }
 0x136   :  { %v7115_v55 = vpop.f32.mrb[15].mxu1  ;;  %v5796_v61 = vpack.c.bf16 %v7103_v44, %v7096_v36  ;;  %v715_v62 = vmul.f32 1.6732632, %v5160_v2  ;;  %v6083_v63 = vpop.eup %6082  ;;  %v777_v20 = vsel %vm745_vm9, %v7036_v29, %v713_v52  ;;  %v7139_v32 = vadd.f32 %v7057_v46, %v117_v17 }
 0x137   :  { %v6085_v53 = vpop.eup %6084  ;;  %v5162_v9 = vadd.f32 -1.0, %v6083_v63  ;;  %v712_v30 = vmul.f32 1.6732632, %v5157_v4  ;;  %v7141_v29 = vmul.f32 1.050701, %v777_v20  ;;  %6092 = vpow2.f32 %v639_v16  ;;  %v127_v20 = vpop.permute.xlu0 %126 }
 0x138   :  { %v5164_v21 = vadd.f32 -1.0, %v6085_v53  ;;  %v779_v22 = vsel %vm747_vm10, %v7038_v6, %v715_v62  ;;  %v593_v6 = vmin.f32 %v7133_v26, 0.0  ;;  %v595_v46 = vmin.f32 %v7136_v27, 0.0  ;;  %v6087_v2 = vpop.eup %6086  ;;  %v122_v62 = vpop.permute.xlu1 %121 }
 0x139   :  { %v717_v25 = vmul.f32 1.6732632, %v5162_v9  ;;  %v7147_v42 = vmul.f32 1.050701, %v779_v22  ;;  %v770_v38 = vsel %vm738_vm6, %v7012_v0, %v706_v8  ;;  %v594_v40 = vmin.f32 %v7139_v32, 0.0  ;;  %v6089_v4 = vpop.eup %6088 }
 0x13a   :  { %v719_v7 = vmul.f32 1.6732632, %v5164_v21  ;;  %v772_v11 = vsel %vm740_vm7, %v7014_v1, %v708_v60  ;;  %v645_v54 = vmul.f32 1.442695, %v595_v46  ;;  %v7172_v3 = vadd.f32 %v7059_v47, %v117_v17 }
 0x13b   :  { %v781_v58 = vsel %vm749_vm11, %v7044_v41, %v717_v25  ;;  %v641_v41 = vmul.f32 1.442695, %v593_v6  ;;  %v643_v63 = vmul.f32 1.442695, %v594_v40  ;;  %v7174_v53 = vmul.f32 1.050701, %v770_v38 }
 0x13c   :  { %v7149_v35 = vmul.f32 1.050701, %v781_v58  ;;  %v783_v43 = vsel %vm751_vm12, %v7048_v13, %v719_v7  ;;  %v774_v13 = vsel %vm742_vm8, %v7026_v18, %v710_v57  ;;  %v7178_v1 = vadd.f32 %v7066_v5, %v122_v62 }
 0x13d   :  { %v7158_v39 = vmul.f32 1.050701, %v783_v43  ;;  %6094 = vpow2.f32 %v641_v41  ;;  %v7181_v18 = vadd.f32 %v7070_v10, %v122_v62  ;;  %v776_v8 = vsel %vm744_vm13, %v7028_v56, %v712_v30  ;;  %v6091_v16 = vpop.eup %6090 }
 0x13e   :  { %v5784_v52 = vpack.c.bf16 %v7149_v35, %v7141_v29  ;;  %6096 = vpow2.f32 %v645_v54  ;;  %v5159_v9 = vadd.f32 -1.0, %v6087_v2  ;;  %v596_v47 = vmin.f32 %v7172_v3, 0.0 }
 0x13f   :  { %v5800_v0 = vpack.c.bf16 %v7158_v39, %v7147_v42  ;;  %6098 = vpow2.f32 %v643_v63  ;;  %v7187_v17 = vmul.f32 1.050701, %v772_v11  ;;  %v7189_v60 = vmul.f32 1.050701, %v774_v13 }
 0x140   :  { %v597_v5 = vmin.f32 %v7178_v1, 0.0  ;;  %v599_v10 = vmin.f32 %v7181_v18, 0.0  ;;  %v5161_v21 = vadd.f32 -1.0, %v6089_v4  ;;  %v647_v22 = vmul.f32 1.442695, %v596_v47 }
 0x141   :  { %v7195_v56 = vadd.f32 %v7072_v15, %v122_v62  ;;  %v7198_v25 = vadd.f32 %v7077_v19, %v122_v62  ;;  %v7200_v57 = vmul.f32 1.050701, %v776_v8  ;;  %v7203_v58 = vadd.f32 %v7082_v24, %v127_v20  ;;  %v6093_v6 = vpop.eup %6092 }
 0x142   :  { %v649_v30 = vmul.f32 1.442695, %v597_v5  ;;  %v653_v7 = vmul.f32 1.442695, %v599_v10  ;;  %v714_v43 = vmul.f32 1.6732632, %v5159_v9  ;;  %6100 = vpow2.f32 %v647_v22 }
 0x143   :  { %v598_v46 = vmin.f32 %v7195_v56, 0.0  ;;  %v7208_v15 = vadd.f32 %v7085_v28, %v127_v20  ;;  %v5163_v38 = vadd.f32 -1.0, %v6091_v16  ;;  %v600_v19 = vmin.f32 %v7198_v25, 0.0 }
 0x144   :  { %6102 = vpow2.f32 %v649_v30  ;;  %v601_v41 = vmin.f32 %v7203_v58, 0.0  ;;  %v716_v40 = vmul.f32 1.6732632, %v5161_v21  ;;  %vm752_vm2 = vcmp.gt.f32.partialorder %v7080_v23, 0.0  ;;  %v132_v21 = vpop.permute.xlu1 %131 }
 0x145   :  { %6104 = vpow2.f32 %v653_v7  ;;  %v651_v24 = vmul.f32 1.442695, %v598_v46  ;;  %v5165_v2 = vadd.f32 -1.0, %v6093_v6  ;;  %v655_v11 = vmul.f32 1.442695, %v600_v19 }
 0x146   :  { %v657_v13 = vmul.f32 1.442695, %v601_v41  ;;  %v7214_v54 = vadd.f32 %v7092_v33, %v127_v20  ;;  %v7219_v28 = vsel %vm746_vm14, %v7046_v12, %v714_v43  ;;  %v603_v63 = vmin.f32 %v7208_v15, 0.0 }
 0x147   :  { %v6095_v62 = vpop.eup %6094  ;;  %6106 = vpow2.f32 %v651_v24  ;;  %v7223_v4 = vadd.f32 %v7094_v34, %v127_v20  ;;  %v718_v9 = vmul.f32 1.6732632, %v5163_v38  ;;  %v7229_v5 = vsel %vm748_vm15, %v7054_v45, %v716_v40 }
 0x148   :  { %v6097_v8 = vpop.eup %6096  ;;  %v5166_v47 = vadd.f32 -1.0, %v6095_v62  ;;  %6108 = vpow2.f32 %v655_v11  ;;  %v602_v16 = vmin.f32 %v7214_v54, 0.0  ;;  %v661_v10 = vmul.f32 1.442695, %v603_v63 }
 0x149   :  { %v6099_v33 = vpop.eup %6098  ;;  %v5168_v12 = vadd.f32 -1.0, %v6097_v8  ;;  %6110 = vpow2.f32 %v657_v13  ;;  %v720_v22 = vmul.f32 1.6732632, %v5165_v2  ;;  %v604_v20 = vmin.f32 %v7223_v4, 0.0 }
 0x14a   :  { %v721_v30 = vmul.f32 1.6732632, %v5166_v47  ;;  %v5167_v34 = vadd.f32 -1.0, %v6099_v33  ;;  %vm753_vm3 = vcmp.gt.f32.partialorder %v7133_v26, 0.0  ;;  %6112 = vpow2.f32 %v661_v10 }
 0x14b   :  { %v659_v7 = vmul.f32 1.442695, %v602_v16  ;;  %v7234_v6 = vadd.f32 %v7106_v48, %v132_v21  ;;  %v782_v45 = vsel %vm750_vm1, %v7064_v59, %v718_v9  ;;  %v723_v43 = vmul.f32 1.6732632, %v5168_v12 }
 0x14c   :  { %vm755_vm4 = vcmp.gt.f32.partialorder %v7136_v27, 0.0  ;;  %v7241_v46 = vadd.f32 %v7108_v49, %v132_v21  ;;  %v6101_v38 = vpop.eup %6100  ;;  %vm757_vm5 = vcmp.gt.f32.partialorder %v7178_v1, 0.0  ;;  %vm759_vm6 = vcmp.gt.f32.partialorder %v7181_v18, 0.0 }
 0x14d   :  { %vm758_vm7 = vcmp.gt.f32.partialorder %v7195_v56, 0.0  ;;  %v605_v48 = vmin.f32 %v7234_v6, 0.0  ;;  %v784_v59 = vsel %vm752_vm2, %v7080_v23, %v720_v22  ;;  %v785_v41 = vsel %vm753_vm3, %v7133_v26, %v721_v30 }
 0x14e   :  { %v6103_v19 = vpop.eup %6102  ;;  %v722_v40 = vmul.f32 1.6732632, %v5167_v34  ;;  %vm760_vm8 = vcmp.gt.f32.partialorder %v7198_v25, 0.0  ;;  %v663_v49 = vmul.f32 1.442695, %v604_v20  ;;  %vm754_vm9 = vcmp.gt.f32.partialorder %v7139_v32, 0.0 }
 0x14f   :  { %v6105_v24 = vpop.eup %6104  ;;  %v5170_v2 = vadd.f32 -1.0, %v6103_v19  ;;  %6114 = vpow2.f32 %v659_v7  ;;  %v665_v11 = vmul.f32 1.442695, %v605_v48  ;;  %v607_v13 = vmin.f32 %v7241_v46, 0.0 }
 0x150   :  { %v787_v62 = vsel %vm755_vm4, %v7136_v27, %v723_v43  ;;  %v5169_v63 = vadd.f32 -1.0, %v6101_v38  ;;  %v5172_v23 = vadd.f32 -1.0, %v6105_v24  ;;  %v7258_v26 = vadd.f32 %v7113_v14, %v132_v21 }
 0x151   :  { %v6107_v8 = vpop.eup %6106  ;;  %v7260_v9 = vmul.f32 1.050701, %v785_v41  ;;  %v725_v47 = vmul.f32 1.6732632, %v5170_v2  ;;  %6116 = vpow2.f32 %v665_v11  ;;  %v669_v16 = vmul.f32 1.442695, %v607_v13 }
 0x152   :  { %v6109_v33 = vpop.eup %6108  ;;  %v727_v12 = vmul.f32 1.6732632, %v5172_v23  ;;  %v5171_v10 = vadd.f32 -1.0, %v6107_v8  ;;  %6118 = vpow2.f32 %v663_v49  ;;  %v606_v22 = vmin.f32 %v7258_v26, 0.0 }
 0x153   :  { %v6111_v30 = vpop.eup %6110  ;;  %v7263_v34 = vmul.f32 1.050701, %v787_v62  ;;  %v789_v14 = vsel %vm757_vm5, %v7178_v1, %v725_v47  ;;  %v5173_v27 = vadd.f32 -1.0, %v6109_v33  ;;  %6120 = vpow2.f32 %v669_v16 }
 0x154   :  { %v724_v20 = vmul.f32 1.6732632, %v5169_v63  ;;  %v7268_v7 = vmul.f32 1.050701, %v789_v14  ;;  %v791_v43 = vsel %vm759_vm6, %v7181_v18, %v727_v12  ;;  %v726_v38 = vmul.f32 1.6732632, %v5171_v10  ;;  %v6113_v48 = vpop.eup %6112 }
 0x155   :  { %v7273_v19 = vmul.f32 1.050701, %v791_v43  ;;  %v728_v41 = vmul.f32 1.6732632, %v5173_v27  ;;  %v667_v49 = vmul.f32 1.442695, %v606_v22  ;;  %v5778_v24 = vpack.c.bf16 %v7189_v60, %v7174_v53 }
 0x156   :  { %v5788_v1 = vpack.c.bf16 %v7268_v7, %v7260_v9  ;;  %v790_v2 = vsel %vm758_vm7, %v7195_v56, %v726_v38  ;;  %v5174_v11 = vadd.f32 -1.0, %v6111_v30  ;;  %v7283_v13 = vadd.f32 %v7115_v55, %v132_v21 }
 0x157   :  { %v814_v18 = vmul.f32 1.050701, %v782_v45  ;;  %vm756_vm10 = vcmp.gt.f32.partialorder %v7172_v3, 0.0  ;;  %v5804_v62 = vpack.c.bf16 %v7273_v19, %v7263_v34  ;;  %v792_v53 = vsel %vm760_vm8, %v7198_v25, %v728_v41  ;;  %5779 = vmatprep.subr.bf16.mxu0 %v5778_v24 }
 0x158   :  { %v810_v60 = vmul.f32 1.050701, %v7219_v28  ;;  %v786_v56 = vsel %vm754_vm9, %v7139_v32, %v722_v40  ;;  %v788_v55 = vsel %vm756_vm10, %v7172_v3, %v724_v20  ;;  %v5176_v21 = vadd.f32 -1.0, %v6113_v48  ;;  %5781 = vmatpush1.bf16.msra.mxu0 %v5780_v51 }
 0x159   :  { %v6115_v45 = vpop.eup %6114  ;;  %v816_v63 = vmul.f32 1.050701, %v784_v59  ;;  %v822_v23 = vmul.f32 1.050701, %v790_v2  ;;  %v824_v8 = vmul.f32 1.050701, %v792_v53  ;;  %6122 = vpow2.f32 %v667_v49 }
 0x15a   :  { %v812_v25 = vmul.f32 1.050701, %v7229_v5  ;;  %v729_v9 = vmul.f32 1.6732632, %v5174_v11  ;;  %v608_v28 = vmin.f32 %v7283_v13, 0.0  ;;  %v5794_v3 = vpack.c.bf16 %v7200_v57, %v7187_v17  ;;  %v5187_v53 = vld [vmem:[%s10420_s1 + $0x68] sm:$0xff] }
 0x15b   :  { %v6117_v47 = vpop.eup %6116  ;;  %v818_v16 = vmul.f32 1.050701, %v786_v56  ;;  %v820_v32 = vmul.f32 1.050701, %v788_v55  ;;  %v5782_v40 = vpack.c.bf16 %v814_v18, %v810_v60  ;;  %vm761_vm11 = vcmp.gt.f32.partialorder %v7203_v58, 0.0  ;;  %v5185_v18 = vld [vmem:[%s10420_s1 + $0x58] sm:$0xff]  ;;  %v844_v55 = vpop.permute.xlu0 %843 }
 0x15c   :  { %v6119_v33 = vpop.eup %6118  ;;  %v731_v31 = vmul.f32 1.6732632, %v5176_v21  ;;  %v5178_v37 = vadd.f32 -1.0, %v6117_v47  ;;  %v671_v51 = vmul.f32 1.442695, %v608_v28  ;;  %v5175_v12 = vadd.f32 -1.0, %v6115_v45  ;;  %5795 = vmatprep.subr.bf16.mxu1 %v5794_v3 }
 0x15d   :  { %v6121_v59 = vpop.eup %6120  ;;  %5783 = vmatprep.subr.bf16.mxu0 %v5782_v40  ;;  %v5798_v5 = vpack.c.bf16 %v816_v63, %v812_v25  ;;  %v5786_v10 = vpack.c.bf16 %v822_v23, %v818_v16  ;;  %v5802_v22 = vpack.c.bf16 %v824_v8, %v820_v32  ;;  %v793_v30 = vsel %vm761_vm11, %v7203_v58, %v729_v9  ;;  %v5188_v60 = vld [vmem:[%s10420_s1 + $0x70] sm:$0xff]  ;;  %v5189_v56 = vld [vmem:[%s10420_s1 + $0x78] sm:$0xff]  ;;  %v848_v63 = vpop.permute.xlu1 %847  ;;  %v7392_v25 = vld [vmem:[%s10421_s2] sm:$0xff] }
 0x15e   :  { %v733_v14 = vmul.f32 1.6732632, %v5178_v37  ;;  %v5180_v27 = vadd.f32 -1.0, %v6121_v59  ;;  %6124 = vpow2.f32 %v671_v51  ;;  %5797 = vmatpush1.bf16.msra.mxu1 %v5796_v61  ;;  %5785 = vmatpush1.bf16.msra.mxu0 %v5784_v52  ;;  %vm763_vm12 = vcmp.gt.f32.partialorder %v7208_v15, 0.0  ;;  %v7398_v9 = vld [vmem:[%s10421_s2 + $0x8] sm:$0xff]  ;;  %v7410_v37 = vld [vmem:[%s10421_s2 + $0x10] sm:$0xff] }
 0x15f   :  { %vm765_vm13 = vcmp.gt.f32.partialorder %v7234_v6, 0.0  ;;  %5799 = vmatprep.subr.bf16.mxu1 %v5798_v5  ;;  %5787 = vmatprep.subr.bf16.mxu0 %v5786_v10  ;;  %v795_v17 = vsel %vm763_vm12, %v7208_v15, %v731_v31  ;;  %v825_v20 = vmul.f32 1.050701, %v793_v30  ;;  %vm767_vm14 = vcmp.gt.f32.partialorder %v7241_v46, 0.0  ;;  %v7416_v51 = vld [vmem:[%s10421_s2 + $0x20] sm:$0xff] }
 0x160   :  { %v797_v57 = vsel %vm765_vm13, %v7234_v6, %v733_v14  ;;  %v735_v58 = vmul.f32 1.6732632, %v5180_v27  ;;  %v730_v36 = vmul.f32 1.6732632, %v5175_v12  ;;  %v827_v29 = vmul.f32 1.050701, %v795_v17 }
 0x161   :  { %v829_v7 = vmul.f32 1.050701, %v797_v57  ;;  %v5177_v35 = vadd.f32 -1.0, %v6119_v33  ;;  %vm762_vm15 = vcmp.gt.f32.partialorder %v7214_v54, 0.0  ;;  %vm766_vm1 = vcmp.gt.f32.partialorder %v7258_v26, 0.0 }
 0x162   :  { %v799_v44 = vsel %vm767_vm14, %v7241_v46, %v735_v58  ;;  %5801 = vmatpush1.bf16.msra.mxu1 %v5800_v0  ;;  %5789 = vmatpush1.bf16.msra.mxu0 %v5788_v1  ;;  %v794_v38 = vsel %vm762_vm15, %v7214_v54, %v730_v36  ;;  %vm764_vm2 = vcmp.gt.f32.partialorder %v7223_v4, 0.0  ;;  %vm768_vm3 = vcmp.gt.f32.partialorder %v7283_v13, 0.0  ;;  %v7432_v36 = vld [vmem:[%s10421_s2 + $0x18] sm:$0xff] }
 0x163   :  { %v6123_v61 = vpop.eup %6122  ;;  %v5792_v52 = vpack.c.bf16 %v829_v7, %v825_v20  ;;  %v831_v15 = vmul.f32 1.050701, %v799_v44  ;;  %5803 = vmatprep.subr.bf16.mxu1 %v5802_v22  ;;  %v732_v42 = vmul.f32 1.6732632, %v5177_v35  ;;  %v826_v46 = vmul.f32 1.050701, %v794_v38  ;;  %v852_v22 = vpop.permute.xlu1 %851 }
 0x164   :  { %v5179_v6 = vadd.f32 -1.0, %v6123_v61  ;;  %vm874_vm4 = vcmask 523264   ;;  %v6605_v45 = vmov 2   ;;  %v7438_v44 = vld [vmem:[%s10421_s2 + $0x30] sm:$0xff] }
 0x165   :  { %v5808_v43 = vpack.c.bf16 %v831_v15, %v827_v29  ;;  %v796_v24 = vsel %vm764_vm2, %v7223_v4, %v732_v42  ;;  %v5183_v4 = vld [vmem:[%s10420_s1 + $0x48] sm:$0xff]  ;;  %6048 = vset.pattern.permute.xlu1 %v6605_v45  ;;  %6049 = vset.pattern.permute.xlu0 %v6605_v45 }
 0x166   :  { %v734_v48 = vmul.f32 1.6732632, %v5179_v6  ;;  %5805 = vmatpush1.bf16.msra.mxu1 %v5804_v62  ;;  %v828_v19 = vmul.f32 1.050701, %v796_v24  ;;  %v5186_v62 = vld [vmem:[%s10420_s1 + $0x60] sm:$0xff]  ;;  %1391 = vperm.xlu1 %6048, %v7392_v25   ;;  %v7455_v24 = vld [vmem:[%s10421_s2 + $0x28] sm:$0xff] }
 0x167   :  { %1395 = vperm.xlu0 %6049, %v7398_v9  }
 0x168   :  { %v6125_v39 = vpop.eup %6124  ;;  %v798_v0 = vsel %vm766_vm1, %v7258_v26, %v734_v48  ;;  %v5182_v26 = vld [vmem:[%s10420_s1 + $0x40] sm:$0xff] }
 0x169   :  { %v830_v41 = vmul.f32 1.050701, %v798_v0  ;;  %v5181_v49 = vadd.f32 -1.0, %v6125_v39 }
 0x16a   :  { %1399 = vperm.xlu1 %6048, %v7410_v37  }
 0x16b   :  { %v736_v1 = vmul.f32 1.6732632, %v5181_v49  ;;  %v5790_v54 = vpack.c.bf16 %v830_v41, %v826_v46  ;;  %1407 = vperm.xlu0 %6049, %v7416_v51  }
 0x16d   :  { %v800_v34 = vsel %vm768_vm3, %v7283_v13, %v736_v1  ;;  %5791 = vmatprep.subr.bf16.mxu0 %v5790_v54  ;;  %v5184_v13 = vld [vmem:[%s10420_s1 + $0x50] sm:$0xff] }
 0x16e   :  { %v832_v2 = vmul.f32 1.050701, %v800_v34  ;;  %5793 = vmatpush1.bf16.msra.mxu0 %v5792_v52  ;;  %1403 = vperm.xlu1 %6048, %v7432_v36  }
 0x16f   :  { %1415 = vperm.xlu0 %6049, %v7438_v44  }
 0x170   :  { %v5806_v11 = vpack.c.bf16 %v832_v2, %v828_v19  ;;  %v856_v2 = vpop.permute.xlu0 %855 }
 0x171   :  { %5190 = vmatmul.mubr.msk.f32.vlgmr.msra.gmra.mrb[16].mxu0 %vm874_vm4, %v5182_v26 }
 0x172   :  { %5807 = vmatprep.subr.bf16.mxu1 %v5806_v11  ;;  %969 = vmatprep.mubr.f32.mxu0 %v6603_v50 }
 0x173   :  { %5809 = vmatpush1.bf16.msra.mxu1 %v5808_v43  ;;  %1411 = vperm.xlu1 %6048, %v7455_v24  }
 0x175   :  { %5191 = vmatmul.mubr.msk.f32.gmra.mrb[18].mxu0 %vm874_vm4, %v5183_v4 }
 0x176   :  { %5198 = vmatmul.mubr.msk.f32.vlgmr.msra.gmra.mrb[16].mxu1 %vm874_vm4, %v5182_v26  ;;  %975 = vmatprep.mubr.f32.mxu0 %v6603_v50 }
 0x177   :  { %1082 = vmatprep.mubr.f32.mxu1 %v6603_v50 }
 0x179   :  { %5192 = vmatmul.mubr.msk.f32.gmra.mrb[20].mxu0 %vm874_vm4, %v5184_v13 }
 0x17a   :  { %5199 = vmatmul.mubr.msk.f32.gmra.mrb[18].mxu1 %vm874_vm4, %v5183_v4  ;;  %981 = vmatprep.mubr.f32.mxu0 %v6603_v50 }
 0x17b   :  { %1088 = vmatprep.mubr.f32.mxu1 %v6603_v50 }
 0x17d   :  { %5193 = vmatmul.mubr.msk.f32.gmra.mrb[22].mxu0 %vm874_vm4, %v5185_v18 }
 0x17e   :  { %5200 = vmatmul.mubr.msk.f32.gmra.mrb[20].mxu1 %vm874_vm4, %v5184_v13  ;;  %987 = vmatprep.mubr.f32.mxu0 %v6603_v50 }
 0x17f   :  { %1094 = vmatprep.mubr.f32.mxu1 %v6603_v50 }
 0x181   :  { %5194 = vmatmul.mubr.msk.f32.gmra.mrb[24].mxu0 %vm874_vm4, %v5186_v62 }
 0x182   :  { %5201 = vmatmul.mubr.msk.f32.gmra.mrb[22].mxu1 %vm874_vm4, %v5185_v18  ;;  %993 = vmatprep.mubr.f32.mxu0 %v6603_v50 }
 0x183   :  { %1100 = vmatprep.mubr.f32.mxu1 %v6603_v50 }
 0x185   :  { %5195 = vmatmul.mubr.msk.f32.gmra.mrb[26].mxu0 %vm874_vm4, %v5187_v53 }
 0x186   :  { %5202 = vmatmul.mubr.msk.f32.gmra.mrb[24].mxu1 %vm874_vm4, %v5186_v62  ;;  %999 = vmatprep.mubr.f32.mxu0 %v6603_v50 }
 0x187   :  { %1106 = vmatprep.mubr.f32.mxu1 %v6603_v50 }
 0x189   :  { %5196 = vmatmul.mubr.msk.f32.gmra.mrb[28].mxu0 %vm874_vm4, %v5188_v60 }
 0x18a   :  { %5203 = vmatmul.mubr.msk.f32.gmra.mrb[26].mxu1 %vm874_vm4, %v5187_v53  ;;  %1005 = vmatprep.mubr.f32.mxu0 %v6603_v50 }
 0x18b   :  { %1112 = vmatprep.mubr.f32.mxu1 %v6603_v50 }
 0x18d   :  { %5197 = vmatmul.mubr.msk.f32.gmra.mrb[30].mxu0 %vm874_vm4, %v5189_v56 }
 0x18e   :  { %5204 = vmatmul.mubr.msk.f32.gmra.mrb[28].mxu1 %vm874_vm4, %v5188_v60  ;;  %1510 = vmatprep.mubr.f32.mxu0 %v6603_v50 }
 0x18f   :  { %1118 = vmatprep.mubr.f32.mxu1 %v6603_v50 }
 0x192   :  { %5205 = vmatmul.mubr.msk.f32.gmra.mrb[30].mxu1 %vm874_vm4, %v5189_v56 }
 0x193   :  { %1623 = vmatprep.mubr.f32.mxu1 %v6603_v50 }
 0x244   :  { %v965_v21 = vpop.f32.mrb[16].mxu0 }
 0x245   :  { %v7387_v23 = vadd.f32 %v965_v21, %v844_v55  ;;  %v967_v8 = vpop.f32.mrb[17].mxu0 }
 0x246   :  { %v7401_v28 = vadd.f32 %v967_v8, %v844_v55 }
 0x247   :  { %v1125_v47 = vmin.f32 %v7387_v23, 0.0  ;;  %vm1285_vm5 = vcmp.gt.f32.partialorder %v7387_v23, 0.0 }
 0x248   :  { %v1126_v16 = vmin.f32 %v7401_v28, 0.0  ;;  %v971_v32 = vpop.f32.mrb[18].mxu0  ;;  %vm1286_vm8 = vcmp.gt.f32.partialorder %v7401_v28, 0.0 }
 0x249   :  { %v1157_v3 = vmul.f32 1.442695, %v1125_v47  ;;  %v1078_v40 = vpop.f32.mrb[16].mxu1  ;;  %v7405_v33 = vadd.f32 %v971_v32, %v848_v63  ;;  %v973_v31 = vpop.f32.mrb[19].mxu0 }
 0x24a   :  { %v7419_v59 = vadd.f32 %v1078_v40, %v844_v55  ;;  %v1159_v12 = vmul.f32 1.442695, %v1126_v16  ;;  %v1080_v5 = vpop.f32.mrb[17].mxu1  ;;  %v7421_v10 = vadd.f32 %v973_v31, %v848_v63 }
 0x24b   :  { %6126 = vpow2.f32 %v1157_v3  ;;  %v7423_v30 = vadd.f32 %v1080_v5, %v844_v55  ;;  %v1129_v14 = vmin.f32 %v7405_v33, 0.0  ;;  %v7473_v55 = vld [vmem:[%s10421_s2 + $0x38] sm:$0xff]  ;;  %vm1289_vm6 = vcmp.gt.f32.partialorder %v7405_v33, 0.0 }
 0x24c   :  { %v1127_v27 = vmin.f32 %v7419_v59, 0.0  ;;  %v977_v17 = vpop.f32.mrb[20].mxu0  ;;  %v1130_v7 = vmin.f32 %v7421_v10, 0.0  ;;  %6128 = vpow2.f32 %v1159_v12  ;;  %1419 = vperm.xlu1 %6048, %v7473_v55   ;;  %vm1287_vm7 = vcmp.gt.f32.partialorder %v7419_v59, 0.0 }
 0x24d   :  { %v1128_v57 = vmin.f32 %v7423_v30, 0.0  ;;  %v1165_v58 = vmul.f32 1.442695, %v1129_v14  ;;  %v1084_v20 = vpop.f32.mrb[18].mxu1  ;;  %v7443_v52 = vadd.f32 %v977_v17, %v852_v22  ;;  %v979_v15 = vpop.f32.mrb[21].mxu0  ;;  %vm1288_vm9 = vcmp.gt.f32.partialorder %v7423_v30, 0.0 }
 0x24e   :  { %v1161_v61 = vmul.f32 1.442695, %v1127_v27  ;;  %v7441_v29 = vadd.f32 %v1084_v20, %v848_v63  ;;  %v1086_v35 = vpop.f32.mrb[19].mxu1  ;;  %v1167_v39 = vmul.f32 1.442695, %v1130_v7  ;;  %v7450_v41 = vadd.f32 %v979_v15, %v852_v22 }
 0x24f   :  { %v1163_v6 = vmul.f32 1.442695, %v1128_v57  ;;  %6130 = vpow2.f32 %v1165_v58  ;;  %v7445_v43 = vadd.f32 %v1086_v35, %v848_v63  ;;  %v1133_v48 = vmin.f32 %v7443_v52, 0.0 }
 0x250   :  { %6132 = vpow2.f32 %v1161_v61  ;;  %v1131_v38 = vmin.f32 %v7441_v29, 0.0  ;;  %v983_v42 = vpop.f32.mrb[22].mxu0  ;;  %v1134_v62 = vmin.f32 %v7450_v41, 0.0  ;;  %vm1291_vm10 = vcmp.gt.f32.partialorder %v7441_v29, 0.0 }
 0x251   :  { %v1132_v0 = vmin.f32 %v7445_v43, 0.0  ;;  %v1090_v46 = vpop.f32.mrb[20].mxu1  ;;  %v985_v49 = vpop.f32.mrb[23].mxu0  ;;  %6134 = vpow2.f32 %v1163_v6  ;;  %v1173_v54 = vmul.f32 1.442695, %v1133_v48  ;;  %v7461_v11 = vadd.f32 %v983_v42, %v856_v2 }
 0x252   :  { %v1169_v1 = vmul.f32 1.442695, %v1131_v38  ;;  %v7458_v34 = vadd.f32 %v1090_v46, %v852_v22  ;;  %v1092_v19 = vpop.f32.mrb[21].mxu1  ;;  %v1175_v12 = vmul.f32 1.442695, %v1134_v62  ;;  %v7482_v5 = vadd.f32 %v985_v49, %v856_v2 }
 0x253   :  { %v1171_v18 = vmul.f32 1.442695, %v1132_v0  ;;  %v7466_v53 = vadd.f32 %v1092_v19, %v852_v22  ;;  %v1137_v63 = vmin.f32 %v7461_v11, 0.0  ;;  %vm1290_vm11 = vcmp.gt.f32.partialorder %v7421_v10, 0.0 }
 0x254   :  { %6136 = vpow2.f32 %v1169_v1  ;;  %v1135_v26 = vmin.f32 %v7458_v34, 0.0  ;;  %v7463_v4 = vpop.f32.mrb[24].mxu0  ;;  %vm1292_vm12 = vcmp.gt.f32.partialorder %v7445_v43, 0.0  ;;  %vm1293_vm13 = vcmp.gt.f32.partialorder %v7443_v52, 0.0 }
 0x255   :  { %v6127_v13 = vpop.eup %6126  ;;  %6138 = vpow2.f32 %v1167_v39  ;;  %v1096_v60 = vpop.f32.mrb[22].mxu1  ;;  %v1181_v32 = vmul.f32 1.442695, %v1137_v63  ;;  %v1136_v57 = vmin.f32 %v7466_v53, 0.0  ;;  %v1138_v39 = vmin.f32 %v7482_v5, 0.0 }
 0x256   :  { %v7468_v56 = vpop.f32.mrb[25].mxu0  ;;  %v5206_v21 = vadd.f32 -1.0, %v6127_v13  ;;  %6140 = vpow2.f32 %v1173_v54  ;;  %v1177_v45 = vmul.f32 1.442695, %v1135_v26  ;;  %v1098_v8 = vpop.f32.mrb[23].mxu1  ;;  %v7477_v3 = vadd.f32 %v1096_v60, %v856_v2 }
 0x257   :  { %v6129_v47 = vpop.eup %6128  ;;  %v7493_v35 = vadd.f32 %v1098_v8, %v856_v2  ;;  %v1183_v8 = vmul.f32 1.442695, %v1138_v39  ;;  %vm1295_vm14 = vcmp.gt.f32.partialorder %v7458_v34, 0.0  ;;  %vm1297_vm15 = vcmp.gt.f32.partialorder %v7461_v11, 0.0 }
 0x258   :  { %v1253_v16 = vmul.f32 1.6732632, %v5206_v21  ;;  %6142 = vpow2.f32 %v1177_v45  ;;  %v7479_v40 = vpop.f32.mrb[26].mxu0  ;;  %v1139_v58 = vmin.f32 %v7477_v3, 0.0  ;;  %v5207_v6 = vadd.f32 -1.0, %v6129_v47 }
 0x259   :  { %v6131_v31 = vpop.eup %6130  ;;  %6144 = vpow2.f32 %v1171_v18  ;;  %v7484_v22 = vpop.f32.mrb[24].mxu1  ;;  %v1140_v13 = vmin.f32 %v7493_v35, 0.0  ;;  %vm1299_vm1 = vcmp.gt.f32.partialorder %v7477_v3, 0.0  ;;  %vm1294_vm2 = vcmp.gt.f32.partialorder %v7450_v41, 0.0 }
 0x25a   :  { %v7486_v14 = vpop.f32.mrb[27].mxu0  ;;  %v6133_v27 = vpop.eup %6132  ;;  %v5210_v17 = vadd.f32 -1.0, %v6131_v31  ;;  %6146 = vpow2.f32 %v1181_v32  ;;  %v1317_v7 = vsel %vm1285_vm5, %v7387_v23, %v1253_v16  ;;  %v1185_v42 = vmul.f32 1.442695, %v1139_v58 }
 0x25b   :  { %v7490_v20 = vpop.f32.mrb[25].mxu1  ;;  %v5208_v61 = vadd.f32 -1.0, %v6133_v27  ;;  %v6135_v15 = vpop.eup %6134  ;;  %v7498_v46 = vmul.f32 1.050701, %v1317_v7  ;;  %6148 = vpow2.f32 %v1175_v12  ;;  %v1179_v23 = vmul.f32 1.442695, %v1136_v57 }
 0x25c   :  { %v1257_v38 = vmul.f32 1.6732632, %v5210_v17  ;;  %v5209_v19 = vadd.f32 -1.0, %v6135_v15  ;;  %v1254_v60 = vmul.f32 1.6732632, %v5207_v6  ;;  %6150 = vpow2.f32 %v1185_v42 }
 0x25d   :  { %v1255_v48 = vmul.f32 1.6732632, %v5208_v61  ;;  %v7501_v1 = vpop.f32.mrb[26].mxu1  ;;  %6152 = vpow2.f32 %v1179_v23  ;;  %v1187_v57 = vmul.f32 1.442695, %v1140_v13  ;;  %vm1296_vm3 = vcmp.gt.f32.partialorder %v7466_v53, 0.0 }
 0x25e   :  { %v6137_v0 = vpop.eup %6136  ;;  %v1321_v49 = vsel %vm1289_vm6, %v7405_v33, %v1257_v38  ;;  %v7506_v18 = vpop.f32.mrb[27].mxu1  ;;  %v1256_v17 = vmul.f32 1.6732632, %v5209_v19  ;;  %v1318_v6 = vsel %vm1286_vm8, %v7401_v28, %v1254_v60  ;;  %6154 = vpow2.f32 %v1183_v8 }
 0x25f   :  { %v6139_v54 = vpop.eup %6138  ;;  %v7503_v2 = vmul.f32 1.050701, %v1321_v49  ;;  %v5212_v26 = vadd.f32 -1.0, %v6137_v0  ;;  %v7510_v33 = vpop.f32.mrb[28].mxu0  ;;  %v1319_v21 = vsel %vm1287_vm7, %v7419_v59, %v1255_v48  ;;  %v7544_v19 = vmul.f32 1.050701, %v1318_v6 }
 0x260   :  { %v6141_v62 = vpop.eup %6140  ;;  %v7519_v16 = vpop.f32.mrb[29].mxu0  ;;  %v5211_v31 = vadd.f32 -1.0, %v6139_v54  ;;  %v7528_v15 = vmul.f32 1.050701, %v1319_v21  ;;  %6156 = vpow2.f32 %v1187_v57  ;;  %v1320_v13 = vsel %vm1288_vm9, %v7423_v30, %v1256_v17 }
 0x261   :  { %v5812_v45 = vpack.c.bf16 %v7503_v2, %v7498_v46  ;;  %v1259_v63 = vmul.f32 1.6732632, %v5212_v26  ;;  %v7517_v47 = vpop.f32.mrb[28].mxu1  ;;  %v5214_v12 = vadd.f32 -1.0, %v6141_v62  ;;  %v7526_v7 = vpop.f32.mrb[30].mxu0  ;;  %vm1298_vm5 = vcmp.gt.f32.partialorder %v7482_v5, 0.0 }
 0x262   :  { %v6143_v32 = vpop.eup %6142  ;;  %v7524_v58 = vpop.f32.mrb[29].mxu1  ;;  %v1258_v0 = vmul.f32 1.6732632, %v5211_v31  ;;  %vm1300_vm6 = vcmp.gt.f32.partialorder %v7493_v35, 0.0 }
 0x263   :  { %v6145_v27 = vpop.eup %6144  ;;  %v1323_v59 = vsel %vm1291_vm10, %v7441_v29, %v1259_v63  ;;  %v1261_v48 = vmul.f32 1.6732632, %v5214_v12  ;;  %v5216_v29 = vadd.f32 -1.0, %v6143_v32  ;;  %v7542_v28 = vpop.f32.mrb[31].mxu0 }
 0x264   :  { %v6147_v61 = vpop.eup %6146  ;;  %v7533_v38 = vmul.f32 1.050701, %v1323_v59  ;;  %v5213_v49 = vadd.f32 -1.0, %v6145_v27  ;;  %v860_v54 = vpop.permute.xlu1 %859 }
 0x265   :  { %v5218_v42 = vadd.f32 -1.0, %v6147_v61  ;;  %v7540_v23 = vpop.f32.mrb[30].mxu1  ;;  %v6149_v26 = vpop.eup %6148  ;;  %v1325_v62 = vsel %vm1293_vm13, %v7443_v52, %v1261_v48  ;;  %v7555_v21 = vadd.f32 %v7463_v4, %v860_v54  ;;  %v1263_v8 = vmul.f32 1.6732632, %v5216_v29 }
 0x266   :  { %v5828_v39 = vpack.c.bf16 %v7533_v38, %v7528_v15  ;;  %v7557_v63 = vpop.f32.mrb[31].mxu1  ;;  %v7560_v32 = vadd.f32 %v7484_v22, %v860_v54  ;;  %v7563_v31 = vadd.f32 %v7468_v56, %v860_v54  ;;  %v7566_v12 = vadd.f32 %v7490_v20, %v860_v54  ;;  %v6151_v30 = vpop.eup %6150 }
 0x267   :  { %v1265_v60 = vmul.f32 1.6732632, %v5218_v42  ;;  %v1322_v52 = vsel %vm1290_vm11, %v7421_v10, %v1258_v0  ;;  %v1260_v27 = vmul.f32 1.6732632, %v5213_v49  ;;  %v1141_v17 = vmin.f32 %v7555_v21, 0.0  ;;  %v6153_v48 = vpop.eup %6152  ;;  %v864_v49 = vpop.permute.xlu0 %863 }
 0x268   :  { %v7575_v22 = vmul.f32 1.050701, %v1325_v62  ;;  %v5220_v56 = vadd.f32 -1.0, %v6151_v30  ;;  %v1143_v20 = vmin.f32 %v7560_v32, 0.0  ;;  %v5215_v57 = vadd.f32 -1.0, %v6149_v26 }
 0x269   :  { %v1329_v4 = vsel %vm1297_vm15, %v7461_v11, %v1265_v60  ;;  %v1189_v61 = vmul.f32 1.442695, %v1141_v17  ;;  %v1142_v10 = vmin.f32 %v7563_v31, 0.0  ;;  %v1144_v6 = vmin.f32 %v7566_v12, 0.0  ;;  %v6155_v60 = vpop.eup %6154 }
 0x26a   :  { %v7577_v59 = vmul.f32 1.050701, %v1329_v4  ;;  %v1327_v11 = vsel %vm1295_vm14, %v7458_v34, %v1263_v8  ;;  %v1267_v42 = vmul.f32 1.6732632, %v5220_v56  ;;  %v1193_v0 = vmul.f32 1.442695, %v1143_v20  ;;  %v6157_v17 = vpop.eup %6156 }
 0x26b   :  { %v1324_v54 = vsel %vm1292_vm12, %v7445_v43, %v1260_v27  ;;  %6158 = vpow2.f32 %v1189_v61  ;;  %v1191_v26 = vmul.f32 1.442695, %v1142_v10  ;;  %v1195_v62 = vmul.f32 1.442695, %v1144_v6  ;;  %v868_v6 = vpop.permute.xlu1 %867 }
 0x26c   :  { %v5816_v29 = vpack.c.bf16 %v7577_v59, %v7575_v22  ;;  %v1331_v30 = vsel %vm1299_vm1, %v7477_v3, %v1267_v42  ;;  %6160 = vpow2.f32 %v1193_v0  ;;  %v7595_v34 = vadd.f32 %v7479_v40, %v864_v49 }
 0x26d   :  { %v7598_v8 = vadd.f32 %v7501_v1, %v864_v49  ;;  %v7600_v4 = vmul.f32 1.050701, %v1327_v11  ;;  %v7603_v43 = vmul.f32 1.050701, %v1331_v30  ;;  %6162 = vpow2.f32 %v1191_v26 }
 0x26e   :  { %v7606_v27 = vadd.f32 %v7486_v14, %v864_v49  ;;  %v1262_v56 = vmul.f32 1.6732632, %v5215_v57  ;;  %v5217_v3 = vadd.f32 -1.0, %v6153_v48  ;;  %6164 = vpow2.f32 %v1195_v62 }
 0x26f   :  { %v1145_v40 = vmin.f32 %v7595_v34, 0.0  ;;  %v7610_v1 = vmul.f32 1.050701, %v1320_v13  ;;  %v5832_v20 = vpack.c.bf16 %v7603_v43, %v7600_v4  ;;  %v5219_v61 = vadd.f32 -1.0, %v6155_v60 }
 0x270   :  { %v1147_v10 = vmin.f32 %v7598_v8, 0.0  ;;  %v7615_v11 = vmul.f32 1.050701, %v1322_v52  ;;  %v7617_v14 = vmul.f32 1.050701, %v1324_v54  ;;  %v7620_v48 = vadd.f32 %v7506_v18, %v864_v49 }
 0x271   :  { %v1197_v57 = vmul.f32 1.442695, %v1145_v40  ;;  %v5221_v42 = vadd.f32 -1.0, %v6157_v17  ;;  %v1146_v13 = vmin.f32 %v7606_v27, 0.0  ;;  %v7624_v26 = vadd.f32 %v7510_v33, %v868_v6 }
 0x272   :  { %v1201_v0 = vmul.f32 1.442695, %v1147_v10  ;;  %v7629_v62 = vsel %vm1294_vm2, %v7450_v41, %v1262_v56  ;;  %v1264_v52 = vmul.f32 1.6732632, %v5217_v3  ;;  %v1148_v54 = vmin.f32 %v7620_v48, 0.0  ;;  %v7643_v10 = vpop.permute.xlu0 %871 }
 0x273   :  { %6166 = vpow2.f32 %v1197_v57  ;;  %v1266_v60 = vmul.f32 1.6732632, %v5219_v61  ;;  %v1199_v18 = vmul.f32 1.442695, %v1146_v13  ;;  %v1149_v49 = vmin.f32 %v7624_v26, 0.0 }
 0x274   :  { %6168 = vpow2.f32 %v1201_v0  ;;  %v1203_v30 = vmul.f32 1.442695, %v1148_v54  ;;  %v7635_v33 = vadd.f32 %v7517_v47, %v868_v6  ;;  %v7638_v17 = vadd.f32 %v7519_v16, %v868_v6 }
 0x275   :  { %v6159_v41 = vpop.eup %6158  ;;  %v1268_v56 = vmul.f32 1.6732632, %v5221_v42  ;;  %6170 = vpow2.f32 %v1199_v18  ;;  %v1205_v3 = vmul.f32 1.442695, %v1149_v49  ;;  %v7641_v40 = vadd.f32 %v7524_v58, %v868_v6 }
 0x276   :  { %v6161_v61 = vpop.eup %6160  ;;  %v7648_v57 = vsel %vm1296_vm3, %v7466_v53, %v1264_v52  ;;  %v5222_v47 = vadd.f32 -1.0, %v6159_v41  ;;  %6172 = vpow2.f32 %v1203_v30  ;;  %v1151_v16 = vmin.f32 %v7635_v33, 0.0 }
 0x277   :  { %v6163_v0 = vpop.eup %6162  ;;  %v1330_v42 = vsel %vm1298_vm5, %v7482_v5, %v1266_v60  ;;  %v5224_v13 = vadd.f32 -1.0, %v6161_v61  ;;  %v1150_v58 = vmin.f32 %v7638_v17, 0.0  ;;  %v7657_v6 = vadd.f32 %v7526_v7, %v7643_v10 }
 0x278   :  { %v6165_v54 = vpop.eup %6164  ;;  %v1269_v18 = vmul.f32 1.6732632, %v5222_v47  ;;  %v5223_v53 = vadd.f32 -1.0, %v6163_v0  ;;  %6174 = vpow2.f32 %v1205_v3  ;;  %v1209_v52 = vmul.f32 1.442695, %v1151_v16 }
 0x279   :  { %v1332_v49 = vsel %vm1300_vm6, %v7493_v35, %v1268_v56  ;;  %vm1301_vm7 = vcmp.gt.f32.partialorder %v7555_v21, 0.0  ;;  %v1271_v30 = vmul.f32 1.6732632, %v5224_v13  ;;  %v1152_v5 = vmin.f32 %v7641_v40, 0.0 }
 0x27a   :  { %v1333_v60 = vsel %vm1301_vm7, %v7555_v21, %v1269_v18  ;;  %vm1303_vm8 = vcmp.gt.f32.partialorder %v7560_v32, 0.0  ;;  %v5225_v7 = vadd.f32 -1.0, %v6165_v54  ;;  %vm1305_vm9 = vcmp.gt.f32.partialorder %v7595_v34, 0.0 }
 0x27b   :  { %v7667_v41 = vmul.f32 1.050701, %v1330_v42  ;;  %vm1307_vm10 = vcmp.gt.f32.partialorder %v7598_v8, 0.0  ;;  %vm1306_vm11 = vcmp.gt.f32.partialorder %v7606_v27, 0.0  ;;  %v1207_v3 = vmul.f32 1.442695, %v1150_v58 }
 0x27c   :  { %v7671_v56 = vmul.f32 1.050701, %v1332_v49  ;;  %v1270_v61 = vmul.f32 1.6732632, %v5223_v53  ;;  %vm1302_vm12 = vcmp.gt.f32.partialorder %v7563_v31, 0.0  ;;  %vm1308_vm13 = vcmp.gt.f32.partialorder %v7620_v48, 0.0 }
 0x27d   :  { %v6167_v35 = vpop.eup %6166  ;;  %6176 = vpow2.f32 %v1209_v52  ;;  %v1153_v21 = vmin.f32 %v7657_v6, 0.0  ;;  %v7676_v16 = vmul.f32 1.050701, %v1333_v60  ;;  %v1335_v0 = vsel %vm1303_vm8, %v7560_v32, %v1271_v30 }
 0x27e   :  { %v6169_v47 = vpop.eup %6168  ;;  %vm1304_vm14 = vcmp.gt.f32.partialorder %v7566_v12, 0.0  ;;  %v5226_v42 = vadd.f32 -1.0, %v6167_v35  ;;  %v1211_v13 = vmul.f32 1.442695, %v1152_v5  ;;  %v1272_v58 = vmul.f32 1.6732632, %v5225_v7 }
 0x27f   :  { %v5228_v54 = vadd.f32 -1.0, %v6169_v47  ;;  %v1213_v18 = vmul.f32 1.442695, %v1153_v21  ;;  %v7684_v53 = vadd.f32 %v7540_v23, %v7643_v10  ;;  %v6171_v52 = vpop.eup %6170  ;;  %6178 = vpow2.f32 %v1207_v3 }
 0x280   :  { %v1273_v49 = vmul.f32 1.6732632, %v5226_v42  ;;  %v7688_v60 = vadd.f32 %v7542_v28, %v7643_v10  ;;  %v5810_v32 = vpack.c.bf16 %v7615_v11, %v7544_v19  ;;  %v6173_v30 = vpop.eup %6172  ;;  %v5227_v5 = vadd.f32 -1.0, %v6171_v52 }
 0x281   :  { %v1275_v35 = vmul.f32 1.6732632, %v5228_v54  ;;  %6180 = vpow2.f32 %v1213_v18  ;;  %v1155_v7 = vmin.f32 %v7684_v53, 0.0  ;;  %v7693_v21 = vmul.f32 1.050701, %v1335_v0 }
 0x282   :  { %v1337_v23 = vsel %vm1305_vm9, %v7595_v34, %v1273_v49  ;;  %v5229_v3 = vadd.f32 -1.0, %v6173_v30  ;;  %v1154_v47 = vmin.f32 %v7688_v60, 0.0  ;;  %5811 = vmatprep.subr.bf16.mxu0 %v5810_v32  ;;  %v6175_v28 = vpop.eup %6174  ;;  %v1274_v11 = vmul.f32 1.6732632, %v5227_v5 }
 0x283   :  { %v1369_v42 = vmul.f32 1.050701, %v1337_v23  ;;  %v1339_v19 = vsel %vm1307_vm10, %v7598_v8, %v1275_v35  ;;  %6182 = vpow2.f32 %v1211_v13  ;;  %5813 = vmatpush1.bf16.msra.mxu0 %v5812_v45  ;;  %v1217_v18 = vmul.f32 1.442695, %v1155_v7 }
 0x284   :  { %v1371_v0 = vmul.f32 1.050701, %v1339_v19  ;;  %v1276_v54 = vmul.f32 1.6732632, %v5229_v3  ;;  %v5826_v34 = vpack.c.bf16 %v7617_v14, %v7610_v1  ;;  %v1338_v49 = vsel %vm1306_vm11, %v7606_v27, %v1274_v11 }
 0x285   :  { %v5820_v52 = vpack.c.bf16 %v1369_v42, %v7676_v16  ;;  %v1215_v32 = vmul.f32 1.442695, %v1154_v47  ;;  %v7713_v8 = vadd.f32 %v7557_v63, %v7643_v10  ;;  %v1334_v46 = vsel %vm1302_vm12, %v7563_v31, %v1270_v61 }
 0x286   :  { %v5836_v2 = vpack.c.bf16 %v1371_v0, %v7693_v21  ;;  %v1340_v45 = vsel %vm1308_vm13, %v7620_v48, %v1276_v54  ;;  %v5230_v1 = vadd.f32 -1.0, %v6175_v28  ;;  %5827 = vmatprep.subr.bf16.mxu1 %v5826_v34  ;;  %v1336_v27 = vsel %vm1304_vm14, %v7566_v12, %v1272_v58 }
 0x287   :  { %v6177_v14 = vpop.eup %6176  ;;  %v1370_v16 = vmul.f32 1.050701, %v1338_v49  ;;  %6184 = vpow2.f32 %v1217_v18  ;;  %5829 = vmatpush1.bf16.msra.mxu1 %v5828_v39  ;;  %v1358_v63 = vmul.f32 1.050701, %v7629_v62  ;;  %v1360_v31 = vmul.f32 1.050701, %v7648_v57 }
 0x288   :  { %v1372_v10 = vmul.f32 1.050701, %v1340_v45  ;;  %6186 = vpow2.f32 %v1215_v32  ;;  %v1366_v48 = vmul.f32 1.050701, %v1334_v46  ;;  %v1156_v61 = vmin.f32 %v7713_v8, 0.0 }
 0x289   :  { %v6179_v13 = vpop.eup %6178  ;;  %v1368_v30 = vmul.f32 1.050701, %v1336_v27  ;;  %v1277_v35 = vmul.f32 1.6732632, %v5230_v1  ;;  %v5814_v12 = vpack.c.bf16 %v7667_v41, %v1358_v63  ;;  %v5830_v58 = vpack.c.bf16 %v7671_v56, %v1360_v31  ;;  %v5241_v63 = vld [vmem:[%s10420_s1 + $0x98] sm:$0xff]  ;;  %v5242_v31 = vld [vmem:[%s10420_s1 + $0xa0] sm:$0xff] }
 0x28a   :  { %v1219_v7 = vmul.f32 1.442695, %v1156_v61  ;;  %v5818_v15 = vpack.c.bf16 %v1370_v16, %v1366_v48  ;;  %v5232_v38 = vadd.f32 -1.0, %v6177_v14  ;;  %vm1309_vm15 = vcmp.gt.f32.partialorder %v7624_v26, 0.0  ;;  %v5244_v48 = vld [vmem:[%s10420_s1 + $0xb0] sm:$0xff]  ;;  %v5245_v61 = vld [vmem:[%s10420_s1 + $0xb8] sm:$0xff] }
 0x28b   :  { %v6181_v5 = vpop.eup %6180  ;;  %5815 = vmatprep.subr.bf16.mxu0 %v5814_v12  ;;  %5831 = vmatprep.subr.bf16.mxu1 %v5830_v58  ;;  %v5834_v62 = vpack.c.bf16 %v1372_v10, %v1368_v30  ;;  %v5231_v21 = vadd.f32 -1.0, %v6179_v13  ;;  %v1341_v41 = vsel %vm1309_vm15, %v7624_v26, %v1277_v35  ;;  %vm1313_vm1 = vcmp.gt.f32.partialorder %v7657_v6, 0.0  ;;  %v5243_v10 = vld [vmem:[%s10420_s1 + $0xa8] sm:$0xff]  ;;  %v1392_v13 = vpop.permute.xlu1 %1391 }
 0x28c   :  { %v5234_v39 = vadd.f32 -1.0, %v6181_v5  ;;  %6188 = vpow2.f32 %v1219_v7  ;;  %5817 = vmatpush1.bf16.msra.mxu0 %v5816_v29  ;;  %5833 = vmatpush1.bf16.msra.mxu1 %v5832_v20  ;;  %v1279_v23 = vmul.f32 1.6732632, %v5232_v38  ;;  %v1373_v28 = vmul.f32 1.050701, %v1341_v41  ;;  %v1396_v5 = vpop.permute.xlu0 %1395 }
 0x28d   :  { %v6183_v57 = vpop.eup %6182  ;;  %5819 = vmatprep.subr.bf16.mxu0 %v5818_v15  ;;  %5835 = vmatprep.subr.bf16.mxu1 %v5834_v62  ;;  %v1278_v42 = vmul.f32 1.6732632, %v5231_v21  ;;  %vm1311_vm2 = vcmp.gt.f32.partialorder %v7635_v33, 0.0  ;;  %vm1310_vm3 = vcmp.gt.f32.partialorder %v7638_v17, 0.0  ;;  %vm1315_vm5 = vcmp.gt.f32.partialorder %v7684_v53, 0.0 }
 0x28e   :  { %v1281_v56 = vmul.f32 1.6732632, %v5234_v39  ;;  %v5233_v59 = vadd.f32 -1.0, %v6183_v57  ;;  %v1343_v20 = vsel %vm1311_vm2, %v7635_v33, %v1279_v23  ;;  %vm1314_vm6 = vcmp.gt.f32.partialorder %v7688_v60, 0.0 }
 0x28f   :  { %v1375_v34 = vmul.f32 1.050701, %v1343_v20  ;;  %vm1312_vm7 = vcmp.gt.f32.partialorder %v7641_v40, 0.0  ;;  %vm1316_vm8 = vcmp.gt.f32.partialorder %v7713_v8, 0.0  ;;  %v6606_v35 = vmov 3  }
 0x290   :  { %v1345_v3 = vsel %vm1313_vm1, %v7657_v6, %v1281_v56  ;;  %5821 = vmatpush1.bf16.msra.mxu0 %v5820_v52  ;;  %5837 = vmatpush1.bf16.msra.mxu1 %v5836_v2  ;;  %v1342_v6 = vsel %vm1310_vm3, %v7638_v17, %v1278_v42  ;;  %v1280_v0 = vmul.f32 1.6732632, %v5233_v59 }
 0x291   :  { %v6185_v47 = vpop.eup %6184  ;;  %v1377_v19 = vmul.f32 1.050701, %v1345_v3  ;;  %v1374_v32 = vmul.f32 1.050701, %v1342_v6  ;;  %6051 = vset.pattern.permute.xlu1 %v6606_v35  ;;  %6050 = vset.pattern.permute.xlu0 %v6606_v35 }
 0x292   :  { %v6187_v22 = vpop.eup %6186  ;;  %v5236_v29 = vadd.f32 -1.0, %v6185_v47  ;;  %v1344_v17 = vsel %vm1312_vm7, %v7641_v40, %v1280_v0  ;;  %v5239_v40 = vld [vmem:[%s10420_s1 + $0x88] sm:$0xff]  ;;  %1942 = vperm.xlu1 %6051, %v7398_v9   ;;  %1938 = vperm.xlu0 %6050, %v7392_v25  }
 0x293   :  { %v5824_v4 = vpack.c.bf16 %v1377_v19, %v1373_v28  ;;  %v5235_v43 = vadd.f32 -1.0, %v6187_v22  ;;  %v1376_v14 = vmul.f32 1.050701, %v1344_v17  ;;  %v1400_v19 = vpop.permute.xlu1 %1399 }
 0x294   :  { %v1283_v26 = vmul.f32 1.6732632, %v5236_v29 }
 0x295   :  { %v1282_v11 = vmul.f32 1.6732632, %v5235_v43 }
 0x296   :  { %v1347_v54 = vsel %vm1315_vm5, %v7684_v53, %v1283_v26  ;;  %v6189_v18 = vpop.eup %6188  ;;  %1946 = vperm.xlu1 %6051, %v7410_v37   ;;  %1950 = vperm.xlu0 %6050, %v7432_v36  }
 0x297   :  { %v1379_v52 = vmul.f32 1.050701, %v1347_v54  ;;  %v1346_v49 = vsel %vm1314_vm6, %v7688_v60, %v1282_v11  ;;  %v5237_v46 = vadd.f32 -1.0, %v6189_v18  ;;  %v5238_v60 = vld [vmem:[%s10420_s1 + $0x80] sm:$0xff]  ;;  %v1404_v17 = vpop.permute.xlu1 %1403 }
 0x298   :  { %v1378_v33 = vmul.f32 1.050701, %v1346_v49 }
 0x299   :  { %v5840_v2 = vpack.c.bf16 %v1379_v52, %v1375_v34  ;;  %v1284_v45 = vmul.f32 1.6732632, %v5237_v46 }
 0x29a   :  { %v5822_v1 = vpack.c.bf16 %v1378_v33, %v1374_v32  ;;  %1954 = vperm.xlu1 %6051, %v7416_v51   ;;  %1958 = vperm.xlu0 %6050, %v7455_v24  }
 0x29b   :  { %v1348_v53 = vsel %vm1316_vm8, %v7713_v8, %v1284_v45  ;;  %v5240_v8 = vld [vmem:[%s10420_s1 + $0x90] sm:$0xff] }
 0x29c   :  { %5823 = vmatprep.subr.bf16.mxu0 %v5822_v1  ;;  %v1380_v27 = vmul.f32 1.050701, %v1348_v53 }
 0x29d   :  { %5825 = vmatpush1.bf16.msra.mxu0 %v5824_v4 }
 0x29e   :  { %v5838_v16 = vpack.c.bf16 %v1380_v27, %v1376_v14  ;;  %1962 = vperm.xlu1 %6051, %v7438_v44   ;;  %1966 = vperm.xlu0 %6050, %v7473_v55  }
 0x2a0   :  { %5246 = vmatmul.mubr.msk.f32.vlgmr.msra.gmra.mrb[32].mxu0 %vm874_vm4, %v5238_v60  ;;  %5839 = vmatprep.subr.bf16.mxu1 %v5838_v16 }
 0x2a1   :  { %1516 = vmatprep.mubr.f32.mxu0 %v6603_v50  ;;  %5841 = vmatpush1.bf16.msra.mxu1 %v5840_v2 }
 0x2a4   :  { %5247 = vmatmul.mubr.msk.f32.gmra.mrb[34].mxu0 %vm874_vm4, %v5239_v40  ;;  %5254 = vmatmul.mubr.msk.f32.vlgmr.msra.gmra.mrb[32].mxu1 %vm874_vm4, %v5238_v60 }
 0x2a5   :  { %1522 = vmatprep.mubr.f32.mxu0 %v6603_v50  ;;  %1629 = vmatprep.mubr.f32.mxu1 %v6603_v50 }
 0x2a8   :  { %5248 = vmatmul.mubr.msk.f32.gmra.mrb[36].mxu0 %vm874_vm4, %v5240_v8  ;;  %5255 = vmatmul.mubr.msk.f32.gmra.mrb[34].mxu1 %vm874_vm4, %v5239_v40 }
 0x2a9   :  { %1528 = vmatprep.mubr.f32.mxu0 %v6603_v50  ;;  %1635 = vmatprep.mubr.f32.mxu1 %v6603_v50 }
 0x2ac   :  { %5249 = vmatmul.mubr.msk.f32.gmra.mrb[38].mxu0 %vm874_vm4, %v5241_v63  ;;  %5256 = vmatmul.mubr.msk.f32.gmra.mrb[36].mxu1 %vm874_vm4, %v5240_v8 }
 0x2ad   :  { %1534 = vmatprep.mubr.f32.mxu0 %v6603_v50  ;;  %1641 = vmatprep.mubr.f32.mxu1 %v6603_v50 }
 0x2b0   :  { %5250 = vmatmul.mubr.msk.f32.gmra.mrb[40].mxu0 %vm874_vm4, %v5242_v31  ;;  %5257 = vmatmul.mubr.msk.f32.gmra.mrb[38].mxu1 %vm874_vm4, %v5241_v63 }
 0x2b1   :  { %1540 = vmatprep.mubr.f32.mxu0 %v6603_v50  ;;  %1647 = vmatprep.mubr.f32.mxu1 %v6603_v50 }
 0x2b4   :  { %5251 = vmatmul.mubr.msk.f32.gmra.mrb[42].mxu0 %vm874_vm4, %v5243_v10  ;;  %5258 = vmatmul.mubr.msk.f32.gmra.mrb[40].mxu1 %vm874_vm4, %v5242_v31 }
 0x2b5   :  { %1546 = vmatprep.mubr.f32.mxu0 %v6603_v50  ;;  %1653 = vmatprep.mubr.f32.mxu1 %v6603_v50 }
 0x2b8   :  { %5252 = vmatmul.mubr.msk.f32.gmra.mrb[44].mxu0 %vm874_vm4, %v5244_v48  ;;  %5259 = vmatmul.mubr.msk.f32.gmra.mrb[42].mxu1 %vm874_vm4, %v5243_v10 }
 0x2b9   :  { %1552 = vmatprep.mubr.f32.mxu0 %v6603_v50  ;;  %1659 = vmatprep.mubr.f32.mxu1 %v6603_v50 }
 0x2bc   :  { %5253 = vmatmul.mubr.msk.f32.gmra.mrb[46].mxu0 %vm874_vm4, %v5245_v61  ;;  %5260 = vmatmul.mubr.msk.f32.gmra.mrb[44].mxu1 %vm874_vm4, %v5244_v48 }
 0x2bd   :  { %2057 = vmatprep.mubr.f32.mxu0 %v6603_v50  ;;  %1665 = vmatprep.mubr.f32.mxu1 %v6603_v50 }
 0x2c0   :  { %5261 = vmatmul.mubr.msk.f32.gmra.mrb[46].mxu1 %vm874_vm4, %v5245_v61 }
 0x2c1   :  { %2170 = vmatprep.mubr.f32.mxu1 %v6603_v50 }
 0x373   :  { %v1512_v30 = vpop.f32.mrb[32].mxu0 }
 0x374   :  { %v7811_v12 = vadd.f32 %v1512_v30, %v1392_v13  ;;  %v1514_v58 = vpop.f32.mrb[33].mxu0 }
 0x375   :  { %v7815_v7 = vadd.f32 %v1514_v58, %v1392_v13 }
 0x376   :  { %v1672_v15 = vmin.f32 %v7811_v12, 0.0  ;;  %vm1832_vm9 = vcmp.gt.f32.partialorder %v7811_v12, 0.0 }
 0x377   :  { %v1673_v38 = vmin.f32 %v7815_v7, 0.0  ;;  %v1518_v39 = vpop.f32.mrb[34].mxu0  ;;  %v1625_v57 = vpop.f32.mrb[32].mxu1  ;;  %vm1833_vm10 = vcmp.gt.f32.partialorder %v7815_v7, 0.0 }
 0x378   :  { %v1704_v62 = vmul.f32 1.442695, %v1672_v15  ;;  %v7819_v21 = vadd.f32 %v1518_v39, %v1396_v5  ;;  %v1520_v41 = vpop.f32.mrb[35].mxu0  ;;  %v7823_v9 = vadd.f32 %v1625_v57, %v1392_v13  ;;  %v1627_v56 = vpop.f32.mrb[33].mxu1 }
 0x379   :  { %v1706_v25 = vmul.f32 1.442695, %v1673_v38  ;;  %v7825_v23 = vadd.f32 %v1520_v41, %v1396_v5  ;;  %v7827_v3 = vadd.f32 %v1627_v56, %v1392_v13 }
 0x37a   :  { %6190 = vpow2.f32 %v1704_v62  ;;  %v1676_v47 = vmin.f32 %v7819_v21, 0.0  ;;  %v1674_v28 = vmin.f32 %v7823_v9, 0.0  ;;  %vm1836_vm11 = vcmp.gt.f32.partialorder %v7819_v21, 0.0 }
 0x37b   :  { %v1524_v42 = vpop.f32.mrb[36].mxu0  ;;  %v1675_v22 = vmin.f32 %v7827_v3, 0.0  ;;  %v1631_v59 = vpop.f32.mrb[34].mxu1  ;;  %v1677_v36 = vmin.f32 %v7825_v23, 0.0  ;;  %6192 = vpow2.f32 %v1706_v25  ;;  %vm1834_vm12 = vcmp.gt.f32.partialorder %v7823_v9, 0.0 }
 0x37c   :  { %v1712_v37 = vmul.f32 1.442695, %v1676_v47  ;;  %v1708_v29 = vmul.f32 1.442695, %v1674_v28  ;;  %v7835_v4 = vadd.f32 %v1631_v59, %v1396_v5  ;;  %v1633_v43 = vpop.f32.mrb[35].mxu1  ;;  %v7837_v20 = vadd.f32 %v1524_v42, %v1400_v19  ;;  %v1526_v26 = vpop.f32.mrb[37].mxu0 }
 0x37d   :  { %v1710_v6 = vmul.f32 1.442695, %v1675_v22  ;;  %v7839_v11 = vadd.f32 %v1633_v43, %v1396_v5  ;;  %v1714_v18 = vmul.f32 1.442695, %v1677_v36  ;;  %v7844_v52 = vadd.f32 %v1526_v26, %v1400_v19 }
 0x37e   :  { %6194 = vpow2.f32 %v1712_v37  ;;  %v1678_v0 = vmin.f32 %v7835_v4, 0.0  ;;  %v1680_v54 = vmin.f32 %v7837_v20, 0.0  ;;  %vm1835_vm13 = vcmp.gt.f32.partialorder %v7827_v3, 0.0 }
 0x37f   :  { %6196 = vpow2.f32 %v1708_v29  ;;  %v1530_v51 = vpop.f32.mrb[38].mxu0  ;;  %v1679_v24 = vmin.f32 %v7839_v11, 0.0  ;;  %v1637_v34 = vpop.f32.mrb[36].mxu1  ;;  %v1681_v44 = vmin.f32 %v7844_v52, 0.0  ;;  %vm1838_vm14 = vcmp.gt.f32.partialorder %v7835_v4, 0.0 }
 0x380   :  { %v1532_v49 = vpop.f32.mrb[39].mxu0  ;;  %6198 = vpow2.f32 %v1710_v6  ;;  %v1716_v32 = vmul.f32 1.442695, %v1678_v0  ;;  %v1720_v33 = vmul.f32 1.442695, %v1680_v54  ;;  %v7848_v46 = vadd.f32 %v1637_v34, %v1400_v19  ;;  %v1639_v2 = vpop.f32.mrb[37].mxu1 }
 0x381   :  { %v7851_v1 = vadd.f32 %v1530_v51, %v1404_v17  ;;  %v1718_v27 = vmul.f32 1.442695, %v1679_v24  ;;  %v7856_v55 = vadd.f32 %v1639_v2, %v1400_v19  ;;  %v1722_v58 = vmul.f32 1.442695, %v1681_v44 }
 0x382   :  { %6200 = vpow2.f32 %v1716_v32  ;;  %v1682_v45 = vmin.f32 %v7848_v46, 0.0  ;;  %v7866_v5 = vadd.f32 %v1532_v49, %v1404_v17  ;;  %vm1837_vm15 = vcmp.gt.f32.partialorder %v7825_v23, 0.0 }
 0x383   :  { %v7853_v53 = vpop.f32.mrb[40].mxu0  ;;  %6202 = vpow2.f32 %v1714_v18  ;;  %v1643_v60 = vpop.f32.mrb[38].mxu1  ;;  %v1684_v63 = vmin.f32 %v7851_v1, 0.0  ;;  %v1683_v57 = vmin.f32 %v7856_v55, 0.0  ;;  %vm1839_vm1 = vcmp.gt.f32.partialorder %v7839_v11, 0.0 }
 0x384   :  { %v6191_v14 = vpop.eup %6190  ;;  %v7858_v16 = vpop.f32.mrb[41].mxu0  ;;  %6204 = vpow2.f32 %v1720_v33  ;;  %v1724_v8 = vmul.f32 1.442695, %v1682_v45  ;;  %v7861_v13 = vadd.f32 %v1643_v60, %v1404_v17  ;;  %v1685_v36 = vmin.f32 %v7866_v5, 0.0 }
 0x385   :  { %v5262_v40 = vadd.f32 -1.0, %v6191_v14  ;;  %v1645_v31 = vpop.f32.mrb[39].mxu1  ;;  %v6193_v10 = vpop.eup %6192  ;;  %v1728_v61 = vmul.f32 1.442695, %v1684_v63  ;;  %vm1840_vm2 = vcmp.gt.f32.partialorder %v7837_v20, 0.0  ;;  %vm1842_vm3 = vcmp.gt.f32.partialorder %v7848_v46, 0.0 }
 0x386   :  { %6206 = vpow2.f32 %v1724_v8  ;;  %v1686_v41 = vmin.f32 %v7861_v13, 0.0  ;;  %v7877_v28 = vadd.f32 %v1645_v31, %v1404_v17  ;;  %v5263_v19 = vadd.f32 -1.0, %v6193_v10 }
 0x387   :  { %v1800_v48 = vmul.f32 1.6732632, %v5262_v40  ;;  %v7863_v30 = vpop.f32.mrb[42].mxu0  ;;  %6208 = vpow2.f32 %v1718_v27  ;;  %v7868_v15 = vpop.f32.mrb[40].mxu1  ;;  %v1730_v45 = vmul.f32 1.442695, %v1685_v36 }
 0x388   :  { %v6195_v35 = vpop.eup %6194  ;;  %v7870_v38 = vpop.f32.mrb[43].mxu0  ;;  %6210 = vpow2.f32 %v1728_v61  ;;  %v1732_v59 = vmul.f32 1.442695, %v1686_v41  ;;  %v1687_v24 = vmin.f32 %v7877_v28, 0.0  ;;  %v1801_v32 = vmul.f32 1.6732632, %v5263_v19 }
 0x389   :  { %v6197_v39 = vpop.eup %6196  ;;  %v5266_v62 = vadd.f32 -1.0, %v6195_v35  ;;  %v7874_v25 = vpop.f32.mrb[41].mxu1  ;;  %v1864_v56 = vsel %vm1832_vm9, %v7811_v12, %v1800_v48  ;;  %6212 = vpow2.f32 %v1722_v58  ;;  %v1726_v12 = vmul.f32 1.442695, %v1683_v57 }
 0x38a   :  { %v5264_v47 = vadd.f32 -1.0, %v6197_v39  ;;  %v6199_v42 = vpop.eup %6198  ;;  %v7882_v43 = vmul.f32 1.050701, %v1864_v56  ;;  %6214 = vpow2.f32 %v1732_v59  ;;  %v1734_v31 = vmul.f32 1.442695, %v1687_v24  ;;  %v1408_v19 = vpop.permute.xlu0 %1407 }
 0x38b   :  { %v1804_v22 = vmul.f32 1.6732632, %v5266_v62  ;;  %v7885_v6 = vpop.f32.mrb[42].mxu1  ;;  %v5265_v54 = vadd.f32 -1.0, %v6199_v42  ;;  %6216 = vpow2.f32 %v1726_v12  ;;  %v1865_v58 = vsel %vm1833_vm10, %v7815_v7, %v1801_v32 }
 0x38c   :  { %v1802_v37 = vmul.f32 1.6732632, %v5264_v47  ;;  %v6201_v29 = vpop.eup %6200  ;;  %v7890_v34 = vpop.f32.mrb[43].mxu1  ;;  %6218 = vpow2.f32 %v1730_v45  ;;  %vm1844_vm5 = vcmp.gt.f32.partialorder %v7851_v1, 0.0  ;;  %vm1846_vm6 = vcmp.gt.f32.partialorder %v7861_v13, 0.0 }
 0x38d   :  { %v1868_v26 = vsel %vm1836_vm11, %v7819_v21, %v1804_v22  ;;  %v6203_v0 = vpop.eup %6202  ;;  %v5268_v18 = vadd.f32 -1.0, %v6201_v29  ;;  %v7894_v21 = vpop.f32.mrb[44].mxu0  ;;  %v1803_v63 = vmul.f32 1.6732632, %v5265_v54  ;;  %v7926_v22 = vmul.f32 1.050701, %v1865_v58 }
 0x38e   :  { %v7887_v51 = vmul.f32 1.050701, %v1868_v26  ;;  %v6205_v49 = vpop.eup %6204  ;;  %v1866_v33 = vsel %vm1834_vm12, %v7823_v9, %v1802_v37  ;;  %v7901_v27 = vpop.f32.mrb[45].mxu0  ;;  %v5267_v60 = vadd.f32 -1.0, %v6203_v0  ;;  %6220 = vpow2.f32 %v1734_v31 }
 0x38f   :  { %v1806_v17 = vmul.f32 1.6732632, %v5268_v18  ;;  %v7899_v14 = vpop.f32.mrb[44].mxu1  ;;  %v5270_v40 = vadd.f32 -1.0, %v6205_v49  ;;  %v7908_v48 = vpop.f32.mrb[46].mxu0  ;;  %v1867_v59 = vsel %vm1835_vm13, %v7827_v3, %v1803_v63  ;;  %v7937_v26 = vadd.f32 %v7853_v53, %v1408_v19 }
 0x390   :  { %v5844_v2 = vpack.c.bf16 %v7887_v51, %v7882_v43  ;;  %v6207_v44 = vpop.eup %6206  ;;  %v7906_v10 = vpop.f32.mrb[45].mxu1  ;;  %v7910_v35 = vmul.f32 1.050701, %v1866_v33  ;;  %v1805_v56 = vmul.f32 1.6732632, %v5267_v60  ;;  %v7942_v54 = vadd.f32 %v7868_v15, %v1408_v19 }
 0x391   :  { %v6209_v8 = vpop.eup %6208  ;;  %v1870_v9 = vsel %vm1838_vm14, %v7835_v4, %v1806_v17  ;;  %v1808_v62 = vmul.f32 1.6732632, %v5270_v40  ;;  %v5272_v4 = vadd.f32 -1.0, %v6207_v44  ;;  %v7924_v7 = vpop.f32.mrb[47].mxu0  ;;  %v7945_v18 = vadd.f32 %v7858_v16, %v1408_v19 }
 0x392   :  { %v6211_v61 = vpop.eup %6210  ;;  %v7915_v39 = vmul.f32 1.050701, %v1870_v9  ;;  %v5269_v47 = vadd.f32 -1.0, %v6209_v8  ;;  %v7948_v24 = vadd.f32 %v7874_v25, %v1408_v19  ;;  %v1688_v32 = vmin.f32 %v7937_v26, 0.0  ;;  %v1412_v9 = vpop.permute.xlu1 %1411 }
 0x393   :  { %v5274_v57 = vadd.f32 -1.0, %v6211_v61  ;;  %v7922_v42 = vpop.f32.mrb[46].mxu1  ;;  %v6213_v37 = vpop.eup %6212  ;;  %v1872_v36 = vsel %vm1840_vm2, %v7837_v20, %v1808_v62  ;;  %v1810_v0 = vmul.f32 1.6732632, %v5272_v4  ;;  %v1869_v20 = vsel %vm1837_vm15, %v7825_v23, %v1805_v56 }
 0x394   :  { %v5860_v41 = vpack.c.bf16 %v7915_v39, %v7910_v35  ;;  %v7939_v12 = vpop.f32.mrb[47].mxu1  ;;  %v6215_v3 = vpop.eup %6214  ;;  %v1807_v49 = vmul.f32 1.6732632, %v5269_v47  ;;  %v7957_v15 = vmul.f32 1.050701, %v1872_v36  ;;  %v1690_v25 = vmin.f32 %v7942_v54, 0.0 }
 0x395   :  { %v1812_v29 = vmul.f32 1.6732632, %v5274_v57  ;;  %v5276_v16 = vadd.f32 -1.0, %v6215_v3  ;;  %v5271_v17 = vadd.f32 -1.0, %v6213_v37  ;;  %vm1841_vm7 = vcmp.gt.f32.partialorder %v7844_v52, 0.0  ;;  %v6217_v60 = vpop.eup %6216  ;;  %v1416_v3 = vpop.permute.xlu0 %1415 }
 0x396   :  { %v1736_v45 = vmul.f32 1.442695, %v1688_v32  ;;  %v1689_v23 = vmin.f32 %v7945_v18, 0.0  ;;  %v1691_v44 = vmin.f32 %v7948_v24, 0.0  ;;  %v1740_v63 = vmul.f32 1.442695, %v1690_v25  ;;  %v6219_v62 = vpop.eup %6218 }
 0x397   :  { %v1876_v53 = vsel %vm1844_vm5, %v7851_v1, %v1812_v29  ;;  %v1874_v1 = vsel %vm1842_vm3, %v7848_v46, %v1810_v0  ;;  %v1814_v8 = vmul.f32 1.6732632, %v5276_v16  ;;  %v1871_v31 = vsel %vm1839_vm1, %v7839_v11, %v1807_v49 }
 0x398   :  { %v7959_v33 = vmul.f32 1.050701, %v1876_v53  ;;  %6222 = vpow2.f32 %v1736_v45  ;;  %v1738_v61 = vmul.f32 1.442695, %v1689_v23  ;;  %v1742_v58 = vmul.f32 1.442695, %v1691_v44  ;;  %v6221_v19 = vpop.eup %6220 }
 0x399   :  { %v1878_v4 = vsel %vm1846_vm6, %v7861_v13, %v1814_v8  ;;  %6224 = vpow2.f32 %v1740_v63  ;;  %v7977_v46 = vadd.f32 %v7863_v30, %v1412_v9  ;;  %v7980_v57 = vadd.f32 %v7885_v6, %v1412_v9 }
 0x39a   :  { %v5848_v40 = vpack.c.bf16 %v7959_v33, %v7957_v15  ;;  %v7982_v56 = vmul.f32 1.050701, %v1874_v1  ;;  %vm1843_vm8 = vcmp.gt.f32.partialorder %v7856_v55, 0.0  ;;  %v7985_v11 = vmul.f32 1.050701, %v1878_v4 }
 0x39b   :  { %6226 = vpow2.f32 %v1738_v61  ;;  %v7988_v47 = vadd.f32 %v7870_v38, %v1412_v9  ;;  %v1809_v37 = vmul.f32 1.6732632, %v5271_v17  ;;  %v5273_v13 = vadd.f32 -1.0, %v6217_v60 }
 0x39c   :  { %vm1845_vm9 = vcmp.gt.f32.partialorder %v7866_v5, 0.0  ;;  %6228 = vpow2.f32 %v1742_v58  ;;  %v1692_v30 = vmin.f32 %v7977_v46, 0.0  ;;  %v7992_v6 = vmul.f32 1.050701, %v1867_v59  ;;  %v8025_v58 = vpop.permute.xlu1 %1419 }
 0x39d   :  { %v5864_v36 = vpack.c.bf16 %v7985_v11, %v7982_v56  ;;  %v5275_v29 = vadd.f32 -1.0, %v6219_v62  ;;  %v1694_v0 = vmin.f32 %v7980_v57, 0.0  ;;  %v7997_v49 = vmul.f32 1.050701, %v1869_v20 }
 0x39e   :  { %v7999_v38 = vmul.f32 1.050701, %v1871_v31  ;;  %v1744_v53 = vmul.f32 1.442695, %v1692_v30  ;;  %v8002_v32 = vadd.f32 %v7890_v34, %v1412_v9  ;;  %v5277_v16 = vadd.f32 -1.0, %v6221_v19 }
 0x39f   :  { %v1748_v25 = vmul.f32 1.442695, %v1694_v0  ;;  %v1693_v59 = vmin.f32 %v7988_v47, 0.0  ;;  %v8006_v17 = vadd.f32 %v7894_v21, %v1416_v3  ;;  %v8011_v45 = vsel %vm1841_vm7, %v7844_v52, %v1809_v37 }
 0x3a0   :  { %v1811_v20 = vmul.f32 1.6732632, %v5273_v13  ;;  %6230 = vpow2.f32 %v1744_v53  ;;  %v1695_v23 = vmin.f32 %v8002_v32, 0.0  ;;  %v1813_v44 = vmul.f32 1.6732632, %v5275_v29 }
 0x3a1   :  { %6232 = vpow2.f32 %v1748_v25  ;;  %v1746_v34 = vmul.f32 1.442695, %v1693_v59  ;;  %v1696_v60 = vmin.f32 %v8006_v17, 0.0  ;;  %vm1847_vm10 = vcmp.gt.f32.partialorder %v7877_v28, 0.0 }
 0x3a2   :  { %v1750_v1 = vmul.f32 1.442695, %v1695_v23  ;;  %v8017_v21 = vadd.f32 %v7899_v14, %v1416_v3  ;;  %v8020_v8 = vadd.f32 %v7901_v27, %v1416_v3  ;;  %v6223_v52 = vpop.eup %6222  ;;  %v1815_v63 = vmul.f32 1.6732632, %v5277_v16 }
 0x3a3   :  { %6234 = vpow2.f32 %v1746_v34  ;;  %v1752_v9 = vmul.f32 1.442695, %v1696_v60  ;;  %v8023_v31 = vadd.f32 %v7906_v10, %v1416_v3  ;;  %v6225_v61 = vpop.eup %6224  ;;  %v8030_v62 = vsel %vm1843_vm8, %v7856_v55, %v1811_v20 }
 0x3a4   :  { %v5278_v14 = vadd.f32 -1.0, %v6223_v52  ;;  %6236 = vpow2.f32 %v1750_v1  ;;  %v1698_v27 = vmin.f32 %v8017_v21, 0.0  ;;  %v1877_v19 = vsel %vm1845_vm9, %v7866_v5, %v1813_v44 }
 0x3a5   :  { %v6227_v4 = vpop.eup %6226  ;;  %v5280_v37 = vadd.f32 -1.0, %v6225_v61  ;;  %v1697_v10 = vmin.f32 %v8020_v8, 0.0  ;;  %v8039_v13 = vadd.f32 %v7908_v48, %v8025_v58  ;;  %6238 = vpow2.f32 %v1752_v9 }
 0x3a6   :  { %v6229_v30 = vpop.eup %6228  ;;  %v1816_v29 = vmul.f32 1.6732632, %v5278_v14  ;;  %v5279_v55 = vadd.f32 -1.0, %v6227_v4  ;;  %v1756_v0 = vmul.f32 1.442695, %v1698_v27  ;;  %v1879_v3 = vsel %vm1847_vm10, %v7877_v28, %v1815_v63 }
 0x3a7   :  { %vm1848_vm11 = vcmp.gt.f32.partialorder %v7937_v26, 0.0  ;;  %v1818_v53 = vmul.f32 1.6732632, %v5280_v37  ;;  %v1699_v5 = vmin.f32 %v8023_v31, 0.0  ;;  %vm1850_vm12 = vcmp.gt.f32.partialorder %v7942_v54, 0.0 }
 0x3a8   :  { %v1880_v16 = vsel %vm1848_vm11, %v7937_v26, %v1816_v29  ;;  %v5281_v48 = vadd.f32 -1.0, %v6229_v30  ;;  %vm1852_vm13 = vcmp.gt.f32.partialorder %v7977_v46, 0.0  ;;  %v8049_v25 = vmul.f32 1.050701, %v1877_v19 }
 0x3a9   :  { %vm1854_vm14 = vcmp.gt.f32.partialorder %v7980_v57, 0.0  ;;  %vm1853_vm15 = vcmp.gt.f32.partialorder %v7988_v47, 0.0  ;;  %v1754_v59 = vmul.f32 1.442695, %v1697_v10  ;;  %v8053_v20 = vmul.f32 1.050701, %v1879_v3 }
 0x3aa   :  { %v6231_v28 = vpop.eup %6230  ;;  %v1817_v23 = vmul.f32 1.6732632, %v5279_v55  ;;  %vm1849_vm1 = vcmp.gt.f32.partialorder %v7945_v18, 0.0  ;;  %vm1855_vm2 = vcmp.gt.f32.partialorder %v8002_v32, 0.0  ;;  %6240 = vpow2.f32 %v1756_v0 }
 0x3ab   :  { %v1700_v26 = vmin.f32 %v8039_v13, 0.0  ;;  %v6233_v44 = vpop.eup %6232  ;;  %v8058_v34 = vmul.f32 1.050701, %v1880_v16  ;;  %v1882_v60 = vsel %vm1850_vm12, %v7942_v54, %v1818_v53  ;;  %vm1851_vm3 = vcmp.gt.f32.partialorder %v7948_v24, 0.0 }
 0x3ac   :  { %v5282_v1 = vadd.f32 -1.0, %v6231_v28  ;;  %v1758_v52 = vmul.f32 1.442695, %v1699_v5  ;;  %v1819_v63 = vmul.f32 1.6732632, %v5281_v48  ;;  %v5284_v9 = vadd.f32 -1.0, %v6233_v44 }
 0x3ad   :  { %v1760_v61 = vmul.f32 1.442695, %v1700_v26  ;;  %v8066_v14 = vadd.f32 %v7922_v42, %v8025_v58  ;;  %v6235_v27 = vpop.eup %6234  ;;  %6242 = vpow2.f32 %v1754_v59  ;;  %v8070_v19 = vadd.f32 %v7924_v7, %v8025_v58 }
 0x3ae   :  { %v1820_v4 = vmul.f32 1.6732632, %v5282_v1  ;;  %v5842_v54 = vpack.c.bf16 %v7997_v49, %v7926_v22  ;;  %v6237_v37 = vpop.eup %6236  ;;  %v1822_v10 = vmul.f32 1.6732632, %v5284_v9  ;;  %v5283_v30 = vadd.f32 -1.0, %v6235_v27 }
 0x3af   :  { %6244 = vpow2.f32 %v1760_v61  ;;  %v1702_v29 = vmin.f32 %v8066_v14, 0.0  ;;  %v8075_v55 = vmul.f32 1.050701, %v1882_v60  ;;  %v5285_v0 = vadd.f32 -1.0, %v6237_v37  ;;  %v6239_v7 = vpop.eup %6238 }
 0x3b0   :  { %v1884_v42 = vsel %vm1852_vm13, %v7977_v46, %v1820_v4  ;;  %v1701_v3 = vmin.f32 %v8070_v19, 0.0  ;;  %5843 = vmatprep.subr.bf16.mxu0 %v5842_v54  ;;  %v1886_v22 = vsel %vm1854_vm14, %v7980_v57, %v1822_v10  ;;  %v1821_v49 = vmul.f32 1.6732632, %v5283_v30 }
 0x3b1   :  { %v1916_v53 = vmul.f32 1.050701, %v1884_v42  ;;  %6246 = vpow2.f32 %v1758_v52  ;;  %5845 = vmatpush1.bf16.msra.mxu0 %v5844_v2  ;;  %v1918_v5 = vmul.f32 1.050701, %v1886_v22  ;;  %v1823_v16 = vmul.f32 1.6732632, %v5285_v0 }
 0x3b2   :  { %v1764_v48 = vmul.f32 1.442695, %v1702_v29  ;;  %v5858_v46 = vpack.c.bf16 %v7999_v38, %v7992_v6  ;;  %v1885_v28 = vsel %vm1853_vm15, %v7988_v47, %v1821_v49  ;;  %v1762_v26 = vmul.f32 1.442695, %v1701_v3 }
 0x3b3   :  { %v5852_v59 = vpack.c.bf16 %v1916_v53, %v8058_v34  ;;  %v8095_v57 = vadd.f32 %v7939_v12, %v8025_v58  ;;  %v1881_v43 = vsel %vm1849_vm1, %v7945_v18, %v1817_v23  ;;  %v5868_v51 = vpack.c.bf16 %v1918_v5, %v8075_v55 }
 0x3b4   :  { %v1887_v2 = vsel %vm1855_vm2, %v8002_v32, %v1823_v16  ;;  %v5286_v6 = vadd.f32 -1.0, %v6239_v7  ;;  %5859 = vmatprep.subr.bf16.mxu1 %v5858_v46  ;;  %v6241_v38 = vpop.eup %6240  ;;  %v1883_v47 = vsel %vm1851_vm3, %v7948_v24, %v1819_v63  ;;  %v1917_v44 = vmul.f32 1.050701, %v1885_v28 }
 0x3b5   :  { %6248 = vpow2.f32 %v1764_v48  ;;  %5861 = vmatpush1.bf16.msra.mxu1 %v5860_v41  ;;  %v1905_v12 = vmul.f32 1.050701, %v8011_v45  ;;  %v1907_v18 = vmul.f32 1.050701, %v8030_v62  ;;  %v1919_v58 = vmul.f32 1.050701, %v1887_v2 }
 0x3b6   :  { %6250 = vpow2.f32 %v1762_v26  ;;  %v1913_v32 = vmul.f32 1.050701, %v1881_v43  ;;  %v1703_v23 = vmin.f32 %v8095_v57, 0.0  ;;  %v1915_v60 = vmul.f32 1.050701, %v1883_v47  ;;  %v5296_v26 = vld [vmem:[%s10420_s1 + $0xd0] sm:$0xff] }
 0x3b7   :  { %v6243_v34 = vpop.eup %6242  ;;  %v1824_v1 = vmul.f32 1.6732632, %v5286_v6  ;;  %v5846_v24 = vpack.c.bf16 %v8049_v25, %v1905_v12  ;;  %v5862_v52 = vpack.c.bf16 %v8053_v20, %v1907_v18  ;;  %v5288_v39 = vadd.f32 -1.0, %v6241_v38  ;;  %v5298_v43 = vld [vmem:[%s10420_s1 + $0xe0] sm:$0xff]  ;;  %v5300_v2 = vld [vmem:[%s10420_s1 + $0xf0] sm:$0xff]  ;;  %v5301_v6 = vld [vmem:[%s10420_s1 + $0xf8] sm:$0xff]  ;;  %v1939_v38 = vpop.permute.xlu0 %1938 }
 0x3b8   :  { %v1766_v9 = vmul.f32 1.442695, %v1703_v23  ;;  %v5850_v35 = vpack.c.bf16 %v1917_v44, %v1913_v32  ;;  %v5866_v45 = vpack.c.bf16 %v1919_v58, %v1915_v60  ;;  %vm1856_vm5 = vcmp.gt.f32.partialorder %v8006_v17, 0.0  ;;  %v1943_v12 = vpop.permute.xlu1 %1942  ;;  %v8198_v32 = vld [vmem:[%s10421_s2] sm:$0xff]  ;;  %v8204_v23 = vld [vmem:[%s10421_s2 + $0x8] sm:$0xff] }
 0x3b9   :  { %v6245_v63 = vpop.eup %6244  ;;  %5847 = vmatprep.subr.bf16.mxu0 %v5846_v24  ;;  %5863 = vmatprep.subr.bf16.mxu1 %v5862_v52  ;;  %v5287_v61 = vadd.f32 -1.0, %v6243_v34  ;;  %v1888_v25 = vsel %vm1856_vm5, %v8006_v17, %v1824_v1  ;;  %vm1860_vm6 = vcmp.gt.f32.partialorder %v8039_v13, 0.0  ;;  %v1826_v27 = vmul.f32 1.6732632, %v5288_v39  ;;  %v8216_v39 = vld [vmem:[%s10421_s2 + $0x10] sm:$0xff] }
 0x3ba   :  { %v5290_v41 = vadd.f32 -1.0, %v6245_v63  ;;  %6252 = vpow2.f32 %v1766_v9  ;;  %5849 = vmatpush1.bf16.msra.mxu0 %v5848_v40  ;;  %5865 = vmatpush1.bf16.msra.mxu1 %v5864_v36  ;;  %v1920_v37 = vmul.f32 1.050701, %v1888_v25  ;;  %vm1858_vm7 = vcmp.gt.f32.partialorder %v8017_v21, 0.0 }
 0x3bb   :  { %v6247_v62 = vpop.eup %6246  ;;  %5851 = vmatprep.subr.bf16.mxu0 %v5850_v35  ;;  %5867 = vmatprep.subr.bf16.mxu1 %v5866_v45  ;;  %v1825_v10 = vmul.f32 1.6732632, %v5287_v61  ;;  %v1890_v36 = vsel %vm1858_vm7, %v8017_v21, %v1826_v27  ;;  %vm1857_vm8 = vcmp.gt.f32.partialorder %v8020_v8, 0.0  ;;  %vm1862_vm9 = vcmp.gt.f32.partialorder %v8066_v14, 0.0 }
 0x3bc   :  { %v1828_v20 = vmul.f32 1.6732632, %v5290_v41  ;;  %v5289_v33 = vadd.f32 -1.0, %v6247_v62  ;;  %vm1861_vm10 = vcmp.gt.f32.partialorder %v8070_v19, 0.0  ;;  %v1922_v3 = vmul.f32 1.050701, %v1890_v36 }
 0x3bd   :  { %vm1859_vm11 = vcmp.gt.f32.partialorder %v8023_v31, 0.0  ;;  %vm1863_vm12 = vcmp.gt.f32.partialorder %v8095_v57, 0.0  ;;  %v6607_v44 = vmov 4   ;;  %v8222_v41 = vld [vmem:[%s10421_s2 + $0x20] sm:$0xff] }
 0x3be   :  { %v1892_v4 = vsel %vm1860_vm6, %v8039_v13, %v1828_v20  ;;  %5853 = vmatpush1.bf16.msra.mxu0 %v5852_v59  ;;  %5869 = vmatpush1.bf16.msra.mxu1 %v5868_v51  ;;  %v1889_v13 = vsel %vm1857_vm8, %v8020_v8, %v1825_v10  ;;  %v1827_v55 = vmul.f32 1.6732632, %v5289_v33  ;;  %v5299_v51 = vld [vmem:[%s10420_s1 + $0xe8] sm:$0xff]  ;;  %v1947_v20 = vpop.permute.xlu1 %1946 }
 0x3bf   :  { %v6249_v54 = vpop.eup %6248  ;;  %v1924_v30 = vmul.f32 1.050701, %v1892_v4  ;;  %v1921_v22 = vmul.f32 1.050701, %v1889_v13  ;;  %6052 = vset.pattern.permute.xlu1 %v6607_v44  ;;  %6053 = vset.pattern.permute.xlu0 %v6607_v44 }
 0x3c0   :  { %v6251_v15 = vpop.eup %6250  ;;  %v5292_v40 = vadd.f32 -1.0, %v6249_v54  ;;  %v1891_v8 = vsel %vm1859_vm11, %v8023_v31, %v1827_v55  ;;  %v5295_v31 = vld [vmem:[%s10420_s1 + $0xc8] sm:$0xff]  ;;  %2485 = vperm.xlu1 %6052, %v8198_v32   ;;  %2489 = vperm.xlu0 %6053, %v8204_v23  }
 0x3c1   :  { %v5856_v56 = vpack.c.bf16 %v1924_v30, %v1920_v37  ;;  %v5291_v11 = vadd.f32 -1.0, %v6251_v15  ;;  %v1923_v46 = vmul.f32 1.050701, %v1891_v8  ;;  %v8261_v8 = vld [vmem:[%s10421_s2 + $0x28] sm:$0xff] }
 0x3c2   :  { %v1830_v17 = vmul.f32 1.6732632, %v5292_v40  ;;  %v8238_v40 = vld [vmem:[%s10421_s2 + $0x18] sm:$0xff] }
 0x3c3   :  { %v1829_v29 = vmul.f32 1.6732632, %v5291_v11 }
 0x3c4   :  { %v1894_v42 = vsel %vm1862_vm9, %v8066_v14, %v1830_v17  ;;  %v6253_v0 = vpop.eup %6252  ;;  %2493 = vperm.xlu1 %6052, %v8216_v39   ;;  %2501 = vperm.xlu0 %6053, %v8222_v41  }
 0x3c5   :  { %v1926_v7 = vmul.f32 1.050701, %v1894_v42  ;;  %v1893_v53 = vsel %vm1861_vm10, %v8070_v19, %v1829_v29  ;;  %v5293_v49 = vadd.f32 -1.0, %v6253_v0  ;;  %v5294_v19 = vld [vmem:[%s10420_s1 + $0xc0] sm:$0xff] }
 0x3c6   :  { %v1925_v21 = vmul.f32 1.050701, %v1893_v53 }
 0x3c7   :  { %v5872_v5 = vpack.c.bf16 %v1926_v7, %v1922_v3  ;;  %v1831_v16 = vmul.f32 1.6732632, %v5293_v49 }
 0x3c8   :  { %v5854_v48 = vpack.c.bf16 %v1925_v21, %v1921_v22  ;;  %2497 = vperm.xlu1 %6052, %v8238_v40  }
 0x3c9   :  { %v1895_v14 = vsel %vm1863_vm12, %v8095_v57, %v1831_v16  ;;  %v5297_v57 = vld [vmem:[%s10420_s1 + $0xd8] sm:$0xff] }
 0x3ca   :  { %5855 = vmatprep.subr.bf16.mxu0 %v5854_v48  ;;  %v1927_v59 = vmul.f32 1.050701, %v1895_v14 }
 0x3cb   :  { %5857 = vmatpush1.bf16.msra.mxu0 %v5856_v56  ;;  %v8244_v56 = vld [vmem:[%s10421_s2 + $0x30] sm:$0xff] }
 0x3cc   :  { %v5870_v28 = vpack.c.bf16 %v1927_v59, %v1923_v46  ;;  %2509 = vperm.xlu0 %6053, %v8244_v56   ;;  %2505 = vperm.xlu1 %6052, %v8261_v8   ;;  %v1951_v59 = vpop.permute.xlu0 %1950 }
 0x3ce   :  { %5302 = vmatmul.mubr.msk.f32.vlgmr.msra.gmra.mrb[48].mxu0 %vm874_vm4, %v5294_v19  ;;  %5871 = vmatprep.subr.bf16.mxu1 %v5870_v28 }
 0x3cf   :  { %2063 = vmatprep.mubr.f32.mxu0 %v6603_v50  ;;  %5873 = vmatpush1.bf16.msra.mxu1 %v5872_v5 }
 0x3d2   :  { %5303 = vmatmul.mubr.msk.f32.gmra.mrb[50].mxu0 %vm874_vm4, %v5295_v31  ;;  %5310 = vmatmul.mubr.msk.f32.vlgmr.msra.gmra.mrb[48].mxu1 %vm874_vm4, %v5294_v19 }
 0x3d3   :  { %2069 = vmatprep.mubr.f32.mxu0 %v6603_v50  ;;  %2176 = vmatprep.mubr.f32.mxu1 %v6603_v50 }
 0x3d6   :  { %5304 = vmatmul.mubr.msk.f32.gmra.mrb[52].mxu0 %vm874_vm4, %v5296_v26  ;;  %5311 = vmatmul.mubr.msk.f32.gmra.mrb[50].mxu1 %vm874_vm4, %v5295_v31 }
 0x3d7   :  { %2075 = vmatprep.mubr.f32.mxu0 %v6603_v50  ;;  %2182 = vmatprep.mubr.f32.mxu1 %v6603_v50 }
 0x3da   :  { %5305 = vmatmul.mubr.msk.f32.gmra.mrb[54].mxu0 %vm874_vm4, %v5297_v57  ;;  %5312 = vmatmul.mubr.msk.f32.gmra.mrb[52].mxu1 %vm874_vm4, %v5296_v26 }
 0x3db   :  { %2081 = vmatprep.mubr.f32.mxu0 %v6603_v50  ;;  %2188 = vmatprep.mubr.f32.mxu1 %v6603_v50 }
 0x3de   :  { %5306 = vmatmul.mubr.msk.f32.gmra.mrb[56].mxu0 %vm874_vm4, %v5298_v43  ;;  %5313 = vmatmul.mubr.msk.f32.gmra.mrb[54].mxu1 %vm874_vm4, %v5297_v57 }
 0x3df   :  { %2087 = vmatprep.mubr.f32.mxu0 %v6603_v50  ;;  %2194 = vmatprep.mubr.f32.mxu1 %v6603_v50 }
 0x3e2   :  { %5307 = vmatmul.mubr.msk.f32.gmra.mrb[58].mxu0 %vm874_vm4, %v5299_v51  ;;  %5314 = vmatmul.mubr.msk.f32.gmra.mrb[56].mxu1 %vm874_vm4, %v5298_v43 }
 0x3e3   :  { %2093 = vmatprep.mubr.f32.mxu0 %v6603_v50  ;;  %2200 = vmatprep.mubr.f32.mxu1 %v6603_v50 }
 0x3e6   :  { %5308 = vmatmul.mubr.msk.f32.gmra.mrb[60].mxu0 %vm874_vm4, %v5300_v2  ;;  %5315 = vmatmul.mubr.msk.f32.gmra.mrb[58].mxu1 %vm874_vm4, %v5299_v51 }
 0x3e7   :  { %2099 = vmatprep.mubr.f32.mxu0 %v6603_v50  ;;  %2206 = vmatprep.mubr.f32.mxu1 %v6603_v50 }
 0x3ea   :  { %5309 = vmatmul.mubr.msk.f32.gmra.mrb[62].mxu0 %vm874_vm4, %v5301_v6  ;;  %5316 = vmatmul.mubr.msk.f32.gmra.mrb[60].mxu1 %vm874_vm4, %v5300_v2 }
 0x3eb   :  { %2604 = vmatprep.mubr.f32.mxu0 %v6603_v50  ;;  %2212 = vmatprep.mubr.f32.mxu1 %v6603_v50 }
 0x3ee   :  { %5317 = vmatmul.mubr.msk.f32.gmra.mrb[62].mxu1 %vm874_vm4, %v5301_v6 }
 0x3ef   :  { %2717 = vmatprep.mubr.f32.mxu1 %v6603_v50 }
 0x4a1   :  { %v2059_v47 = vpop.f32.mrb[48].mxu0 }
 0x4a2   :  { %v8193_v18 = vadd.f32 %v2059_v47, %v1939_v38  ;;  %v2061_v58 = vpop.f32.mrb[49].mxu0 }
 0x4a3   :  { %v8207_v34 = vadd.f32 %v2061_v58, %v1939_v38 }
 0x4a4   :  { %v2219_v60 = vmin.f32 %v8193_v18, 0.0  ;;  %vm2379_vm13 = vcmp.gt.f32.partialorder %v8193_v18, 0.0 }
 0x4a5   :  { %v2220_v1 = vmin.f32 %v8207_v34, 0.0  ;;  %v2065_v24 = vpop.f32.mrb[50].mxu0  ;;  %v2172_v63 = vpop.f32.mrb[48].mxu1  ;;  %vm2380_vm1 = vcmp.gt.f32.partialorder %v8207_v34, 0.0 }
 0x4a6   :  { %v2251_v52 = vmul.f32 1.442695, %v2219_v60  ;;  %v8211_v9 = vadd.f32 %v2065_v24, %v1943_v12  ;;  %v2067_v35 = vpop.f32.mrb[51].mxu0  ;;  %v8225_v45 = vadd.f32 %v2172_v63, %v1939_v38  ;;  %v2174_v61 = vpop.f32.mrb[49].mxu1 }
 0x4a7   :  { %v2253_v62 = vmul.f32 1.442695, %v2220_v1  ;;  %v8227_v25 = vadd.f32 %v2067_v35, %v1943_v12  ;;  %v8229_v27 = vadd.f32 %v2174_v61, %v1939_v38  ;;  %v8279_v38 = vld [vmem:[%s10421_s2 + $0x38] sm:$0xff] }
 0x4a8   :  { %6254 = vpow2.f32 %v2251_v52  ;;  %v2223_v4 = vmin.f32 %v8211_v9, 0.0  ;;  %v2221_v54 = vmin.f32 %v8225_v45, 0.0  ;;  %2513 = vperm.xlu1 %6052, %v8279_v38   ;;  %vm2383_vm14 = vcmp.gt.f32.partialorder %v8211_v9, 0.0 }
 0x4a9   :  { %v2071_v37 = vpop.f32.mrb[52].mxu0  ;;  %v2222_v10 = vmin.f32 %v8229_v27, 0.0  ;;  %v2178_v15 = vpop.f32.mrb[50].mxu1  ;;  %v2224_v33 = vmin.f32 %v8227_v25, 0.0  ;;  %6256 = vpow2.f32 %v2253_v62  ;;  %vm2381_vm15 = vcmp.gt.f32.partialorder %v8225_v45, 0.0 }
 0x4aa   :  { %v2259_v30 = vmul.f32 1.442695, %v2223_v4  ;;  %v2255_v11 = vmul.f32 1.442695, %v2221_v54  ;;  %v8247_v36 = vadd.f32 %v2178_v15, %v1943_v12  ;;  %v2180_v17 = vpop.f32.mrb[51].mxu1  ;;  %v8249_v13 = vadd.f32 %v2071_v37, %v1947_v20  ;;  %v2073_v29 = vpop.f32.mrb[53].mxu0 }
 0x4ab   :  { %v2257_v55 = vmul.f32 1.442695, %v2222_v10  ;;  %v8251_v42 = vadd.f32 %v2180_v17, %v1943_v12  ;;  %v2261_v53 = vmul.f32 1.442695, %v2224_v33  ;;  %v8256_v49 = vadd.f32 %v2073_v29, %v1947_v20 }
 0x4ac   :  { %6258 = vpow2.f32 %v2259_v30  ;;  %v2225_v0 = vmin.f32 %v8247_v36, 0.0  ;;  %v2227_v3 = vmin.f32 %v8249_v13, 0.0  ;;  %vm2382_vm2 = vcmp.gt.f32.partialorder %v8229_v27, 0.0 }
 0x4ad   :  { %6260 = vpow2.f32 %v2255_v11  ;;  %v2077_v7 = vpop.f32.mrb[54].mxu0  ;;  %v2226_v22 = vmin.f32 %v8251_v42, 0.0  ;;  %v2184_v21 = vpop.f32.mrb[52].mxu1  ;;  %v2228_v43 = vmin.f32 %v8256_v49, 0.0  ;;  %vm2385_vm3 = vcmp.gt.f32.partialorder %v8247_v36, 0.0 }
 0x4ae   :  { %v2079_v5 = vpop.f32.mrb[55].mxu0  ;;  %6262 = vpow2.f32 %v2257_v55  ;;  %v2263_v16 = vmul.f32 1.442695, %v2225_v0  ;;  %v2267_v48 = vmul.f32 1.442695, %v2227_v3  ;;  %v8264_v14 = vadd.f32 %v2184_v21, %v1947_v20  ;;  %v2186_v46 = vpop.f32.mrb[53].mxu1 }
 0x4af   :  { %v8267_v28 = vadd.f32 %v2077_v7, %v1951_v59  ;;  %v2265_v57 = vmul.f32 1.442695, %v2226_v22  ;;  %v8272_v51 = vadd.f32 %v2186_v46, %v1947_v20  ;;  %v2269_v62 = vmul.f32 1.442695, %v2228_v43 }
 0x4b0   :  { %6264 = vpow2.f32 %v2263_v16  ;;  %v2229_v19 = vmin.f32 %v8264_v14, 0.0  ;;  %v8288_v61 = vadd.f32 %v2079_v5, %v1951_v59  ;;  %vm2384_vm5 = vcmp.gt.f32.partialorder %v8227_v25, 0.0 }
 0x4b1   :  { %v8269_v31 = vpop.f32.mrb[56].mxu0  ;;  %6266 = vpow2.f32 %v2261_v53  ;;  %v2190_v2 = vpop.f32.mrb[54].mxu1  ;;  %v2231_v12 = vmin.f32 %v8267_v28, 0.0  ;;  %v2230_v10 = vmin.f32 %v8272_v51, 0.0  ;;  %vm2386_vm6 = vcmp.gt.f32.partialorder %v8251_v42, 0.0 }
 0x4b2   :  { %v6255_v26 = vpop.eup %6254  ;;  %v8274_v6 = vpop.f32.mrb[57].mxu0  ;;  %6268 = vpow2.f32 %v2267_v48  ;;  %v2271_v44 = vmul.f32 1.442695, %v2229_v19  ;;  %v8283_v52 = vadd.f32 %v2190_v2, %v1951_v59  ;;  %v2232_v53 = vmin.f32 %v8288_v61, 0.0 }
 0x4b3   :  { %v5318_v47 = vadd.f32 -1.0, %v6255_v26  ;;  %v2192_v58 = vpop.f32.mrb[55].mxu1  ;;  %v6257_v60 = vpop.eup %6256  ;;  %v2275_v24 = vmul.f32 1.442695, %v2231_v12  ;;  %vm2387_vm7 = vcmp.gt.f32.partialorder %v8249_v13, 0.0  ;;  %vm2389_vm8 = vcmp.gt.f32.partialorder %v8264_v14, 0.0 }
 0x4b4   :  { %6270 = vpow2.f32 %v2271_v44  ;;  %v2233_v30 = vmin.f32 %v8283_v52, 0.0  ;;  %v8299_v17 = vadd.f32 %v2192_v58, %v1951_v59  ;;  %v5319_v55 = vadd.f32 -1.0, %v6257_v60 }
 0x4b5   :  { %v2347_v1 = vmul.f32 1.6732632, %v5318_v47  ;;  %v8285_v63 = vpop.f32.mrb[58].mxu0  ;;  %6272 = vpow2.f32 %v2265_v57  ;;  %v8290_v20 = vpop.f32.mrb[56].mxu1  ;;  %v2277_v58 = vmul.f32 1.442695, %v2232_v53 }
 0x4b6   :  { %v6259_v35 = vpop.eup %6258  ;;  %v8292_v4 = vpop.f32.mrb[59].mxu0  ;;  %6274 = vpow2.f32 %v2275_v24  ;;  %v2279_v7 = vmul.f32 1.442695, %v2233_v30  ;;  %v2234_v26 = vmin.f32 %v8299_v17, 0.0  ;;  %v2348_v2 = vmul.f32 1.6732632, %v5319_v55 }
 0x4b7   :  { %v6261_v54 = vpop.eup %6260  ;;  %v5322_v37 = vadd.f32 -1.0, %v6259_v35  ;;  %v8296_v15 = vpop.f32.mrb[57].mxu1  ;;  %v2411_v33 = vsel %vm2379_vm13, %v8193_v18, %v2347_v1  ;;  %6276 = vpow2.f32 %v2269_v62  ;;  %v2273_v18 = vmul.f32 1.442695, %v2230_v10 }
 0x4b8   :  { %v5320_v11 = vadd.f32 -1.0, %v6261_v54  ;;  %v6263_v29 = vpop.eup %6262  ;;  %v8304_v21 = vmul.f32 1.050701, %v2411_v33  ;;  %6278 = vpow2.f32 %v2279_v7  ;;  %v2281_v10 = vmul.f32 1.442695, %v2234_v26 }
 0x4b9   :  { %v2351_v0 = vmul.f32 1.6732632, %v5322_v37  ;;  %v8307_v16 = vpop.f32.mrb[58].mxu1  ;;  %v5321_v46 = vadd.f32 -1.0, %v6263_v29  ;;  %6280 = vpow2.f32 %v2273_v18  ;;  %v2412_v55 = vsel %vm2380_vm1, %v8207_v34, %v2348_v2 }
 0x4ba   :  { %v2349_v3 = vmul.f32 1.6732632, %v5320_v11  ;;  %v6265_v22 = vpop.eup %6264  ;;  %v8312_v57 = vpop.f32.mrb[59].mxu1  ;;  %6282 = vpow2.f32 %v2277_v58  ;;  %vm2391_vm9 = vcmp.gt.f32.partialorder %v8267_v28, 0.0  ;;  %vm2393_vm10 = vcmp.gt.f32.partialorder %v8283_v52, 0.0 }
 0x4bb   :  { %v2415_v5 = vsel %vm2383_vm14, %v8211_v9, %v2351_v0  ;;  %v6267_v48 = vpop.eup %6266  ;;  %v5324_v19 = vadd.f32 -1.0, %v6265_v22  ;;  %v8316_v9 = vpop.f32.mrb[60].mxu0  ;;  %v2350_v37 = vmul.f32 1.6732632, %v5321_v46  ;;  %v8350_v46 = vmul.f32 1.050701, %v2412_v55 }
 0x4bc   :  { %v8309_v59 = vmul.f32 1.050701, %v2415_v5  ;;  %v6269_v43 = vpop.eup %6268  ;;  %v2413_v47 = vsel %vm2381_vm15, %v8225_v45, %v2349_v3  ;;  %v8325_v1 = vpop.f32.mrb[61].mxu0  ;;  %v5323_v35 = vadd.f32 -1.0, %v6267_v48  ;;  %6284 = vpow2.f32 %v2281_v10 }
 0x4bd   :  { %v2353_v12 = vmul.f32 1.6732632, %v5324_v19  ;;  %v8323_v60 = vpop.f32.mrb[60].mxu1  ;;  %v5326_v62 = vadd.f32 -1.0, %v6269_v43  ;;  %v8332_v33 = vpop.f32.mrb[62].mxu0  ;;  %v2414_v26 = vsel %vm2382_vm2, %v8229_v27, %v2350_v37  ;;  %vm2388_vm11 = vcmp.gt.f32.partialorder %v8256_v49, 0.0 }
 0x4be   :  { %v5876_v44 = vpack.c.bf16 %v8309_v59, %v8304_v21  ;;  %v6271_v24 = vpop.eup %6270  ;;  %v8330_v30 = vpop.f32.mrb[61].mxu1  ;;  %v8334_v29 = vmul.f32 1.050701, %v2413_v47  ;;  %v2352_v22 = vmul.f32 1.6732632, %v5323_v35  ;;  %vm2390_vm12 = vcmp.gt.f32.partialorder %v8272_v51, 0.0 }
 0x4bf   :  { %v6273_v54 = vpop.eup %6272  ;;  %v2417_v45 = vsel %vm2385_vm3, %v8247_v36, %v2353_v12  ;;  %v2355_v3 = vmul.f32 1.6732632, %v5326_v62  ;;  %v5328_v36 = vadd.f32 -1.0, %v6271_v24  ;;  %v8348_v34 = vpop.f32.mrb[63].mxu0  ;;  %vm2392_vm13 = vcmp.gt.f32.partialorder %v8288_v61, 0.0 }
 0x4c0   :  { %v6275_v11 = vpop.eup %6274  ;;  %v8339_v0 = vmul.f32 1.050701, %v2417_v45  ;;  %v5325_v5 = vadd.f32 -1.0, %v6273_v54  ;;  %v1955_v48 = vpop.permute.xlu1 %1954  ;;  %vm2394_vm14 = vcmp.gt.f32.partialorder %v8299_v17, 0.0 }
 0x4c1   :  { %v5330_v7 = vadd.f32 -1.0, %v6275_v11  ;;  %v8346_v18 = vpop.f32.mrb[62].mxu1  ;;  %v6277_v19 = vpop.eup %6276  ;;  %v2419_v43 = vsel %vm2387_vm7, %v8249_v13, %v2355_v3  ;;  %v8361_v47 = vadd.f32 %v8269_v31, %v1955_v48  ;;  %v2357_v58 = vmul.f32 1.6732632, %v5328_v36 }
 0x4c2   :  { %v5892_v53 = vpack.c.bf16 %v8339_v0, %v8334_v29  ;;  %v8363_v12 = vpop.f32.mrb[63].mxu1  ;;  %v8366_v24 = vadd.f32 %v8290_v20, %v1955_v48  ;;  %v8369_v35 = vadd.f32 %v8274_v6, %v1955_v48  ;;  %v8372_v62 = vadd.f32 %v8296_v15, %v1955_v48  ;;  %v6279_v27 = vpop.eup %6278 }
 0x4c3   :  { %v2359_v2 = vmul.f32 1.6732632, %v5330_v7  ;;  %v2416_v13 = vsel %vm2384_vm5, %v8227_v25, %v2352_v22  ;;  %v2354_v54 = vmul.f32 1.6732632, %v5325_v5  ;;  %v2235_v37 = vmin.f32 %v8361_v47, 0.0  ;;  %v6281_v3 = vpop.eup %6280  ;;  %v1959_v5 = vpop.permute.xlu0 %1958 }
 0x4c4   :  { %v8381_v20 = vmul.f32 1.050701, %v2419_v43  ;;  %v5332_v6 = vadd.f32 -1.0, %v6279_v27  ;;  %v2237_v15 = vmin.f32 %v8366_v24, 0.0  ;;  %v5327_v10 = vadd.f32 -1.0, %v6277_v19 }
 0x4c5   :  { %v2423_v31 = vsel %vm2391_vm9, %v8267_v28, %v2359_v2  ;;  %v2283_v11 = vmul.f32 1.442695, %v2235_v37  ;;  %v2236_v25 = vmin.f32 %v8369_v35, 0.0  ;;  %v2238_v55 = vmin.f32 %v8372_v62, 0.0  ;;  %v6283_v2 = vpop.eup %6282 }
 0x4c6   :  { %v8383_v45 = vmul.f32 1.050701, %v2423_v31  ;;  %v2421_v28 = vsel %vm2389_vm8, %v8264_v14, %v2357_v58  ;;  %v2361_v7 = vmul.f32 1.6732632, %v5332_v6  ;;  %v2287_v22 = vmul.f32 1.442695, %v2237_v15  ;;  %v6285_v37 = vpop.eup %6284 }
 0x4c7   :  { %v2418_v48 = vsel %vm2386_vm6, %v8251_v42, %v2354_v54  ;;  %6286 = vpow2.f32 %v2283_v11  ;;  %v2285_v19 = vmul.f32 1.442695, %v2236_v25  ;;  %v2289_v43 = vmul.f32 1.442695, %v2238_v55  ;;  %v1963_v55 = vpop.permute.xlu1 %1962 }
 0x4c8   :  { %v5880_v36 = vpack.c.bf16 %v8383_v45, %v8381_v20  ;;  %v2425_v27 = vsel %vm2393_vm10, %v8283_v52, %v2361_v7  ;;  %6288 = vpow2.f32 %v2287_v22  ;;  %v8401_v14 = vadd.f32 %v8285_v63, %v1959_v5 }
 0x4c9   :  { %v8404_v58 = vadd.f32 %v8307_v16, %v1959_v5  ;;  %v8406_v31 = vmul.f32 1.050701, %v2421_v28  ;;  %v8409_v42 = vmul.f32 1.050701, %v2425_v27  ;;  %6290 = vpow2.f32 %v2285_v19 }
 0x4ca   :  { %v8412_v54 = vadd.f32 %v8292_v4, %v1959_v5  ;;  %v2356_v6 = vmul.f32 1.6732632, %v5327_v10  ;;  %v5329_v52 = vadd.f32 -1.0, %v6281_v3  ;;  %6292 = vpow2.f32 %v2289_v43 }
 0x4cb   :  { %v2239_v63 = vmin.f32 %v8401_v14, 0.0  ;;  %v8416_v16 = vmul.f32 1.050701, %v2414_v26  ;;  %v5896_v15 = vpack.c.bf16 %v8409_v42, %v8406_v31  ;;  %v5331_v11 = vadd.f32 -1.0, %v6283_v2 }
 0x4cc   :  { %v2241_v25 = vmin.f32 %v8404_v58, 0.0  ;;  %v8421_v28 = vmul.f32 1.050701, %v2416_v13  ;;  %v8423_v4 = vmul.f32 1.050701, %v2418_v48  ;;  %v8426_v3 = vadd.f32 %v8312_v57, %v1959_v5 }
 0x4cd   :  { %v2291_v10 = vmul.f32 1.442695, %v2239_v63  ;;  %v5333_v7 = vadd.f32 -1.0, %v6285_v37  ;;  %v2240_v26 = vmin.f32 %v8412_v54, 0.0  ;;  %v8430_v19 = vadd.f32 %v8316_v9, %v1963_v55 }
 0x4ce   :  { %v2295_v22 = vmul.f32 1.442695, %v2241_v25  ;;  %v8435_v43 = vsel %vm2388_vm11, %v8256_v49, %v2356_v6  ;;  %v2358_v13 = vmul.f32 1.6732632, %v5329_v52  ;;  %v2242_v48 = vmin.f32 %v8426_v3, 0.0  ;;  %v8449_v25 = vpop.permute.xlu0 %1966 }
 0x4cf   :  { %6294 = vpow2.f32 %v2291_v10  ;;  %v2360_v2 = vmul.f32 1.6732632, %v5331_v11  ;;  %v2293_v57 = vmul.f32 1.442695, %v2240_v26  ;;  %v2243_v5 = vmin.f32 %v8430_v19, 0.0 }
 0x4d0   :  { %6296 = vpow2.f32 %v2295_v22  ;;  %v2297_v27 = vmul.f32 1.442695, %v2242_v48  ;;  %v8441_v9 = vadd.f32 %v8323_v60, %v1963_v55  ;;  %v8444_v37 = vadd.f32 %v8325_v1, %v1963_v55 }
 0x4d1   :  { %v6287_v49 = vpop.eup %6286  ;;  %v2362_v6 = vmul.f32 1.6732632, %v5333_v7  ;;  %6298 = vpow2.f32 %v2293_v57  ;;  %v2299_v52 = vmul.f32 1.442695, %v2243_v5  ;;  %v8447_v63 = vadd.f32 %v8330_v30, %v1963_v55 }
 0x4d2   :  { %v6289_v11 = vpop.eup %6288  ;;  %v8454_v10 = vsel %vm2390_vm12, %v8272_v51, %v2358_v13  ;;  %v5334_v60 = vadd.f32 -1.0, %v6287_v49  ;;  %6300 = vpow2.f32 %v2297_v27  ;;  %v2245_v1 = vmin.f32 %v8441_v9, 0.0 }
 0x4d3   :  { %v6291_v22 = vpop.eup %6290  ;;  %v2424_v7 = vsel %vm2392_vm13, %v8288_v61, %v2360_v2  ;;  %v5336_v26 = vadd.f32 -1.0, %v6289_v11  ;;  %v2244_v30 = vmin.f32 %v8444_v37, 0.0  ;;  %v8463_v55 = vadd.f32 %v8332_v33, %v8449_v25 }
 0x4d4   :  { %v6293_v48 = vpop.eup %6292  ;;  %v2363_v57 = vmul.f32 1.6732632, %v5334_v60  ;;  %v5335_v51 = vadd.f32 -1.0, %v6291_v22  ;;  %6302 = vpow2.f32 %v2299_v52  ;;  %v2303_v13 = vmul.f32 1.442695, %v2245_v1 }
 0x4d5   :  { %v2426_v5 = vsel %vm2394_vm14, %v8299_v17, %v2362_v6  ;;  %vm2395_vm15 = vcmp.gt.f32.partialorder %v8361_v47, 0.0  ;;  %v2365_v27 = vmul.f32 1.6732632, %v5336_v26  ;;  %v2246_v61 = vmin.f32 %v8447_v63, 0.0 }
 0x4d6   :  { %v2427_v2 = vsel %vm2395_vm15, %v8361_v47, %v2363_v57  ;;  %vm2397_vm1 = vcmp.gt.f32.partialorder %v8366_v24, 0.0  ;;  %v5337_v33 = vadd.f32 -1.0, %v6293_v48  ;;  %vm2399_vm2 = vcmp.gt.f32.partialorder %v8401_v14, 0.0 }
 0x4d7   :  { %v8473_v49 = vmul.f32 1.050701, %v2424_v7  ;;  %vm2401_vm3 = vcmp.gt.f32.partialorder %v8404_v58, 0.0  ;;  %vm2400_vm5 = vcmp.gt.f32.partialorder %v8412_v54, 0.0  ;;  %v2301_v52 = vmul.f32 1.442695, %v2244_v30 }
 0x4d8   :  { %v8477_v6 = vmul.f32 1.050701, %v2426_v5  ;;  %v2364_v11 = vmul.f32 1.6732632, %v5335_v51  ;;  %vm2396_vm6 = vcmp.gt.f32.partialorder %v8369_v35, 0.0  ;;  %vm2402_vm7 = vcmp.gt.f32.partialorder %v8426_v3, 0.0 }
 0x4d9   :  { %v6295_v17 = vpop.eup %6294  ;;  %6304 = vpow2.f32 %v2303_v13  ;;  %v2247_v47 = vmin.f32 %v8463_v55, 0.0  ;;  %v8482_v1 = vmul.f32 1.050701, %v2427_v2  ;;  %v2429_v22 = vsel %vm2397_vm1, %v8366_v24, %v2365_v27 }
 0x4da   :  { %v6297_v60 = vpop.eup %6296  ;;  %vm2398_vm8 = vcmp.gt.f32.partialorder %v8372_v62, 0.0  ;;  %v5338_v7 = vadd.f32 -1.0, %v6295_v17  ;;  %v2305_v26 = vmul.f32 1.442695, %v2246_v61  ;;  %v2366_v30 = vmul.f32 1.6732632, %v5337_v33 }
 0x4db   :  { %v5340_v48 = vadd.f32 -1.0, %v6297_v60  ;;  %v2307_v57 = vmul.f32 1.442695, %v2247_v47  ;;  %v8490_v51 = vadd.f32 %v8346_v18, %v8449_v25  ;;  %v6299_v13 = vpop.eup %6298  ;;  %6306 = vpow2.f32 %v2301_v52 }
 0x4dc   :  { %v2367_v5 = vmul.f32 1.6732632, %v5338_v7  ;;  %v8494_v2 = vadd.f32 %v8348_v34, %v8449_v25  ;;  %v5874_v24 = vpack.c.bf16 %v8421_v28, %v8350_v46  ;;  %v6301_v27 = vpop.eup %6300  ;;  %v5339_v61 = vadd.f32 -1.0, %v6299_v13 }
 0x4dd   :  { %v2369_v17 = vmul.f32 1.6732632, %v5340_v48  ;;  %6308 = vpow2.f32 %v2307_v57  ;;  %v2249_v33 = vmin.f32 %v8490_v51, 0.0  ;;  %v8499_v47 = vmul.f32 1.050701, %v2429_v22 }
 0x4de   :  { %v2431_v18 = vsel %vm2399_vm2, %v8401_v14, %v2367_v5  ;;  %v5341_v52 = vadd.f32 -1.0, %v6301_v27  ;;  %v2248_v60 = vmin.f32 %v8494_v2, 0.0  ;;  %5875 = vmatprep.subr.bf16.mxu0 %v5874_v24  ;;  %v6303_v34 = vpop.eup %6302  ;;  %v2368_v28 = vmul.f32 1.6732632, %v5339_v61 }
 0x4df   :  { %v2463_v7 = vmul.f32 1.050701, %v2431_v18  ;;  %v2433_v46 = vsel %vm2401_vm3, %v8404_v58, %v2369_v17  ;;  %6310 = vpow2.f32 %v2305_v26  ;;  %5877 = vmatpush1.bf16.msra.mxu0 %v5876_v44  ;;  %v2311_v57 = vmul.f32 1.442695, %v2249_v33 }
 0x4e0   :  { %v2465_v22 = vmul.f32 1.050701, %v2433_v46  ;;  %v2370_v48 = vmul.f32 1.6732632, %v5341_v52  ;;  %v5890_v14 = vpack.c.bf16 %v8423_v4, %v8416_v16  ;;  %v2432_v5 = vsel %vm2400_vm5, %v8412_v54, %v2368_v28 }
 0x4e1   :  { %v5884_v13 = vpack.c.bf16 %v2463_v7, %v8482_v1  ;;  %v2309_v24 = vmul.f32 1.442695, %v2248_v60  ;;  %v8519_v58 = vadd.f32 %v8363_v12, %v8449_v25  ;;  %v2428_v21 = vsel %vm2396_vm6, %v8369_v35, %v2364_v11 }
 0x4e2   :  { %v5900_v59 = vpack.c.bf16 %v2465_v22, %v8499_v47  ;;  %v2434_v44 = vsel %vm2402_vm7, %v8426_v3, %v2370_v48  ;;  %v5342_v16 = vadd.f32 -1.0, %v6303_v34  ;;  %5891 = vmatprep.subr.bf16.mxu1 %v5890_v14  ;;  %v2430_v54 = vsel %vm2398_vm8, %v8372_v62, %v2366_v30 }
 0x4e3   :  { %v6305_v4 = vpop.eup %6304  ;;  %v2464_v1 = vmul.f32 1.050701, %v2432_v5  ;;  %6312 = vpow2.f32 %v2311_v57  ;;  %5893 = vmatpush1.bf16.msra.mxu1 %v5892_v53  ;;  %v2452_v12 = vmul.f32 1.050701, %v8435_v43  ;;  %v2454_v35 = vmul.f32 1.050701, %v8454_v10 }
 0x4e4   :  { %v2466_v25 = vmul.f32 1.050701, %v2434_v44  ;;  %6314 = vpow2.f32 %v2309_v24  ;;  %v2460_v3 = vmul.f32 1.050701, %v2428_v21  ;;  %v2250_v11 = vmin.f32 %v8519_v58, 0.0 }
 0x4e5   :  { %v6307_v26 = vpop.eup %6306  ;;  %v2462_v27 = vmul.f32 1.050701, %v2430_v54  ;;  %v2371_v17 = vmul.f32 1.6732632, %v5342_v16  ;;  %v5878_v62 = vpack.c.bf16 %v8473_v49, %v2452_v12  ;;  %v5894_v30 = vpack.c.bf16 %v8477_v6, %v2454_v35  ;;  %v5353_v12 = vld [vmem:[%s10420_s1 + $0x118] sm:$0xff]  ;;  %v5354_v35 = vld [vmem:[%s10420_s1 + $0x120] sm:$0xff] }
 0x4e6   :  { %v2313_v33 = vmul.f32 1.442695, %v2250_v11  ;;  %v5882_v29 = vpack.c.bf16 %v2464_v1, %v2460_v3  ;;  %v5344_v0 = vadd.f32 -1.0, %v6305_v4  ;;  %vm2403_vm9 = vcmp.gt.f32.partialorder %v8430_v19, 0.0  ;;  %v5356_v3 = vld [vmem:[%s10420_s1 + $0x130] sm:$0xff]  ;;  %v5357_v11 = vld [vmem:[%s10420_s1 + $0x138] sm:$0xff] }
 0x4e7   :  { %v6309_v61 = vpop.eup %6308  ;;  %5879 = vmatprep.subr.bf16.mxu0 %v5878_v62  ;;  %5895 = vmatprep.subr.bf16.mxu1 %v5894_v30  ;;  %v5898_v43 = vpack.c.bf16 %v2466_v25, %v2462_v27  ;;  %v5343_v47 = vadd.f32 -1.0, %v6307_v26  ;;  %v2435_v49 = vsel %vm2403_vm9, %v8430_v19, %v2371_v17  ;;  %vm2407_vm10 = vcmp.gt.f32.partialorder %v8463_v55, 0.0  ;;  %v5355_v25 = vld [vmem:[%s10420_s1 + $0x128] sm:$0xff]  ;;  %v2486_v26 = vpop.permute.xlu1 %2485 }
 0x4e8   :  { %v5346_v53 = vadd.f32 -1.0, %v6309_v61  ;;  %6316 = vpow2.f32 %v2313_v33  ;;  %5881 = vmatpush1.bf16.msra.mxu0 %v5880_v36  ;;  %5897 = vmatpush1.bf16.msra.mxu1 %v5896_v15  ;;  %v2373_v18 = vmul.f32 1.6732632, %v5344_v0  ;;  %v2467_v34 = vmul.f32 1.050701, %v2435_v49  ;;  %v2490_v61 = vpop.permute.xlu0 %2489 }
 0x4e9   :  { %v6311_v10 = vpop.eup %6310  ;;  %5883 = vmatprep.subr.bf16.mxu0 %v5882_v29  ;;  %5899 = vmatprep.subr.bf16.mxu1 %v5898_v43  ;;  %v2372_v7 = vmul.f32 1.6732632, %v5343_v47  ;;  %vm2405_vm11 = vcmp.gt.f32.partialorder %v8441_v9, 0.0  ;;  %vm2404_vm12 = vcmp.gt.f32.partialorder %v8444_v37, 0.0  ;;  %vm2409_vm13 = vcmp.gt.f32.partialorder %v8490_v51, 0.0 }
 0x4ea   :  { %v2375_v6 = vmul.f32 1.6732632, %v5346_v53  ;;  %v5345_v45 = vadd.f32 -1.0, %v6311_v10  ;;  %v2437_v15 = vsel %vm2405_vm11, %v8441_v9, %v2373_v18  ;;  %vm2408_vm14 = vcmp.gt.f32.partialorder %v8494_v2, 0.0 }
 0x4eb   :  { %v2469_v14 = vmul.f32 1.050701, %v2437_v15  ;;  %vm2406_vm15 = vcmp.gt.f32.partialorder %v8447_v63, 0.0  ;;  %vm2410_vm1 = vcmp.gt.f32.partialorder %v8519_v58, 0.0  ;;  %v6608_v17 = vmov 5  }
 0x4ec   :  { %v2439_v52 = vsel %vm2407_vm10, %v8463_v55, %v2375_v6  ;;  %5885 = vmatpush1.bf16.msra.mxu0 %v5884_v13  ;;  %5901 = vmatpush1.bf16.msra.mxu1 %v5900_v59  ;;  %v2436_v55 = vsel %vm2404_vm12, %v8444_v37, %v2372_v7  ;;  %v2374_v22 = vmul.f32 1.6732632, %v5345_v45 }
 0x4ed   :  { %v6313_v60 = vpop.eup %6312  ;;  %v2471_v46 = vmul.f32 1.050701, %v2439_v52  ;;  %v2468_v24 = vmul.f32 1.050701, %v2436_v55  ;;  %6055 = vset.pattern.permute.xlu1 %v6608_v17  ;;  %6054 = vset.pattern.permute.xlu0 %v6608_v17 }
 0x4ee   :  { %v6315_v20 = vpop.eup %6314  ;;  %v5348_v36 = vadd.f32 -1.0, %v6313_v60  ;;  %v2438_v37 = vsel %vm2406_vm15, %v8447_v63, %v2374_v22  ;;  %v5351_v63 = vld [vmem:[%s10420_s1 + $0x108] sm:$0xff]  ;;  %3036 = vperm.xlu1 %6055, %v8204_v23   ;;  %3032 = vperm.xlu0 %6054, %v8198_v32  }
 0x4ef   :  { %v5888_v31 = vpack.c.bf16 %v2471_v46, %v2467_v34  ;;  %v5347_v42 = vadd.f32 -1.0, %v6315_v20  ;;  %v2470_v4 = vmul.f32 1.050701, %v2438_v37  ;;  %v2494_v46 = vpop.permute.xlu1 %2493 }
 0x4f0   :  { %v2377_v19 = vmul.f32 1.6732632, %v5348_v36 }
 0x4f1   :  { %v2376_v28 = vmul.f32 1.6732632, %v5347_v42 }
 0x4f2   :  { %v2441_v48 = vsel %vm2409_vm13, %v8490_v51, %v2377_v19  ;;  %v6317_v57 = vpop.eup %6316  ;;  %3040 = vperm.xlu1 %6055, %v8216_v39   ;;  %3044 = vperm.xlu0 %6054, %v8238_v40  }
 0x4f3   :  { %v2473_v13 = vmul.f32 1.050701, %v2441_v48  ;;  %v2440_v5 = vsel %vm2408_vm14, %v8494_v2, %v2376_v28  ;;  %v5349_v21 = vadd.f32 -1.0, %v6317_v57  ;;  %v5350_v2 = vld [vmem:[%s10420_s1 + $0x100] sm:$0xff]  ;;  %v2498_v37 = vpop.permute.xlu1 %2497 }
 0x4f4   :  { %v2472_v9 = vmul.f32 1.050701, %v2440_v5 }
 0x4f5   :  { %v5904_v59 = vpack.c.bf16 %v2473_v13, %v2469_v14  ;;  %v2378_v44 = vmul.f32 1.6732632, %v5349_v21 }
 0x4f6   :  { %v5886_v16 = vpack.c.bf16 %v2472_v9, %v2468_v24  ;;  %3048 = vperm.xlu1 %6055, %v8222_v41   ;;  %3052 = vperm.xlu0 %6054, %v8261_v8  }
 0x4f7   :  { %v2442_v51 = vsel %vm2410_vm1, %v8519_v58, %v2378_v44  ;;  %v5352_v58 = vld [vmem:[%s10420_s1 + $0x110] sm:$0xff] }
 0x4f8   :  { %5887 = vmatprep.subr.bf16.mxu0 %v5886_v16  ;;  %v2474_v54 = vmul.f32 1.050701, %v2442_v51 }
 0x4f9   :  { %5889 = vmatpush1.bf16.msra.mxu0 %v5888_v31 }
 0x4fa   :  { %v5902_v1 = vpack.c.bf16 %v2474_v54, %v2470_v4  ;;  %3056 = vperm.xlu1 %6055, %v8244_v56   ;;  %3060 = vperm.xlu0 %6054, %v8279_v38  }
 0x4fc   :  { %5358 = vmatmul.mubr.msk.f32.vlgmr.msra.gmra.mrb[64].mxu0 %vm874_vm4, %v5350_v2  ;;  %5903 = vmatprep.subr.bf16.mxu1 %v5902_v1 }
 0x4fd   :  { %2610 = vmatprep.mubr.f32.mxu0 %v6603_v50  ;;  %5905 = vmatpush1.bf16.msra.mxu1 %v5904_v59 }
 0x500   :  { %5359 = vmatmul.mubr.msk.f32.gmra.mrb[66].mxu0 %vm874_vm4, %v5351_v63  ;;  %5366 = vmatmul.mubr.msk.f32.vlgmr.msra.gmra.mrb[64].mxu1 %vm874_vm4, %v5350_v2 }
 0x501   :  { %2616 = vmatprep.mubr.f32.mxu0 %v6603_v50  ;;  %2723 = vmatprep.mubr.f32.mxu1 %v6603_v50 }
 0x504   :  { %5360 = vmatmul.mubr.msk.f32.gmra.mrb[68].mxu0 %vm874_vm4, %v5352_v58  ;;  %5367 = vmatmul.mubr.msk.f32.gmra.mrb[66].mxu1 %vm874_vm4, %v5351_v63 }
 0x505   :  { %2622 = vmatprep.mubr.f32.mxu0 %v6603_v50  ;;  %2729 = vmatprep.mubr.f32.mxu1 %v6603_v50 }
 0x508   :  { %5361 = vmatmul.mubr.msk.f32.gmra.mrb[70].mxu0 %vm874_vm4, %v5353_v12  ;;  %5368 = vmatmul.mubr.msk.f32.gmra.mrb[68].mxu1 %vm874_vm4, %v5352_v58 }
 0x509   :  { %2628 = vmatprep.mubr.f32.mxu0 %v6603_v50  ;;  %2735 = vmatprep.mubr.f32.mxu1 %v6603_v50 }
 0x50c   :  { %5362 = vmatmul.mubr.msk.f32.gmra.mrb[72].mxu0 %vm874_vm4, %v5354_v35  ;;  %5369 = vmatmul.mubr.msk.f32.gmra.mrb[70].mxu1 %vm874_vm4, %v5353_v12 }
 0x50d   :  { %2634 = vmatprep.mubr.f32.mxu0 %v6603_v50  ;;  %2741 = vmatprep.mubr.f32.mxu1 %v6603_v50 }
 0x510   :  { %5363 = vmatmul.mubr.msk.f32.gmra.mrb[74].mxu0 %vm874_vm4, %v5355_v25  ;;  %5370 = vmatmul.mubr.msk.f32.gmra.mrb[72].mxu1 %vm874_vm4, %v5354_v35 }
 0x511   :  { %2640 = vmatprep.mubr.f32.mxu0 %v6603_v50  ;;  %2747 = vmatprep.mubr.f32.mxu1 %v6603_v50 }
 0x514   :  { %5364 = vmatmul.mubr.msk.f32.gmra.mrb[76].mxu0 %vm874_vm4, %v5356_v3  ;;  %5371 = vmatmul.mubr.msk.f32.gmra.mrb[74].mxu1 %vm874_vm4, %v5355_v25 }
 0x515   :  { %2646 = vmatprep.mubr.f32.mxu0 %v6603_v50  ;;  %2753 = vmatprep.mubr.f32.mxu1 %v6603_v50 }
 0x518   :  { %5365 = vmatmul.mubr.msk.f32.gmra.mrb[78].mxu0 %vm874_vm4, %v5357_v11  ;;  %5372 = vmatmul.mubr.msk.f32.gmra.mrb[76].mxu1 %vm874_vm4, %v5356_v3 }
 0x519   :  { %3151 = vmatprep.mubr.f32.mxu0 %v6603_v50  ;;  %2759 = vmatprep.mubr.f32.mxu1 %v6603_v50 }
 0x51c   :  { %5373 = vmatmul.mubr.msk.f32.gmra.mrb[78].mxu1 %vm874_vm4, %v5357_v11 }
 0x51d   :  { %3264 = vmatprep.mubr.f32.mxu1 %v6603_v50 }
 0x5cf   :  { %v2606_v27 = vpop.f32.mrb[64].mxu0 }
 0x5d0   :  { %v8617_v62 = vadd.f32 %v2606_v27, %v2486_v26  ;;  %v2608_v30 = vpop.f32.mrb[65].mxu0 }
 0x5d1   :  { %v8621_v33 = vadd.f32 %v2608_v30, %v2486_v26 }
 0x5d2   :  { %v2766_v29 = vmin.f32 %v8617_v62, 0.0  ;;  %vm2926_vm2 = vcmp.gt.f32.partialorder %v8617_v62, 0.0 }
 0x5d3   :  { %v2767_v0 = vmin.f32 %v8621_v33, 0.0  ;;  %v2612_v53 = vpop.f32.mrb[66].mxu0  ;;  %v2719_v10 = vpop.f32.mrb[64].mxu1  ;;  %vm2927_vm3 = vcmp.gt.f32.partialorder %v8621_v33, 0.0 }
 0x5d4   :  { %v2798_v43 = vmul.f32 1.442695, %v2766_v29  ;;  %v8625_v47 = vadd.f32 %v2612_v53, %v2490_v61  ;;  %v2614_v49 = vpop.f32.mrb[67].mxu0  ;;  %v8629_v23 = vadd.f32 %v2719_v10, %v2486_v26  ;;  %v2721_v6 = vpop.f32.mrb[65].mxu1 }
 0x5d5   :  { %v2800_v32 = vmul.f32 1.442695, %v2767_v0  ;;  %v8631_v18 = vadd.f32 %v2614_v49, %v2490_v61  ;;  %v8633_v52 = vadd.f32 %v2721_v6, %v2486_v26 }
 0x5d6   :  { %6318 = vpow2.f32 %v2798_v43  ;;  %v2770_v60 = vmin.f32 %v8625_v47, 0.0  ;;  %v2768_v34 = vmin.f32 %v8629_v23, 0.0  ;;  %vm2930_vm5 = vcmp.gt.f32.partialorder %v8625_v47, 0.0 }
 0x5d7   :  { %v2618_v7 = vpop.f32.mrb[68].mxu0  ;;  %v2769_v20 = vmin.f32 %v8633_v52, 0.0  ;;  %v2725_v45 = vpop.f32.mrb[66].mxu1  ;;  %v2771_v40 = vmin.f32 %v8631_v18, 0.0  ;;  %6320 = vpow2.f32 %v2800_v32  ;;  %vm2928_vm6 = vcmp.gt.f32.partialorder %v8629_v23, 0.0 }
 0x5d8   :  { %v2806_v39 = vmul.f32 1.442695, %v2770_v60  ;;  %v2802_v36 = vmul.f32 1.442695, %v2768_v34  ;;  %v8641_v31 = vadd.f32 %v2725_v45, %v2490_v61  ;;  %v2727_v42 = vpop.f32.mrb[67].mxu1  ;;  %v8643_v15 = vadd.f32 %v2618_v7, %v2494_v46  ;;  %v2620_v19 = vpop.f32.mrb[69].mxu0 }
 0x5d9   :  { %v2804_v55 = vmul.f32 1.442695, %v2769_v20  ;;  %v8645_v28 = vadd.f32 %v2727_v42, %v2490_v61  ;;  %v2808_v57 = vmul.f32 1.442695, %v2771_v40  ;;  %v8650_v13 = vadd.f32 %v2620_v19, %v2494_v46 }
 0x5da   :  { %6322 = vpow2.f32 %v2806_v39  ;;  %v2772_v22 = vmin.f32 %v8641_v31, 0.0  ;;  %v2774_v48 = vmin.f32 %v8643_v15, 0.0  ;;  %vm2929_vm7 = vcmp.gt.f32.partialorder %v8633_v52, 0.0 }
 0x5db   :  { %6324 = vpow2.f32 %v2802_v36  ;;  %v2624_v41 = vpop.f32.mrb[70].mxu0  ;;  %v2773_v8 = vmin.f32 %v8645_v28, 0.0  ;;  %v2731_v14 = vpop.f32.mrb[68].mxu1  ;;  %v2775_v56 = vmin.f32 %v8650_v13, 0.0  ;;  %vm2932_vm8 = vcmp.gt.f32.partialorder %v8641_v31, 0.0 }
 0x5dc   :  { %v2626_v5 = vpop.f32.mrb[71].mxu0  ;;  %6326 = vpow2.f32 %v2804_v55  ;;  %v2810_v24 = vmul.f32 1.442695, %v2772_v22  ;;  %v2814_v9 = vmul.f32 1.442695, %v2774_v48  ;;  %v8654_v21 = vadd.f32 %v2731_v14, %v2494_v46  ;;  %v2733_v59 = vpop.f32.mrb[69].mxu1 }
 0x5dd   :  { %v8657_v16 = vadd.f32 %v2624_v41, %v2498_v37  ;;  %v2812_v54 = vmul.f32 1.442695, %v2773_v8  ;;  %v8662_v38 = vadd.f32 %v2733_v59, %v2494_v46  ;;  %v2816_v30 = vmul.f32 1.442695, %v2775_v56 }
 0x5de   :  { %6328 = vpow2.f32 %v2810_v24  ;;  %v2776_v44 = vmin.f32 %v8654_v21, 0.0  ;;  %v8672_v61 = vadd.f32 %v2626_v5, %v2498_v37  ;;  %vm2931_vm9 = vcmp.gt.f32.partialorder %v8631_v18, 0.0 }
 0x5df   :  { %v8659_v51 = vpop.f32.mrb[72].mxu0  ;;  %6330 = vpow2.f32 %v2808_v57  ;;  %v2737_v2 = vpop.f32.mrb[70].mxu1  ;;  %v2778_v12 = vmin.f32 %v8657_v16, 0.0  ;;  %v2777_v10 = vmin.f32 %v8662_v38, 0.0  ;;  %vm2933_vm10 = vcmp.gt.f32.partialorder %v8645_v28, 0.0 }
 0x5e0   :  { %v6319_v4 = vpop.eup %6318  ;;  %v8664_v1 = vpop.f32.mrb[73].mxu0  ;;  %6332 = vpow2.f32 %v2814_v9  ;;  %v2818_v58 = vmul.f32 1.442695, %v2776_v44  ;;  %v8667_v26 = vadd.f32 %v2737_v2, %v2498_v37  ;;  %v2779_v40 = vmin.f32 %v8672_v61, 0.0 }
 0x5e1   :  { %v5374_v63 = vadd.f32 -1.0, %v6319_v4  ;;  %v2739_v35 = vpop.f32.mrb[71].mxu1  ;;  %v6321_v25 = vpop.eup %6320  ;;  %v2822_v11 = vmul.f32 1.442695, %v2778_v12  ;;  %vm2934_vm11 = vcmp.gt.f32.partialorder %v8643_v15, 0.0  ;;  %vm2936_vm12 = vcmp.gt.f32.partialorder %v8654_v21, 0.0 }
 0x5e2   :  { %6334 = vpow2.f32 %v2818_v58  ;;  %v2780_v49 = vmin.f32 %v8667_v26, 0.0  ;;  %v8683_v34 = vadd.f32 %v2739_v35, %v2498_v37  ;;  %v5375_v46 = vadd.f32 -1.0, %v6321_v25 }
 0x5e3   :  { %v2894_v3 = vmul.f32 1.6732632, %v5374_v63  ;;  %v8669_v27 = vpop.f32.mrb[74].mxu0  ;;  %6336 = vpow2.f32 %v2812_v54  ;;  %v8674_v29 = vpop.f32.mrb[72].mxu1  ;;  %v2824_v44 = vmul.f32 1.442695, %v2779_v40 }
 0x5e4   :  { %v6323_v17 = vpop.eup %6322  ;;  %v8676_v0 = vpop.f32.mrb[75].mxu0  ;;  %6338 = vpow2.f32 %v2822_v11  ;;  %v2826_v45 = vmul.f32 1.442695, %v2780_v49  ;;  %v2781_v8 = vmin.f32 %v8683_v34, 0.0  ;;  %v2895_v24 = vmul.f32 1.6732632, %v5375_v46 }
 0x5e5   :  { %v6325_v53 = vpop.eup %6324  ;;  %v5378_v43 = vadd.f32 -1.0, %v6323_v17  ;;  %v8680_v32 = vpop.f32.mrb[73].mxu1  ;;  %v2958_v6 = vsel %vm2926_vm2, %v8617_v62, %v2894_v3  ;;  %6340 = vpow2.f32 %v2816_v30  ;;  %v2820_v62 = vmul.f32 1.442695, %v2777_v10 }
 0x5e6   :  { %v5376_v60 = vadd.f32 -1.0, %v6325_v53  ;;  %v6327_v7 = vpop.eup %6326  ;;  %v8688_v42 = vmul.f32 1.050701, %v2958_v6  ;;  %6342 = vpow2.f32 %v2826_v45  ;;  %v2828_v35 = vmul.f32 1.442695, %v2781_v8  ;;  %v2502_v46 = vpop.permute.xlu0 %2501 }
 0x5e7   :  { %v2898_v20 = vmul.f32 1.6732632, %v5378_v43  ;;  %v8691_v55 = vpop.f32.mrb[74].mxu1  ;;  %v5377_v48 = vadd.f32 -1.0, %v6327_v7  ;;  %6344 = vpow2.f32 %v2820_v62  ;;  %v2959_v30 = vsel %vm2927_vm3, %v8621_v33, %v2895_v24 }
 0x5e8   :  { %v2896_v39 = vmul.f32 1.6732632, %v5376_v60  ;;  %v6329_v36 = vpop.eup %6328  ;;  %v8696_v14 = vpop.f32.mrb[75].mxu1  ;;  %6346 = vpow2.f32 %v2824_v44  ;;  %vm2938_vm13 = vcmp.gt.f32.partialorder %v8657_v16, 0.0  ;;  %vm2940_vm14 = vcmp.gt.f32.partialorder %v8667_v26, 0.0 }
 0x5e9   :  { %v2962_v19 = vsel %vm2930_vm5, %v8625_v47, %v2898_v20  ;;  %v6331_v22 = vpop.eup %6330  ;;  %v5380_v57 = vadd.f32 -1.0, %v6329_v36  ;;  %v8700_v47 = vpop.f32.mrb[76].mxu0  ;;  %v2897_v12 = vmul.f32 1.6732632, %v5377_v48  ;;  %v8732_v20 = vmul.f32 1.050701, %v2959_v30 }
 0x5ea   :  { %v8693_v41 = vmul.f32 1.050701, %v2962_v19  ;;  %v6333_v5 = vpop.eup %6332  ;;  %v2960_v9 = vsel %vm2928_vm6, %v8629_v23, %v2896_v39  ;;  %v8707_v54 = vpop.f32.mrb[77].mxu0  ;;  %v5379_v2 = vadd.f32 -1.0, %v6331_v22  ;;  %6348 = vpow2.f32 %v2828_v35 }
 0x5eb   :  { %v2900_v37 = vmul.f32 1.6732632, %v5380_v57  ;;  %v8705_v4 = vpop.f32.mrb[76].mxu1  ;;  %v5382_v63 = vadd.f32 -1.0, %v6333_v5  ;;  %v8714_v3 = vpop.f32.mrb[78].mxu0  ;;  %v2961_v45 = vsel %vm2929_vm7, %v8633_v52, %v2897_v12  ;;  %v8743_v19 = vadd.f32 %v8659_v51, %v2502_v46 }
 0x5ec   :  { %v5908_v59 = vpack.c.bf16 %v8693_v41, %v8688_v42  ;;  %v6335_v56 = vpop.eup %6334  ;;  %v8712_v25 = vpop.f32.mrb[77].mxu1  ;;  %v8716_v17 = vmul.f32 1.050701, %v2960_v9  ;;  %v2899_v6 = vmul.f32 1.6732632, %v5379_v2  ;;  %v8748_v48 = vadd.f32 %v8674_v29, %v2502_v46 }
 0x5ed   :  { %v6337_v58 = vpop.eup %6336  ;;  %v2964_v23 = vsel %vm2932_vm8, %v8641_v31, %v2900_v37  ;;  %v2902_v43 = vmul.f32 1.6732632, %v5382_v63  ;;  %v5384_v31 = vadd.f32 -1.0, %v6335_v56  ;;  %v8730_v33 = vpop.f32.mrb[79].mxu0  ;;  %v8751_v57 = vadd.f32 %v8664_v1, %v2502_v46 }
 0x5ee   :  { %v6339_v11 = vpop.eup %6338  ;;  %v8721_v53 = vmul.f32 1.050701, %v2964_v23  ;;  %v5381_v60 = vadd.f32 -1.0, %v6337_v58  ;;  %v8754_v8 = vadd.f32 %v8680_v32, %v2502_v46  ;;  %v2782_v24 = vmin.f32 %v8743_v19, 0.0  ;;  %v2506_v23 = vpop.permute.xlu1 %2505 }
 0x5ef   :  { %v5386_v10 = vadd.f32 -1.0, %v6339_v11  ;;  %v8728_v7 = vpop.f32.mrb[78].mxu1  ;;  %v6341_v39 = vpop.eup %6340  ;;  %v2966_v40 = vsel %vm2934_vm11, %v8643_v15, %v2902_v43  ;;  %v2904_v22 = vmul.f32 1.6732632, %v5384_v31  ;;  %v2963_v15 = vsel %vm2931_vm9, %v8631_v18, %v2899_v6 }
 0x5f0   :  { %v5924_v49 = vpack.c.bf16 %v8721_v53, %v8716_v17  ;;  %v8745_v62 = vpop.f32.mrb[79].mxu1  ;;  %v6343_v52 = vpop.eup %6342  ;;  %v2901_v5 = vmul.f32 1.6732632, %v5381_v60  ;;  %v8763_v29 = vmul.f32 1.050701, %v2966_v40  ;;  %v2784_v32 = vmin.f32 %v8748_v48, 0.0 }
 0x5f1   :  { %v2906_v36 = vmul.f32 1.6732632, %v5386_v10  ;;  %v5388_v1 = vadd.f32 -1.0, %v6343_v52  ;;  %v5383_v37 = vadd.f32 -1.0, %v6341_v39  ;;  %vm2935_vm15 = vcmp.gt.f32.partialorder %v8650_v13, 0.0  ;;  %v6345_v2 = vpop.eup %6344  ;;  %v2510_v52 = vpop.permute.xlu0 %2509 }
 0x5f2   :  { %v2830_v44 = vmul.f32 1.442695, %v2782_v24  ;;  %v2783_v18 = vmin.f32 %v8751_v57, 0.0  ;;  %v2785_v56 = vmin.f32 %v8754_v8, 0.0  ;;  %v2834_v12 = vmul.f32 1.442695, %v2784_v32  ;;  %v6347_v43 = vpop.eup %6346 }
 0x5f3   :  { %v2970_v51 = vsel %vm2938_vm13, %v8657_v16, %v2906_v36  ;;  %v2968_v16 = vsel %vm2936_vm12, %v8654_v21, %v2904_v22  ;;  %v2908_v58 = vmul.f32 1.6732632, %v5388_v1  ;;  %v2965_v35 = vsel %vm2933_vm10, %v8645_v28, %v2901_v5 }
 0x5f4   :  { %v8765_v9 = vmul.f32 1.050701, %v2970_v51  ;;  %6350 = vpow2.f32 %v2830_v44  ;;  %v2832_v11 = vmul.f32 1.442695, %v2783_v18  ;;  %v2836_v30 = vmul.f32 1.442695, %v2785_v56  ;;  %v6349_v46 = vpop.eup %6348 }
 0x5f5   :  { %v2972_v31 = vsel %vm2940_vm14, %v8667_v26, %v2908_v58  ;;  %6352 = vpow2.f32 %v2834_v12  ;;  %v8783_v21 = vadd.f32 %v8669_v27, %v2506_v23  ;;  %v8786_v10 = vadd.f32 %v8691_v55, %v2506_v23 }
 0x5f6   :  { %v5912_v63 = vpack.c.bf16 %v8765_v9, %v8763_v29  ;;  %v8788_v6 = vmul.f32 1.050701, %v2968_v16  ;;  %vm2937_vm1 = vcmp.gt.f32.partialorder %v8662_v38, 0.0  ;;  %v8791_v28 = vmul.f32 1.050701, %v2972_v31 }
 0x5f7   :  { %6354 = vpow2.f32 %v2832_v11  ;;  %v8794_v60 = vadd.f32 %v8676_v0, %v2506_v23  ;;  %v2903_v39 = vmul.f32 1.6732632, %v5383_v37  ;;  %v5385_v26 = vadd.f32 -1.0, %v6345_v2 }
 0x5f8   :  { %vm2939_vm2 = vcmp.gt.f32.partialorder %v8672_v61, 0.0  ;;  %6356 = vpow2.f32 %v2836_v30  ;;  %v2786_v27 = vmin.f32 %v8783_v21, 0.0  ;;  %v8798_v55 = vmul.f32 1.050701, %v2961_v45  ;;  %v8831_v30 = vpop.permute.xlu1 %2513 }
 0x5f9   :  { %v5928_v40 = vpack.c.bf16 %v8791_v28, %v8788_v6  ;;  %v5387_v36 = vadd.f32 -1.0, %v6347_v43  ;;  %v2788_v22 = vmin.f32 %v8786_v10, 0.0  ;;  %v8803_v5 = vmul.f32 1.050701, %v2963_v15 }
 0x5fa   :  { %v8805_v0 = vmul.f32 1.050701, %v2965_v35  ;;  %v2838_v51 = vmul.f32 1.442695, %v2786_v27  ;;  %v8808_v24 = vadd.f32 %v8696_v14, %v2506_v23  ;;  %v5389_v1 = vadd.f32 -1.0, %v6349_v46 }
 0x5fb   :  { %v2842_v32 = vmul.f32 1.442695, %v2788_v22  ;;  %v2787_v45 = vmin.f32 %v8794_v60, 0.0  ;;  %v8812_v37 = vadd.f32 %v8700_v47, %v2510_v52  ;;  %v8817_v44 = vsel %vm2935_vm15, %v8650_v13, %v2903_v39 }
 0x5fc   :  { %v2905_v15 = vmul.f32 1.6732632, %v5385_v26  ;;  %6358 = vpow2.f32 %v2838_v51  ;;  %v2789_v18 = vmin.f32 %v8808_v24, 0.0  ;;  %v2907_v56 = vmul.f32 1.6732632, %v5387_v36 }
 0x5fd   :  { %6360 = vpow2.f32 %v2842_v32  ;;  %v2840_v14 = vmul.f32 1.442695, %v2787_v45  ;;  %v2790_v2 = vmin.f32 %v8812_v37, 0.0  ;;  %vm2941_vm3 = vcmp.gt.f32.partialorder %v8683_v34, 0.0 }
 0x5fe   :  { %v2844_v16 = vmul.f32 1.442695, %v2789_v18  ;;  %v8823_v47 = vadd.f32 %v8705_v4, %v2510_v52  ;;  %v8826_v58 = vadd.f32 %v8707_v54, %v2510_v52  ;;  %v6351_v13 = vpop.eup %6350  ;;  %v2909_v12 = vmul.f32 1.6732632, %v5389_v1 }
 0x5ff   :  { %6362 = vpow2.f32 %v2840_v14  ;;  %v2846_v23 = vmul.f32 1.442695, %v2790_v2  ;;  %v8829_v35 = vadd.f32 %v8712_v25, %v2510_v52  ;;  %v6353_v11 = vpop.eup %6352  ;;  %v8836_v43 = vsel %vm2937_vm1, %v8662_v38, %v2905_v15 }
 0x600   :  { %v5390_v4 = vadd.f32 -1.0, %v6351_v13  ;;  %6364 = vpow2.f32 %v2844_v16  ;;  %v2792_v54 = vmin.f32 %v8823_v47, 0.0  ;;  %v2971_v46 = vsel %vm2939_vm2, %v8672_v61, %v2907_v56 }
 0x601   :  { %v6355_v31 = vpop.eup %6354  ;;  %v5392_v39 = vadd.f32 -1.0, %v6353_v11  ;;  %v2791_v25 = vmin.f32 %v8826_v58, 0.0  ;;  %v8845_v26 = vadd.f32 %v8714_v3, %v8831_v30  ;;  %6366 = vpow2.f32 %v2846_v23 }
 0x602   :  { %v6357_v27 = vpop.eup %6356  ;;  %v2910_v36 = vmul.f32 1.6732632, %v5390_v4  ;;  %v5391_v38 = vadd.f32 -1.0, %v6355_v31  ;;  %v2850_v22 = vmul.f32 1.442695, %v2792_v54  ;;  %v2973_v52 = vsel %vm2941_vm3, %v8683_v34, %v2909_v12 }
 0x603   :  { %vm2942_vm5 = vcmp.gt.f32.partialorder %v8743_v19, 0.0  ;;  %v2912_v51 = vmul.f32 1.6732632, %v5392_v39  ;;  %v2793_v61 = vmin.f32 %v8829_v35, 0.0  ;;  %vm2944_vm6 = vcmp.gt.f32.partialorder %v8748_v48, 0.0 }
 0x604   :  { %v2974_v1 = vsel %vm2942_vm5, %v8743_v19, %v2910_v36  ;;  %v5393_v3 = vadd.f32 -1.0, %v6357_v27  ;;  %vm2946_vm7 = vcmp.gt.f32.partialorder %v8783_v21, 0.0  ;;  %v8855_v32 = vmul.f32 1.050701, %v2971_v46 }
 0x605   :  { %vm2948_vm8 = vcmp.gt.f32.partialorder %v8786_v10, 0.0  ;;  %vm2947_vm9 = vcmp.gt.f32.partialorder %v8794_v60, 0.0  ;;  %v2848_v45 = vmul.f32 1.442695, %v2791_v25  ;;  %v8859_v15 = vmul.f32 1.050701, %v2973_v52 }
 0x606   :  { %v6359_v34 = vpop.eup %6358  ;;  %v2911_v18 = vmul.f32 1.6732632, %v5391_v38  ;;  %vm2943_vm10 = vcmp.gt.f32.partialorder %v8751_v57, 0.0  ;;  %vm2949_vm11 = vcmp.gt.f32.partialorder %v8808_v24, 0.0  ;;  %6368 = vpow2.f32 %v2850_v22 }
 0x607   :  { %v2794_v19 = vmin.f32 %v8845_v26, 0.0  ;;  %v6361_v56 = vpop.eup %6360  ;;  %v8864_v14 = vmul.f32 1.050701, %v2974_v1  ;;  %v2976_v2 = vsel %vm2944_vm6, %v8748_v48, %v2912_v51  ;;  %vm2945_vm12 = vcmp.gt.f32.partialorder %v8754_v8, 0.0 }
 0x608   :  { %v5394_v16 = vadd.f32 -1.0, %v6359_v34  ;;  %v2852_v13 = vmul.f32 1.442695, %v2793_v61  ;;  %v2913_v12 = vmul.f32 1.6732632, %v5393_v3  ;;  %v5396_v23 = vadd.f32 -1.0, %v6361_v56 }
 0x609   :  { %v2854_v11 = vmul.f32 1.442695, %v2794_v19  ;;  %v8872_v4 = vadd.f32 %v8728_v7, %v8831_v30  ;;  %v6363_v54 = vpop.eup %6362  ;;  %6370 = vpow2.f32 %v2848_v45  ;;  %v8876_v46 = vadd.f32 %v8730_v33, %v8831_v30 }
 0x60a   :  { %v2914_v31 = vmul.f32 1.6732632, %v5394_v16  ;;  %v5906_v48 = vpack.c.bf16 %v8803_v5, %v8732_v20  ;;  %v6365_v39 = vpop.eup %6364  ;;  %v2916_v25 = vmul.f32 1.6732632, %v5396_v23  ;;  %v5395_v27 = vadd.f32 -1.0, %v6363_v54 }
 0x60b   :  { %6372 = vpow2.f32 %v2854_v11  ;;  %v2796_v36 = vmin.f32 %v8872_v4, 0.0  ;;  %v8881_v38 = vmul.f32 1.050701, %v2976_v2  ;;  %v5397_v22 = vadd.f32 -1.0, %v6365_v39  ;;  %v6367_v33 = vpop.eup %6366 }
 0x60c   :  { %v2978_v7 = vsel %vm2946_vm7, %v8783_v21, %v2914_v31  ;;  %v2795_v52 = vmin.f32 %v8876_v46, 0.0  ;;  %5907 = vmatprep.subr.bf16.mxu0 %v5906_v48  ;;  %v2980_v20 = vsel %vm2948_vm8, %v8786_v10, %v2916_v25  ;;  %v2915_v5 = vmul.f32 1.6732632, %v5395_v27 }
 0x60d   :  { %v3010_v51 = vmul.f32 1.050701, %v2978_v7  ;;  %6374 = vpow2.f32 %v2852_v13  ;;  %5909 = vmatpush1.bf16.msra.mxu0 %v5908_v59  ;;  %v3012_v61 = vmul.f32 1.050701, %v2980_v20  ;;  %v2917_v1 = vmul.f32 1.6732632, %v5397_v22 }
 0x60e   :  { %v2858_v3 = vmul.f32 1.442695, %v2796_v36  ;;  %v5922_v21 = vpack.c.bf16 %v8805_v0, %v8798_v55  ;;  %v2979_v34 = vsel %vm2947_vm9, %v8794_v60, %v2915_v5  ;;  %v2856_v19 = vmul.f32 1.442695, %v2795_v52 }
 0x60f   :  { %v5916_v45 = vpack.c.bf16 %v3010_v51, %v8864_v14  ;;  %v8901_v10 = vadd.f32 %v8745_v62, %v8831_v30  ;;  %v2975_v42 = vsel %vm2943_vm10, %v8751_v57, %v2911_v18  ;;  %v5932_v41 = vpack.c.bf16 %v3012_v61, %v8881_v38 }
 0x610   :  { %v2981_v59 = vsel %vm2949_vm11, %v8808_v24, %v2917_v1  ;;  %v5398_v55 = vadd.f32 -1.0, %v6367_v33  ;;  %5923 = vmatprep.subr.bf16.mxu1 %v5922_v21  ;;  %v6369_v0 = vpop.eup %6368  ;;  %v2977_v60 = vsel %vm2945_vm12, %v8754_v8, %v2913_v12  ;;  %v3011_v56 = vmul.f32 1.050701, %v2979_v34 }
 0x611   :  { %6376 = vpow2.f32 %v2858_v3  ;;  %5925 = vmatpush1.bf16.msra.mxu1 %v5924_v49  ;;  %v2999_v62 = vmul.f32 1.050701, %v8817_v44  ;;  %v3001_v57 = vmul.f32 1.050701, %v8836_v43  ;;  %v3013_v30 = vmul.f32 1.050701, %v2981_v59 }
 0x612   :  { %6378 = vpow2.f32 %v2856_v19  ;;  %v3007_v24 = vmul.f32 1.050701, %v2975_v42  ;;  %v2797_v18 = vmin.f32 %v8901_v10, 0.0  ;;  %v3009_v2 = vmul.f32 1.050701, %v2977_v60  ;;  %v5408_v19 = vld [vmem:[%s10420_s1 + $0x150] sm:$0xff] }
 0x613   :  { %v6371_v14 = vpop.eup %6370  ;;  %v2918_v16 = vmul.f32 1.6732632, %v5398_v55  ;;  %v5910_v8 = vpack.c.bf16 %v8855_v32, %v2999_v62  ;;  %v5926_v13 = vpack.c.bf16 %v8859_v15, %v3001_v57  ;;  %v5400_v53 = vadd.f32 -1.0, %v6369_v0  ;;  %v5410_v42 = vld [vmem:[%s10420_s1 + $0x160] sm:$0xff]  ;;  %v5412_v59 = vld [vmem:[%s10420_s1 + $0x170] sm:$0xff]  ;;  %v5413_v55 = vld [vmem:[%s10420_s1 + $0x178] sm:$0xff]  ;;  %v3033_v0 = vpop.permute.xlu0 %3032 }
 0x614   :  { %v2860_v23 = vmul.f32 1.442695, %v2797_v18  ;;  %v5914_v17 = vpack.c.bf16 %v3011_v56, %v3007_v24  ;;  %v5930_v44 = vpack.c.bf16 %v3013_v30, %v3009_v2  ;;  %vm2950_vm13 = vcmp.gt.f32.partialorder %v8812_v37, 0.0  ;;  %v3037_v62 = vpop.permute.xlu1 %3036  ;;  %v9004_v24 = vld [vmem:[%s10421_s2] sm:$0xff]  ;;  %v9010_v18 = vld [vmem:[%s10421_s2 + $0x8] sm:$0xff] }
 0x615   :  { %v6373_v12 = vpop.eup %6372  ;;  %5911 = vmatprep.subr.bf16.mxu0 %v5910_v8  ;;  %5927 = vmatprep.subr.bf16.mxu1 %v5926_v13  ;;  %v5399_v11 = vadd.f32 -1.0, %v6371_v14  ;;  %v2982_v32 = vsel %vm2950_vm13, %v8812_v37, %v2918_v16  ;;  %vm2954_vm14 = vcmp.gt.f32.partialorder %v8845_v26, 0.0  ;;  %v2920_v54 = vmul.f32 1.6732632, %v5400_v53  ;;  %v9022_v53 = vld [vmem:[%s10421_s2 + $0x10] sm:$0xff] }
 0x616   :  { %v5402_v49 = vadd.f32 -1.0, %v6373_v12  ;;  %6380 = vpow2.f32 %v2860_v23  ;;  %5913 = vmatpush1.bf16.msra.mxu0 %v5912_v63  ;;  %5929 = vmatpush1.bf16.msra.mxu1 %v5928_v40  ;;  %v3014_v39 = vmul.f32 1.050701, %v2982_v32  ;;  %vm2952_vm15 = vcmp.gt.f32.partialorder %v8823_v47, 0.0 }
 0x617   :  { %v6375_v43 = vpop.eup %6374  ;;  %5915 = vmatprep.subr.bf16.mxu0 %v5914_v17  ;;  %5931 = vmatprep.subr.bf16.mxu1 %v5930_v44  ;;  %v2919_v25 = vmul.f32 1.6732632, %v5399_v11  ;;  %v2984_v40 = vsel %vm2952_vm15, %v8823_v47, %v2920_v54  ;;  %vm2951_vm1 = vcmp.gt.f32.partialorder %v8826_v58, 0.0  ;;  %vm2956_vm2 = vcmp.gt.f32.partialorder %v8872_v4, 0.0 }
 0x618   :  { %v2922_v15 = vmul.f32 1.6732632, %v5402_v49  ;;  %v5401_v9 = vadd.f32 -1.0, %v6375_v43  ;;  %vm2955_vm3 = vcmp.gt.f32.partialorder %v8876_v46, 0.0  ;;  %v3016_v52 = vmul.f32 1.050701, %v2984_v40 }
 0x619   :  { %vm2953_vm5 = vcmp.gt.f32.partialorder %v8829_v35, 0.0  ;;  %vm2957_vm6 = vcmp.gt.f32.partialorder %v8901_v10, 0.0  ;;  %v6609_v56 = vmov 6   ;;  %v9028_v49 = vld [vmem:[%s10421_s2 + $0x20] sm:$0xff] }
 0x61a   :  { %v2986_v31 = vsel %vm2954_vm14, %v8845_v26, %v2922_v15  ;;  %5917 = vmatpush1.bf16.msra.mxu0 %v5916_v45  ;;  %5933 = vmatpush1.bf16.msra.mxu1 %v5932_v41  ;;  %v2983_v26 = vsel %vm2951_vm1, %v8826_v58, %v2919_v25  ;;  %v2921_v38 = vmul.f32 1.6732632, %v5401_v9  ;;  %v5411_v41 = vld [vmem:[%s10420_s1 + $0x168] sm:$0xff]  ;;  %v3041_v15 = vpop.permute.xlu1 %3040 }
 0x61b   :  { %v6377_v48 = vpop.eup %6376  ;;  %v3018_v27 = vmul.f32 1.050701, %v2986_v31  ;;  %v3015_v20 = vmul.f32 1.050701, %v2983_v26  ;;  %6056 = vset.pattern.permute.xlu1 %v6609_v56  ;;  %6057 = vset.pattern.permute.xlu0 %v6609_v56 }
 0x61c   :  { %v6379_v29 = vpop.eup %6378  ;;  %v5404_v63 = vadd.f32 -1.0, %v6377_v48  ;;  %v2985_v58 = vsel %vm2953_vm5, %v8829_v35, %v2921_v38  ;;  %v5407_v35 = vld [vmem:[%s10420_s1 + $0x148] sm:$0xff]  ;;  %3579 = vperm.xlu1 %6056, %v9004_v24   ;;  %3583 = vperm.xlu0 %6057, %v9010_v18  }
 0x61d   :  { %v5920_v6 = vpack.c.bf16 %v3018_v27, %v3014_v39  ;;  %v5403_v28 = vadd.f32 -1.0, %v6379_v29  ;;  %v3017_v21 = vmul.f32 1.050701, %v2985_v58  ;;  %v9067_v58 = vld [vmem:[%s10421_s2 + $0x28] sm:$0xff] }
 0x61e   :  { %v2924_v37 = vmul.f32 1.6732632, %v5404_v63  ;;  %v9044_v63 = vld [vmem:[%s10421_s2 + $0x18] sm:$0xff] }
 0x61f   :  { %v2923_v36 = vmul.f32 1.6732632, %v5403_v28 }
 0x620   :  { %v2988_v7 = vsel %vm2956_vm2, %v8872_v4, %v2924_v37  ;;  %v6381_v22 = vpop.eup %6380  ;;  %3587 = vperm.xlu1 %6056, %v9022_v53   ;;  %3595 = vperm.xlu0 %6057, %v9028_v49  }
 0x621   :  { %v3020_v33 = vmul.f32 1.050701, %v2988_v7  ;;  %v2987_v51 = vsel %vm2955_vm3, %v8876_v46, %v2923_v36  ;;  %v5405_v5 = vadd.f32 -1.0, %v6381_v22  ;;  %v5406_v46 = vld [vmem:[%s10420_s1 + $0x140] sm:$0xff] }
 0x622   :  { %v3019_v47 = vmul.f32 1.050701, %v2987_v51 }
 0x623   :  { %v5936_v61 = vpack.c.bf16 %v3020_v33, %v3016_v52  ;;  %v2925_v1 = vmul.f32 1.6732632, %v5405_v5 }
 0x624   :  { %v5918_v3 = vpack.c.bf16 %v3019_v47, %v3015_v20  ;;  %3591 = vperm.xlu1 %6056, %v9044_v63  }
 0x625   :  { %v2989_v4 = vsel %vm2957_vm6, %v8901_v10, %v2925_v1  ;;  %v5409_v10 = vld [vmem:[%s10420_s1 + $0x158] sm:$0xff] }
 0x626   :  { %5919 = vmatprep.subr.bf16.mxu0 %v5918_v3  ;;  %v3021_v45 = vmul.f32 1.050701, %v2989_v4 }
 0x627   :  { %5921 = vmatpush1.bf16.msra.mxu0 %v5920_v6  ;;  %v9050_v6 = vld [vmem:[%s10421_s2 + $0x30] sm:$0xff] }
 0x628   :  { %v5934_v34 = vpack.c.bf16 %v3021_v45, %v3017_v21  ;;  %3603 = vperm.xlu0 %6057, %v9050_v6   ;;  %3599 = vperm.xlu1 %6056, %v9067_v58   ;;  %v3045_v45 = vpop.permute.xlu0 %3044 }
 0x62a   :  { %5414 = vmatmul.mubr.msk.f32.vlgmr.msra.gmra.mrb[80].mxu0 %vm874_vm4, %v5406_v46  ;;  %5935 = vmatprep.subr.bf16.mxu1 %v5934_v34 }
 0x62b   :  { %3157 = vmatprep.mubr.f32.mxu0 %v6603_v50  ;;  %5937 = vmatpush1.bf16.msra.mxu1 %v5936_v61 }
 0x62e   :  { %5415 = vmatmul.mubr.msk.f32.gmra.mrb[82].mxu0 %vm874_vm4, %v5407_v35  ;;  %5422 = vmatmul.mubr.msk.f32.vlgmr.msra.gmra.mrb[80].mxu1 %vm874_vm4, %v5406_v46 }
 0x62f   :  { %3163 = vmatprep.mubr.f32.mxu0 %v6603_v50  ;;  %3270 = vmatprep.mubr.f32.mxu1 %v6603_v50 }
 0x632   :  { %5416 = vmatmul.mubr.msk.f32.gmra.mrb[84].mxu0 %vm874_vm4, %v5408_v19  ;;  %5423 = vmatmul.mubr.msk.f32.gmra.mrb[82].mxu1 %vm874_vm4, %v5407_v35 }
 0x633   :  { %3169 = vmatprep.mubr.f32.mxu0 %v6603_v50  ;;  %3276 = vmatprep.mubr.f32.mxu1 %v6603_v50 }
 0x636   :  { %5417 = vmatmul.mubr.msk.f32.gmra.mrb[86].mxu0 %vm874_vm4, %v5409_v10  ;;  %5424 = vmatmul.mubr.msk.f32.gmra.mrb[84].mxu1 %vm874_vm4, %v5408_v19 }
 0x637   :  { %3175 = vmatprep.mubr.f32.mxu0 %v6603_v50  ;;  %3282 = vmatprep.mubr.f32.mxu1 %v6603_v50 }
 0x63a   :  { %5418 = vmatmul.mubr.msk.f32.gmra.mrb[88].mxu0 %vm874_vm4, %v5410_v42  ;;  %5425 = vmatmul.mubr.msk.f32.gmra.mrb[86].mxu1 %vm874_vm4, %v5409_v10 }
 0x63b   :  { %3181 = vmatprep.mubr.f32.mxu0 %v6603_v50  ;;  %3288 = vmatprep.mubr.f32.mxu1 %v6603_v50 }
 0x63e   :  { %5419 = vmatmul.mubr.msk.f32.gmra.mrb[90].mxu0 %vm874_vm4, %v5411_v41  ;;  %5426 = vmatmul.mubr.msk.f32.gmra.mrb[88].mxu1 %vm874_vm4, %v5410_v42 }
 0x63f   :  { %3187 = vmatprep.mubr.f32.mxu0 %v6603_v50  ;;  %3294 = vmatprep.mubr.f32.mxu1 %v6603_v50 }
 0x642   :  { %5420 = vmatmul.mubr.msk.f32.gmra.mrb[92].mxu0 %vm874_vm4, %v5412_v59  ;;  %5427 = vmatmul.mubr.msk.f32.gmra.mrb[90].mxu1 %vm874_vm4, %v5411_v41 }
 0x643   :  { %3193 = vmatprep.mubr.f32.mxu0 %v6603_v50  ;;  %3300 = vmatprep.mubr.f32.mxu1 %v6603_v50 }
 0x646   :  { %5421 = vmatmul.mubr.msk.f32.gmra.mrb[94].mxu0 %vm874_vm4, %v5413_v55  ;;  %5428 = vmatmul.mubr.msk.f32.gmra.mrb[92].mxu1 %vm874_vm4, %v5412_v59 }
 0x647   :  { %3698 = vmatprep.mubr.f32.mxu0 %v6603_v50  ;;  %3306 = vmatprep.mubr.f32.mxu1 %v6603_v50 }
 0x64a   :  { %5429 = vmatmul.mubr.msk.f32.gmra.mrb[94].mxu1 %vm874_vm4, %v5413_v55 }
 0x64b   :  { %3811 = vmatprep.mubr.f32.mxu1 %v6603_v50 }
 0x6fd   :  { %v3153_v60 = vpop.f32.mrb[80].mxu0 }
 0x6fe   :  { %v8999_v57 = vadd.f32 %v3153_v60, %v3033_v0  ;;  %v3155_v30 = vpop.f32.mrb[81].mxu0 }
 0x6ff   :  { %v9013_v14 = vadd.f32 %v3155_v30, %v3033_v0 }
 0x700   :  { %v3313_v2 = vmin.f32 %v8999_v57, 0.0  ;;  %vm3473_vm7 = vcmp.gt.f32.partialorder %v8999_v57, 0.0 }
 0x701   :  { %v3314_v16 = vmin.f32 %v9013_v14, 0.0  ;;  %v3159_v8 = vpop.f32.mrb[82].mxu0  ;;  %v3266_v12 = vpop.f32.mrb[80].mxu1  ;;  %vm3474_vm10 = vcmp.gt.f32.partialorder %v9013_v14, 0.0 }
 0x702   :  { %v3345_v13 = vmul.f32 1.442695, %v3313_v2  ;;  %v9017_v23 = vadd.f32 %v3159_v8, %v3037_v62  ;;  %v3161_v17 = vpop.f32.mrb[83].mxu0  ;;  %v9031_v44 = vadd.f32 %v3266_v12, %v3033_v0  ;;  %v3268_v11 = vpop.f32.mrb[81].mxu1 }
 0x703   :  { %v3347_v43 = vmul.f32 1.442695, %v3314_v16  ;;  %v9033_v32 = vadd.f32 %v3161_v17, %v3037_v62  ;;  %v9035_v54 = vadd.f32 %v3268_v11, %v3033_v0  ;;  %v9085_v0 = vld [vmem:[%s10421_s2 + $0x38] sm:$0xff] }
 0x704   :  { %6382 = vpow2.f32 %v3345_v13  ;;  %v3317_v31 = vmin.f32 %v9017_v23, 0.0  ;;  %v3315_v48 = vmin.f32 %v9031_v44, 0.0  ;;  %3607 = vperm.xlu1 %6056, %v9085_v0   ;;  %vm3477_vm8 = vcmp.gt.f32.partialorder %v9017_v23, 0.0 }
 0x705   :  { %v3165_v39 = vpop.f32.mrb[84].mxu0  ;;  %v3316_v25 = vmin.f32 %v9035_v54, 0.0  ;;  %v3272_v29 = vpop.f32.mrb[82].mxu1  ;;  %v3318_v9 = vmin.f32 %v9033_v32, 0.0  ;;  %6384 = vpow2.f32 %v3347_v43  ;;  %vm3475_vm9 = vcmp.gt.f32.partialorder %v9031_v44, 0.0 }
 0x706   :  { %v3353_v27 = vmul.f32 1.442695, %v3317_v31  ;;  %v3349_v28 = vmul.f32 1.442695, %v3315_v48  ;;  %v9053_v40 = vadd.f32 %v3272_v29, %v3037_v62  ;;  %v3274_v37 = vpop.f32.mrb[83].mxu1  ;;  %v9055_v26 = vadd.f32 %v3165_v39, %v3041_v15  ;;  %v3167_v36 = vpop.f32.mrb[85].mxu0 }
 0x707   :  { %v3351_v38 = vmul.f32 1.442695, %v3316_v25  ;;  %v9057_v7 = vadd.f32 %v3274_v37, %v3037_v62  ;;  %v3355_v51 = vmul.f32 1.442695, %v3318_v9  ;;  %v9062_v5 = vadd.f32 %v3167_v36, %v3041_v15 }
 0x708   :  { %6386 = vpow2.f32 %v3353_v27  ;;  %v3319_v22 = vmin.f32 %v9053_v40, 0.0  ;;  %v3321_v52 = vmin.f32 %v9055_v26, 0.0  ;;  %vm3476_vm11 = vcmp.gt.f32.partialorder %v9035_v54, 0.0 }
 0x709   :  { %6388 = vpow2.f32 %v3349_v28  ;;  %v3171_v33 = vpop.f32.mrb[86].mxu0  ;;  %v3320_v20 = vmin.f32 %v9057_v7, 0.0  ;;  %v3278_v47 = vpop.f32.mrb[84].mxu1  ;;  %v3322_v42 = vmin.f32 %v9062_v5, 0.0  ;;  %vm3479_vm12 = vcmp.gt.f32.partialorder %v9053_v40, 0.0 }
 0x70a   :  { %v3173_v61 = vpop.f32.mrb[87].mxu0  ;;  %6390 = vpow2.f32 %v3351_v38  ;;  %v3357_v1 = vmul.f32 1.442695, %v3319_v22  ;;  %v3361_v3 = vmul.f32 1.442695, %v3321_v52  ;;  %v9070_v4 = vadd.f32 %v3278_v47, %v3041_v15  ;;  %v3280_v21 = vpop.f32.mrb[85].mxu1 }
 0x70b   :  { %v9073_v34 = vadd.f32 %v3171_v33, %v3045_v45  ;;  %v3359_v10 = vmul.f32 1.442695, %v3320_v20  ;;  %v9078_v41 = vadd.f32 %v3280_v21, %v3041_v15  ;;  %v3363_v43 = vmul.f32 1.442695, %v3322_v42 }
 0x70c   :  { %6392 = vpow2.f32 %v3357_v1  ;;  %v3323_v46 = vmin.f32 %v9070_v4, 0.0  ;;  %v9094_v11 = vadd.f32 %v3173_v61, %v3045_v45  ;;  %vm3478_vm13 = vcmp.gt.f32.partialorder %v9033_v32, 0.0 }
 0x70d   :  { %v9075_v35 = vpop.f32.mrb[88].mxu0  ;;  %6394 = vpow2.f32 %v3355_v51  ;;  %v3284_v59 = vpop.f32.mrb[86].mxu1  ;;  %v3325_v62 = vmin.f32 %v9073_v34, 0.0  ;;  %v3324_v25 = vmin.f32 %v9078_v41, 0.0  ;;  %vm3480_vm14 = vcmp.gt.f32.partialorder %v9057_v7, 0.0 }
 0x70e   :  { %v6383_v19 = vpop.eup %6382  ;;  %v9080_v55 = vpop.f32.mrb[89].mxu0  ;;  %6396 = vpow2.f32 %v3361_v3  ;;  %v3365_v56 = vmul.f32 1.442695, %v3323_v46  ;;  %v9089_v13 = vadd.f32 %v3284_v59, %v3045_v45  ;;  %v3326_v51 = vmin.f32 %v9094_v11, 0.0 }
 0x70f   :  { %v5430_v60 = vadd.f32 -1.0, %v6383_v19  ;;  %v3286_v30 = vpop.f32.mrb[87].mxu1  ;;  %v6385_v2 = vpop.eup %6384  ;;  %v3369_v8 = vmul.f32 1.442695, %v3325_v62  ;;  %vm3481_vm15 = vcmp.gt.f32.partialorder %v9055_v26, 0.0  ;;  %vm3483_vm1 = vcmp.gt.f32.partialorder %v9070_v4, 0.0 }
 0x710   :  { %6398 = vpow2.f32 %v3365_v56  ;;  %v3327_v27 = vmin.f32 %v9089_v13, 0.0  ;;  %v9105_v37 = vadd.f32 %v3286_v30, %v3045_v45  ;;  %v5431_v38 = vadd.f32 -1.0, %v6385_v2 }
 0x711   :  { %v3441_v16 = vmul.f32 1.6732632, %v5430_v60  ;;  %v9091_v12 = vpop.f32.mrb[90].mxu0  ;;  %6400 = vpow2.f32 %v3359_v10  ;;  %v9096_v15 = vpop.f32.mrb[88].mxu1  ;;  %v3371_v30 = vmul.f32 1.442695, %v3326_v51 }
 0x712   :  { %v6387_v17 = vpop.eup %6386  ;;  %v9098_v31 = vpop.f32.mrb[91].mxu0  ;;  %6402 = vpow2.f32 %v3369_v8  ;;  %v3373_v33 = vmul.f32 1.442695, %v3327_v27  ;;  %v3328_v19 = vmin.f32 %v9105_v37, 0.0  ;;  %v3442_v59 = vmul.f32 1.6732632, %v5431_v38 }
 0x713   :  { %v6389_v48 = vpop.eup %6388  ;;  %v5434_v39 = vadd.f32 -1.0, %v6387_v17  ;;  %v9102_v29 = vpop.f32.mrb[89].mxu1  ;;  %v3505_v9 = vsel %vm3473_vm7, %v8999_v57, %v3441_v16  ;;  %6404 = vpow2.f32 %v3363_v43  ;;  %v3367_v57 = vmul.f32 1.442695, %v3324_v25 }
 0x714   :  { %v5432_v28 = vadd.f32 -1.0, %v6389_v48  ;;  %v6391_v36 = vpop.eup %6390  ;;  %v9110_v47 = vmul.f32 1.050701, %v3505_v9  ;;  %6406 = vpow2.f32 %v3373_v33  ;;  %v3375_v25 = vmul.f32 1.442695, %v3328_v19 }
 0x715   :  { %v3445_v22 = vmul.f32 1.6732632, %v5434_v39  ;;  %v9113_v1 = vpop.f32.mrb[90].mxu1  ;;  %v5433_v21 = vadd.f32 -1.0, %v6391_v36  ;;  %6408 = vpow2.f32 %v3367_v57  ;;  %v3506_v38 = vsel %vm3474_vm10, %v9013_v14, %v3442_v59 }
 0x716   :  { %v3443_v52 = vmul.f32 1.6732632, %v5432_v28  ;;  %v6393_v20 = vpop.eup %6392  ;;  %v9118_v10 = vpop.f32.mrb[91].mxu1  ;;  %6410 = vpow2.f32 %v3371_v30  ;;  %vm3485_vm2 = vcmp.gt.f32.partialorder %v9073_v34, 0.0  ;;  %vm3487_vm3 = vcmp.gt.f32.partialorder %v9089_v13, 0.0 }
 0x717   :  { %v3509_v61 = vsel %vm3477_vm8, %v9017_v23, %v3445_v22  ;;  %v6395_v3 = vpop.eup %6394  ;;  %v5436_v46 = vadd.f32 -1.0, %v6393_v20  ;;  %v9122_v23 = vpop.f32.mrb[92].mxu0  ;;  %v3444_v39 = vmul.f32 1.6732632, %v5433_v21  ;;  %v9156_v21 = vmul.f32 1.050701, %v3506_v38 }
 0x718   :  { %v9115_v45 = vmul.f32 1.050701, %v3509_v61  ;;  %v6397_v42 = vpop.eup %6396  ;;  %v3507_v60 = vsel %vm3475_vm9, %v9031_v44, %v3443_v52  ;;  %v9131_v16 = vpop.f32.mrb[93].mxu0  ;;  %v5435_v17 = vadd.f32 -1.0, %v6395_v3  ;;  %6412 = vpow2.f32 %v3375_v25 }
 0x719   :  { %v3447_v62 = vmul.f32 1.6732632, %v5436_v46  ;;  %v9129_v2 = vpop.f32.mrb[92].mxu1  ;;  %v5438_v43 = vadd.f32 -1.0, %v6397_v42  ;;  %v9138_v9 = vpop.f32.mrb[94].mxu0  ;;  %v3508_v19 = vsel %vm3476_vm11, %v9035_v54, %v3444_v39  ;;  %vm3482_vm5 = vcmp.gt.f32.partialorder %v9062_v5, 0.0 }
 0x71a   :  { %v5940_v56 = vpack.c.bf16 %v9115_v45, %v9110_v47  ;;  %v6399_v8 = vpop.eup %6398  ;;  %v9136_v27 = vpop.f32.mrb[93].mxu1  ;;  %v9140_v36 = vmul.f32 1.050701, %v3507_v60  ;;  %v3446_v20 = vmul.f32 1.6732632, %v5435_v17  ;;  %vm3484_vm6 = vcmp.gt.f32.partialorder %v9078_v41, 0.0 }
 0x71b   :  { %v6401_v48 = vpop.eup %6400  ;;  %v3511_v44 = vsel %vm3479_vm12, %v9053_v40, %v3447_v62  ;;  %v3449_v52 = vmul.f32 1.6732632, %v5438_v43  ;;  %v5440_v40 = vadd.f32 -1.0, %v6399_v8  ;;  %v9154_v14 = vpop.f32.mrb[95].mxu0  ;;  %vm3486_vm7 = vcmp.gt.f32.partialorder %v9094_v11, 0.0 }
 0x71c   :  { %v6403_v28 = vpop.eup %6402  ;;  %v9145_v22 = vmul.f32 1.050701, %v3511_v44  ;;  %v5437_v61 = vadd.f32 -1.0, %v6401_v48  ;;  %v3049_v3 = vpop.permute.xlu1 %3048  ;;  %vm3488_vm8 = vcmp.gt.f32.partialorder %v9105_v37, 0.0 }
 0x71d   :  { %v5442_v33 = vadd.f32 -1.0, %v6403_v28  ;;  %v9152_v57 = vpop.f32.mrb[94].mxu1  ;;  %v6405_v46 = vpop.eup %6404  ;;  %v3513_v42 = vsel %vm3481_vm15, %v9055_v26, %v3449_v52  ;;  %v9167_v60 = vadd.f32 %v9075_v35, %v3049_v3  ;;  %v3451_v30 = vmul.f32 1.6732632, %v5440_v40 }
 0x71e   :  { %v5956_v51 = vpack.c.bf16 %v9145_v22, %v9140_v36  ;;  %v9169_v62 = vpop.f32.mrb[95].mxu1  ;;  %v9172_v8 = vadd.f32 %v9096_v15, %v3049_v3  ;;  %v9175_v17 = vadd.f32 %v9080_v55, %v3049_v3  ;;  %v9178_v43 = vadd.f32 %v9102_v29, %v3049_v3  ;;  %v6407_v54 = vpop.eup %6406 }
 0x71f   :  { %v3453_v59 = vmul.f32 1.6732632, %v5442_v33  ;;  %v3510_v26 = vsel %vm3478_vm13, %v9033_v32, %v3446_v20  ;;  %v3448_v48 = vmul.f32 1.6732632, %v5437_v61  ;;  %v3329_v39 = vmin.f32 %v9167_v60, 0.0  ;;  %v6409_v52 = vpop.eup %6408  ;;  %v3053_v61 = vpop.permute.xlu0 %3052 }
 0x720   :  { %v9187_v15 = vmul.f32 1.050701, %v3513_v42  ;;  %v5444_v55 = vadd.f32 -1.0, %v6407_v54  ;;  %v3331_v29 = vmin.f32 %v9172_v8, 0.0  ;;  %v5439_v25 = vadd.f32 -1.0, %v6405_v46 }
 0x721   :  { %v3517_v35 = vsel %vm3485_vm2, %v9073_v34, %v3453_v59  ;;  %v3377_v28 = vmul.f32 1.442695, %v3329_v39  ;;  %v3330_v32 = vmin.f32 %v9175_v17, 0.0  ;;  %v3332_v38 = vmin.f32 %v9178_v43, 0.0  ;;  %v6411_v59 = vpop.eup %6410 }
 0x722   :  { %v9189_v44 = vmul.f32 1.050701, %v3517_v35  ;;  %v3515_v34 = vsel %vm3483_vm1, %v9070_v4, %v3451_v30  ;;  %v3455_v33 = vmul.f32 1.6732632, %v5444_v55  ;;  %v3381_v20 = vmul.f32 1.442695, %v3331_v29  ;;  %v6413_v39 = vpop.eup %6412 }
 0x723   :  { %v3512_v3 = vsel %vm3480_vm14, %v9057_v7, %v3448_v48  ;;  %6414 = vpow2.f32 %v3377_v28  ;;  %v3379_v46 = vmul.f32 1.442695, %v3330_v32  ;;  %v3383_v42 = vmul.f32 1.442695, %v3332_v38  ;;  %v3057_v38 = vpop.permute.xlu1 %3056 }
 0x724   :  { %v5944_v40 = vpack.c.bf16 %v9189_v44, %v9187_v15  ;;  %v3519_v54 = vsel %vm3487_vm3, %v9089_v13, %v3455_v33  ;;  %6416 = vpow2.f32 %v3381_v20  ;;  %v9207_v4 = vadd.f32 %v9091_v12, %v3053_v61 }
 0x725   :  { %v9210_v30 = vadd.f32 %v9113_v1, %v3053_v61  ;;  %v9212_v35 = vmul.f32 1.050701, %v3515_v34  ;;  %v9215_v7 = vmul.f32 1.050701, %v3519_v54  ;;  %6418 = vpow2.f32 %v3379_v46 }
 0x726   :  { %v9218_v48 = vadd.f32 %v9098_v31, %v3053_v61  ;;  %v3450_v55 = vmul.f32 1.6732632, %v5439_v25  ;;  %v5441_v13 = vadd.f32 -1.0, %v6409_v52  ;;  %6420 = vpow2.f32 %v3383_v42 }
 0x727   :  { %v3333_v12 = vmin.f32 %v9207_v4, 0.0  ;;  %v9222_v1 = vmul.f32 1.050701, %v3508_v19  ;;  %v5960_v29 = vpack.c.bf16 %v9215_v7, %v9212_v35  ;;  %v5443_v28 = vadd.f32 -1.0, %v6411_v59 }
 0x728   :  { %v3335_v32 = vmin.f32 %v9210_v30, 0.0  ;;  %v9227_v34 = vmul.f32 1.050701, %v3510_v26  ;;  %v9229_v31 = vmul.f32 1.050701, %v3512_v3  ;;  %v9232_v52 = vadd.f32 %v9118_v10, %v3053_v61 }
 0x729   :  { %v3385_v25 = vmul.f32 1.442695, %v3333_v12  ;;  %v5445_v33 = vadd.f32 -1.0, %v6413_v39  ;;  %v3334_v19 = vmin.f32 %v9218_v48, 0.0  ;;  %v9236_v46 = vadd.f32 %v9122_v23, %v3057_v38 }
 0x72a   :  { %v3389_v20 = vmul.f32 1.442695, %v3335_v32  ;;  %v9241_v42 = vsel %vm3482_vm5, %v9062_v5, %v3450_v55  ;;  %v3452_v26 = vmul.f32 1.6732632, %v5441_v13  ;;  %v3336_v3 = vmin.f32 %v9232_v52, 0.0  ;;  %v9255_v32 = vpop.permute.xlu0 %3060 }
 0x72b   :  { %6422 = vpow2.f32 %v3385_v25  ;;  %v3454_v59 = vmul.f32 1.6732632, %v5443_v28  ;;  %v3387_v10 = vmul.f32 1.442695, %v3334_v19  ;;  %v3337_v61 = vmin.f32 %v9236_v46, 0.0 }
 0x72c   :  { %6424 = vpow2.f32 %v3389_v20  ;;  %v3391_v54 = vmul.f32 1.442695, %v3336_v3  ;;  %v9247_v23 = vadd.f32 %v9129_v2, %v3057_v38  ;;  %v9250_v39 = vadd.f32 %v9131_v16, %v3057_v38 }
 0x72d   :  { %v6415_v5 = vpop.eup %6414  ;;  %v3456_v55 = vmul.f32 1.6732632, %v5445_v33  ;;  %6426 = vpow2.f32 %v3387_v10  ;;  %v3393_v13 = vmul.f32 1.442695, %v3337_v61  ;;  %v9253_v12 = vadd.f32 %v9136_v27, %v3057_v38 }
 0x72e   :  { %v6417_v28 = vpop.eup %6416  ;;  %v9260_v25 = vsel %vm3484_vm6, %v9078_v41, %v3452_v26  ;;  %v5446_v2 = vadd.f32 -1.0, %v6415_v5  ;;  %6428 = vpow2.f32 %v3391_v54  ;;  %v3339_v16 = vmin.f32 %v9247_v23, 0.0 }
 0x72f   :  { %v6419_v20 = vpop.eup %6418  ;;  %v3518_v33 = vsel %vm3486_vm7, %v9094_v11, %v3454_v59  ;;  %v5448_v19 = vadd.f32 -1.0, %v6417_v28  ;;  %v3338_v27 = vmin.f32 %v9250_v39, 0.0  ;;  %v9269_v38 = vadd.f32 %v9138_v9, %v9255_v32 }
 0x730   :  { %v6421_v3 = vpop.eup %6420  ;;  %v3457_v10 = vmul.f32 1.6732632, %v5446_v2  ;;  %v5447_v41 = vadd.f32 -1.0, %v6419_v20  ;;  %6430 = vpow2.f32 %v3393_v13  ;;  %v3397_v26 = vmul.f32 1.442695, %v3339_v16 }
 0x731   :  { %v3520_v61 = vsel %vm3488_vm8, %v9105_v37, %v3456_v55  ;;  %vm3489_vm9 = vcmp.gt.f32.partialorder %v9167_v60, 0.0  ;;  %v3459_v54 = vmul.f32 1.6732632, %v5448_v19  ;;  %v3340_v11 = vmin.f32 %v9253_v12, 0.0 }
 0x732   :  { %v3521_v59 = vsel %vm3489_vm9, %v9167_v60, %v3457_v10  ;;  %vm3491_vm10 = vcmp.gt.f32.partialorder %v9172_v8, 0.0  ;;  %v5449_v9 = vadd.f32 -1.0, %v6421_v3  ;;  %vm3493_vm11 = vcmp.gt.f32.partialorder %v9207_v4, 0.0 }
 0x733   :  { %v9279_v5 = vmul.f32 1.050701, %v3518_v33  ;;  %vm3495_vm12 = vcmp.gt.f32.partialorder %v9210_v30, 0.0  ;;  %vm3494_vm13 = vcmp.gt.f32.partialorder %v9218_v48, 0.0  ;;  %v3395_v13 = vmul.f32 1.442695, %v3338_v27 }
 0x734   :  { %v9283_v55 = vmul.f32 1.050701, %v3520_v61  ;;  %v3458_v28 = vmul.f32 1.6732632, %v5447_v41  ;;  %vm3490_vm14 = vcmp.gt.f32.partialorder %v9175_v17, 0.0  ;;  %vm3496_vm15 = vcmp.gt.f32.partialorder %v9232_v52, 0.0 }
 0x735   :  { %v6423_v37 = vpop.eup %6422  ;;  %6432 = vpow2.f32 %v3397_v26  ;;  %v3341_v60 = vmin.f32 %v9269_v38, 0.0  ;;  %v9288_v16 = vmul.f32 1.050701, %v3521_v59  ;;  %v3523_v20 = vsel %vm3491_vm10, %v9172_v8, %v3459_v54 }
 0x736   :  { %v6425_v2 = vpop.eup %6424  ;;  %vm3492_vm1 = vcmp.gt.f32.partialorder %v9178_v43, 0.0  ;;  %v5450_v33 = vadd.f32 -1.0, %v6423_v37  ;;  %v3399_v19 = vmul.f32 1.442695, %v3340_v11  ;;  %v3460_v27 = vmul.f32 1.6732632, %v5449_v9 }
 0x737   :  { %v5452_v3 = vadd.f32 -1.0, %v6425_v2  ;;  %v3401_v10 = vmul.f32 1.442695, %v3341_v60  ;;  %v9296_v41 = vadd.f32 %v9152_v57, %v9255_v32  ;;  %v6427_v26 = vpop.eup %6426  ;;  %6434 = vpow2.f32 %v3395_v13 }
 0x738   :  { %v3461_v61 = vmul.f32 1.6732632, %v5450_v33  ;;  %v9300_v59 = vadd.f32 %v9154_v14, %v9255_v32  ;;  %v5938_v8 = vpack.c.bf16 %v9227_v34, %v9156_v21  ;;  %v6429_v54 = vpop.eup %6428  ;;  %v5451_v11 = vadd.f32 -1.0, %v6427_v26 }
 0x739   :  { %v3463_v37 = vmul.f32 1.6732632, %v5452_v3  ;;  %6436 = vpow2.f32 %v3401_v10  ;;  %v3343_v9 = vmin.f32 %v9296_v41, 0.0  ;;  %v9305_v60 = vmul.f32 1.050701, %v3523_v20 }
 0x73a   :  { %v3525_v57 = vsel %vm3493_vm11, %v9207_v4, %v3461_v61  ;;  %v5453_v13 = vadd.f32 -1.0, %v6429_v54  ;;  %v3342_v2 = vmin.f32 %v9300_v59, 0.0  ;;  %5939 = vmatprep.subr.bf16.mxu0 %v5938_v8  ;;  %v6431_v14 = vpop.eup %6430  ;;  %v3462_v34 = vmul.f32 1.6732632, %v5451_v11 }
 0x73b   :  { %v3557_v33 = vmul.f32 1.050701, %v3525_v57  ;;  %v3527_v21 = vsel %vm3495_vm12, %v9210_v30, %v3463_v37  ;;  %6438 = vpow2.f32 %v3399_v19  ;;  %5941 = vmatpush1.bf16.msra.mxu0 %v5940_v56  ;;  %v3405_v10 = vmul.f32 1.442695, %v3343_v9 }
 0x73c   :  { %v3559_v20 = vmul.f32 1.050701, %v3527_v21  ;;  %v3464_v3 = vmul.f32 1.6732632, %v5453_v13  ;;  %v5954_v4 = vpack.c.bf16 %v9229_v31, %v9222_v1  ;;  %v3526_v61 = vsel %vm3494_vm13, %v9218_v48, %v3462_v34 }
 0x73d   :  { %v5948_v26 = vpack.c.bf16 %v3557_v33, %v9288_v16  ;;  %v3403_v8 = vmul.f32 1.442695, %v3342_v2  ;;  %v9325_v30 = vadd.f32 %v9169_v62, %v9255_v32  ;;  %v3522_v47 = vsel %vm3490_vm14, %v9175_v17, %v3458_v28 }
 0x73e   :  { %v5964_v45 = vpack.c.bf16 %v3559_v20, %v9305_v60  ;;  %v3528_v56 = vsel %vm3496_vm15, %v9232_v52, %v3464_v3  ;;  %v5454_v1 = vadd.f32 -1.0, %v6431_v14  ;;  %5955 = vmatprep.subr.bf16.mxu1 %v5954_v4  ;;  %v3524_v48 = vsel %vm3492_vm1, %v9178_v43, %v3460_v27 }
 0x73f   :  { %v6433_v31 = vpop.eup %6432  ;;  %v3558_v16 = vmul.f32 1.050701, %v3526_v61  ;;  %6440 = vpow2.f32 %v3405_v10  ;;  %5957 = vmatpush1.bf16.msra.mxu1 %v5956_v51  ;;  %v3546_v62 = vmul.f32 1.050701, %v9241_v42  ;;  %v3548_v17 = vmul.f32 1.050701, %v9260_v25 }
 0x740   :  { %v3560_v32 = vmul.f32 1.050701, %v3528_v56  ;;  %6442 = vpow2.f32 %v3403_v8  ;;  %v3554_v52 = vmul.f32 1.050701, %v3522_v47  ;;  %v3344_v28 = vmin.f32 %v9325_v30, 0.0 }
 0x741   :  { %v6435_v19 = vpop.eup %6434  ;;  %v3556_v54 = vmul.f32 1.050701, %v3524_v48  ;;  %v3465_v37 = vmul.f32 1.6732632, %v5454_v1  ;;  %v5942_v43 = vpack.c.bf16 %v9279_v5, %v3546_v62  ;;  %v5958_v27 = vpack.c.bf16 %v9283_v55, %v3548_v17  ;;  %v5465_v62 = vld [vmem:[%s10420_s1 + $0x198] sm:$0xff]  ;;  %v5466_v17 = vld [vmem:[%s10420_s1 + $0x1a0] sm:$0xff] }
 0x742   :  { %v3407_v9 = vmul.f32 1.442695, %v3344_v28  ;;  %v5946_v36 = vpack.c.bf16 %v3558_v16, %v3554_v52  ;;  %v5456_v22 = vadd.f32 -1.0, %v6433_v31  ;;  %vm3497_vm2 = vcmp.gt.f32.partialorder %v9236_v46, 0.0  ;;  %v5468_v52 = vld [vmem:[%s10420_s1 + $0x1b0] sm:$0xff]  ;;  %v5469_v28 = vld [vmem:[%s10420_s1 + $0x1b8] sm:$0xff] }
 0x743   :  { %v6437_v11 = vpop.eup %6436  ;;  %5943 = vmatprep.subr.bf16.mxu0 %v5942_v43  ;;  %5959 = vmatprep.subr.bf16.mxu1 %v5958_v27  ;;  %v5962_v42 = vpack.c.bf16 %v3560_v32, %v3556_v54  ;;  %v5455_v60 = vadd.f32 -1.0, %v6435_v19  ;;  %v3529_v5 = vsel %vm3497_vm2, %v9236_v46, %v3465_v37  ;;  %vm3501_vm3 = vcmp.gt.f32.partialorder %v9269_v38, 0.0  ;;  %v5467_v32 = vld [vmem:[%s10420_s1 + $0x1a8] sm:$0xff]  ;;  %v3580_v19 = vpop.permute.xlu1 %3579 }
 0x744   :  { %v5458_v51 = vadd.f32 -1.0, %v6437_v11  ;;  %6444 = vpow2.f32 %v3407_v9  ;;  %5945 = vmatpush1.bf16.msra.mxu0 %v5944_v40  ;;  %5961 = vmatpush1.bf16.msra.mxu1 %v5960_v29  ;;  %v3467_v57 = vmul.f32 1.6732632, %v5456_v22  ;;  %v3561_v14 = vmul.f32 1.050701, %v3529_v5  ;;  %v3584_v11 = vpop.permute.xlu0 %3583 }
 0x745   :  { %v6439_v25 = vpop.eup %6438  ;;  %5947 = vmatprep.subr.bf16.mxu0 %v5946_v36  ;;  %5963 = vmatprep.subr.bf16.mxu1 %v5962_v42  ;;  %v3466_v33 = vmul.f32 1.6732632, %v5455_v60  ;;  %vm3499_vm5 = vcmp.gt.f32.partialorder %v9247_v23, 0.0  ;;  %vm3498_vm6 = vcmp.gt.f32.partialorder %v9250_v39, 0.0  ;;  %vm3503_vm7 = vcmp.gt.f32.partialorder %v9296_v41, 0.0 }
 0x746   :  { %v3469_v55 = vmul.f32 1.6732632, %v5458_v51  ;;  %v5457_v44 = vadd.f32 -1.0, %v6439_v25  ;;  %v3531_v29 = vsel %vm3499_vm5, %v9247_v23, %v3467_v57  ;;  %vm3502_vm8 = vcmp.gt.f32.partialorder %v9300_v59, 0.0 }
 0x747   :  { %v3563_v4 = vmul.f32 1.050701, %v3531_v29  ;;  %vm3500_vm9 = vcmp.gt.f32.partialorder %v9253_v12, 0.0  ;;  %vm3504_vm10 = vcmp.gt.f32.partialorder %v9325_v30, 0.0  ;;  %v6610_v37 = vmov 7  }
 0x748   :  { %v3533_v13 = vsel %vm3501_vm3, %v9269_v38, %v3469_v55  ;;  %5949 = vmatpush1.bf16.msra.mxu0 %v5948_v26  ;;  %5965 = vmatpush1.bf16.msra.mxu1 %v5964_v45  ;;  %v3530_v38 = vsel %vm3498_vm6, %v9250_v39, %v3466_v33  ;;  %v3468_v20 = vmul.f32 1.6732632, %v5457_v44 }
 0x749   :  { %v6441_v2 = vpop.eup %6440  ;;  %v3565_v21 = vmul.f32 1.050701, %v3533_v13  ;;  %v3562_v8 = vmul.f32 1.050701, %v3530_v38  ;;  %6059 = vset.pattern.permute.xlu1 %v6610_v37  ;;  %6058 = vset.pattern.permute.xlu0 %v6610_v37 }
 0x74a   :  { %v6443_v15 = vpop.eup %6442  ;;  %v5460_v40 = vadd.f32 -1.0, %v6441_v2  ;;  %v3532_v39 = vsel %vm3500_vm9, %v9253_v12, %v3468_v20  ;;  %v5463_v12 = vld [vmem:[%s10420_s1 + $0x188] sm:$0xff]  ;;  %4130 = vperm.xlu1 %6059, %v9010_v18   ;;  %4126 = vperm.xlu0 %6058, %v9004_v24  }
 0x74b   :  { %v5952_v35 = vpack.c.bf16 %v3565_v21, %v3561_v14  ;;  %v5459_v7 = vadd.f32 -1.0, %v6443_v15  ;;  %v3564_v31 = vmul.f32 1.050701, %v3532_v39  ;;  %v3588_v21 = vpop.permute.xlu1 %3587 }
 0x74c   :  { %v3471_v46 = vmul.f32 1.6732632, %v5460_v40 }
 0x74d   :  { %v3470_v34 = vmul.f32 1.6732632, %v5459_v7 }
 0x74e   :  { %v3535_v3 = vsel %vm3503_vm7, %v9296_v41, %v3471_v46  ;;  %v6445_v10 = vpop.eup %6444  ;;  %4134 = vperm.xlu1 %6059, %v9022_v53   ;;  %4138 = vperm.xlu0 %6058, %v9044_v63  }
 0x74f   :  { %v3567_v26 = vmul.f32 1.050701, %v3535_v3  ;;  %v3534_v61 = vsel %vm3502_vm8, %v9300_v59, %v3470_v34  ;;  %v5461_v47 = vadd.f32 -1.0, %v6445_v10  ;;  %v5462_v59 = vld [vmem:[%s10420_s1 + $0x180] sm:$0xff]  ;;  %v3592_v39 = vpop.permute.xlu1 %3591 }
 0x750   :  { %v3566_v23 = vmul.f32 1.050701, %v3534_v61 }
 0x751   :  { %v5968_v45 = vpack.c.bf16 %v3567_v26, %v3563_v4  ;;  %v3472_v56 = vmul.f32 1.6732632, %v5461_v47 }
 0x752   :  { %v5950_v1 = vpack.c.bf16 %v3566_v23, %v3562_v8  ;;  %4142 = vperm.xlu1 %6059, %v9028_v49   ;;  %4146 = vperm.xlu0 %6058, %v9067_v58  }
 0x753   :  { %v3536_v41 = vsel %vm3504_vm10, %v9325_v30, %v3472_v56  ;;  %v5464_v30 = vld [vmem:[%s10420_s1 + $0x190] sm:$0xff] }
 0x754   :  { %5951 = vmatprep.subr.bf16.mxu0 %v5950_v1  ;;  %v3568_v48 = vmul.f32 1.050701, %v3536_v41 }
 0x755   :  { %5953 = vmatpush1.bf16.msra.mxu0 %v5952_v35 }
 0x756   :  { %v5966_v16 = vpack.c.bf16 %v3568_v48, %v3564_v31  ;;  %4150 = vperm.xlu1 %6059, %v9050_v6   ;;  %4154 = vperm.xlu0 %6058, %v9085_v0  }
 0x758   :  { %5470 = vmatmul.mubr.msk.f32.vlgmr.msra.gmra.mrb[96].mxu0 %vm874_vm4, %v5462_v59  ;;  %5967 = vmatprep.subr.bf16.mxu1 %v5966_v16 }
 0x759   :  { %3704 = vmatprep.mubr.f32.mxu0 %v6603_v50  ;;  %5969 = vmatpush1.bf16.msra.mxu1 %v5968_v45 }
 0x75c   :  { %5471 = vmatmul.mubr.msk.f32.gmra.mrb[98].mxu0 %vm874_vm4, %v5463_v12  ;;  %5478 = vmatmul.mubr.msk.f32.vlgmr.msra.gmra.mrb[96].mxu1 %vm874_vm4, %v5462_v59 }
 0x75d   :  { %3710 = vmatprep.mubr.f32.mxu0 %v6603_v50  ;;  %3817 = vmatprep.mubr.f32.mxu1 %v6603_v50 }
 0x760   :  { %5472 = vmatmul.mubr.msk.f32.gmra.mrb[100].mxu0 %vm874_vm4, %v5464_v30  ;;  %5479 = vmatmul.mubr.msk.f32.gmra.mrb[98].mxu1 %vm874_vm4, %v5463_v12 }
 0x761   :  { %3716 = vmatprep.mubr.f32.mxu0 %v6603_v50  ;;  %3823 = vmatprep.mubr.f32.mxu1 %v6603_v50 }
 0x764   :  { %5473 = vmatmul.mubr.msk.f32.gmra.mrb[102].mxu0 %vm874_vm4, %v5465_v62  ;;  %5480 = vmatmul.mubr.msk.f32.gmra.mrb[100].mxu1 %vm874_vm4, %v5464_v30 }
 0x765   :  { %3722 = vmatprep.mubr.f32.mxu0 %v6603_v50  ;;  %3829 = vmatprep.mubr.f32.mxu1 %v6603_v50 }
 0x768   :  { %5474 = vmatmul.mubr.msk.f32.gmra.mrb[104].mxu0 %vm874_vm4, %v5466_v17  ;;  %5481 = vmatmul.mubr.msk.f32.gmra.mrb[102].mxu1 %vm874_vm4, %v5465_v62 }
 0x769   :  { %3728 = vmatprep.mubr.f32.mxu0 %v6603_v50  ;;  %3835 = vmatprep.mubr.f32.mxu1 %v6603_v50 }
 0x76c   :  { %5475 = vmatmul.mubr.msk.f32.gmra.mrb[106].mxu0 %vm874_vm4, %v5467_v32  ;;  %5482 = vmatmul.mubr.msk.f32.gmra.mrb[104].mxu1 %vm874_vm4, %v5466_v17 }
 0x76d   :  { %3734 = vmatprep.mubr.f32.mxu0 %v6603_v50  ;;  %3841 = vmatprep.mubr.f32.mxu1 %v6603_v50 }
 0x770   :  { %5476 = vmatmul.mubr.msk.f32.gmra.mrb[108].mxu0 %vm874_vm4, %v5468_v52  ;;  %5483 = vmatmul.mubr.msk.f32.gmra.mrb[106].mxu1 %vm874_vm4, %v5467_v32 }
 0x771   :  { %3740 = vmatprep.mubr.f32.mxu0 %v6603_v50  ;;  %3847 = vmatprep.mubr.f32.mxu1 %v6603_v50 }
 0x774   :  { %5477 = vmatmul.mubr.msk.f32.gmra.mrb[110].mxu0 %vm874_vm4, %v5469_v28  ;;  %5484 = vmatmul.mubr.msk.f32.gmra.mrb[108].mxu1 %vm874_vm4, %v5468_v52 }
 0x775   :  { %4245 = vmatprep.mubr.f32.mxu0 %v6603_v50  ;;  %3853 = vmatprep.mubr.f32.mxu1 %v6603_v50 }
 0x778   :  { %5485 = vmatmul.mubr.msk.f32.gmra.mrb[110].mxu1 %vm874_vm4, %v5469_v28 }
 0x779   :  { %4358 = vmatprep.mubr.f32.mxu1 %v6603_v50 }
 0x82b   :  { %v3700_v54 = vpop.f32.mrb[96].mxu0 }
 0x82c   :  { %v9423_v43 = vadd.f32 %v3700_v54, %v3580_v19  ;;  %v3702_v27 = vpop.f32.mrb[97].mxu0 }
 0x82d   :  { %v9427_v9 = vadd.f32 %v3702_v27, %v3580_v19 }
 0x82e   :  { %v3860_v36 = vmin.f32 %v9423_v43, 0.0  ;;  %vm4020_vm11 = vcmp.gt.f32.partialorder %v9423_v43, 0.0 }
 0x82f   :  { %v3861_v22 = vmin.f32 %v9427_v9, 0.0  ;;  %v3706_v51 = vpop.f32.mrb[98].mxu0  ;;  %v3813_v25 = vpop.f32.mrb[96].mxu1  ;;  %vm4021_vm12 = vcmp.gt.f32.partialorder %v9427_v9, 0.0 }
 0x830   :  { %v3892_v42 = vmul.f32 1.442695, %v3860_v36  ;;  %v9431_v60 = vadd.f32 %v3706_v51, %v3584_v11  ;;  %v3708_v5 = vpop.f32.mrb[99].mxu0  ;;  %v9435_v18 = vadd.f32 %v3813_v25, %v3580_v19  ;;  %v3815_v55 = vpop.f32.mrb[97].mxu1 }
 0x831   :  { %v3894_v24 = vmul.f32 1.442695, %v3861_v22  ;;  %v9437_v57 = vadd.f32 %v3708_v5, %v3584_v11  ;;  %v9439_v13 = vadd.f32 %v3815_v55, %v3580_v19 }
 0x832   :  { %6446 = vpow2.f32 %v3892_v42  ;;  %v3864_v2 = vmin.f32 %v9431_v60, 0.0  ;;  %v3862_v14 = vmin.f32 %v9435_v18, 0.0  ;;  %vm4024_vm13 = vcmp.gt.f32.partialorder %v9431_v60, 0.0 }
 0x833   :  { %v3712_v33 = vpop.f32.mrb[100].mxu0  ;;  %v3863_v15 = vmin.f32 %v9439_v13, 0.0  ;;  %v3819_v44 = vpop.f32.mrb[98].mxu1  ;;  %v3865_v63 = vmin.f32 %v9437_v57, 0.0  ;;  %6448 = vpow2.f32 %v3894_v24  ;;  %vm4022_vm14 = vcmp.gt.f32.partialorder %v9435_v18, 0.0 }
 0x834   :  { %v3900_v53 = vmul.f32 1.442695, %v3864_v2  ;;  %v3896_v40 = vmul.f32 1.442695, %v3862_v14  ;;  %v9447_v35 = vadd.f32 %v3819_v44, %v3584_v11  ;;  %v3821_v7 = vpop.f32.mrb[99].mxu1  ;;  %v9449_v29 = vadd.f32 %v3712_v33, %v3588_v21  ;;  %v3714_v46 = vpop.f32.mrb[101].mxu0 }
 0x835   :  { %v3898_v38 = vmul.f32 1.442695, %v3863_v15  ;;  %v9451_v34 = vadd.f32 %v3821_v7, %v3584_v11  ;;  %v3902_v10 = vmul.f32 1.442695, %v3865_v63  ;;  %v9456_v26 = vadd.f32 %v3714_v46, %v3588_v21 }
 0x836   :  { %6450 = vpow2.f32 %v3900_v53  ;;  %v3866_v20 = vmin.f32 %v9447_v35, 0.0  ;;  %v3868_v3 = vmin.f32 %v9449_v29, 0.0  ;;  %vm4023_vm15 = vcmp.gt.f32.partialorder %v9439_v13, 0.0 }
 0x837   :  { %6452 = vpow2.f32 %v3896_v40  ;;  %v3718_v49 = vpop.f32.mrb[102].mxu0  ;;  %v3867_v58 = vmin.f32 %v9451_v34, 0.0  ;;  %v3825_v4 = vpop.f32.mrb[100].mxu1  ;;  %v3869_v6 = vmin.f32 %v9456_v26, 0.0  ;;  %vm4026_vm1 = vcmp.gt.f32.partialorder %v9447_v35, 0.0 }
 0x838   :  { %v3720_v61 = vpop.f32.mrb[103].mxu0  ;;  %6454 = vpow2.f32 %v3898_v38  ;;  %v3904_v8 = vmul.f32 1.442695, %v3866_v20  ;;  %v3908_v23 = vmul.f32 1.442695, %v3868_v3  ;;  %v9460_v47 = vadd.f32 %v3825_v4, %v3588_v21  ;;  %v3827_v45 = vpop.f32.mrb[101].mxu1 }
 0x839   :  { %v9463_v1 = vadd.f32 %v3718_v49, %v3592_v39  ;;  %v3906_v48 = vmul.f32 1.442695, %v3867_v58  ;;  %v9468_v0 = vadd.f32 %v3827_v45, %v3588_v21  ;;  %v3910_v27 = vmul.f32 1.442695, %v3869_v6 }
 0x83a   :  { %6456 = vpow2.f32 %v3904_v8  ;;  %v3870_v56 = vmin.f32 %v9460_v47, 0.0  ;;  %v9478_v11 = vadd.f32 %v3720_v61, %v3592_v39  ;;  %vm4025_vm2 = vcmp.gt.f32.partialorder %v9437_v57, 0.0 }
 0x83b   :  { %v9465_v41 = vpop.f32.mrb[104].mxu0  ;;  %6458 = vpow2.f32 %v3902_v10  ;;  %v3831_v59 = vpop.f32.mrb[102].mxu1  ;;  %v3872_v62 = vmin.f32 %v9463_v1, 0.0  ;;  %v3871_v25 = vmin.f32 %v9468_v0, 0.0  ;;  %vm4027_vm3 = vcmp.gt.f32.partialorder %v9451_v34, 0.0 }
 0x83c   :  { %v6447_v31 = vpop.eup %6446  ;;  %v9470_v16 = vpop.f32.mrb[105].mxu0  ;;  %6460 = vpow2.f32 %v3908_v23  ;;  %v3912_v30 = vmul.f32 1.442695, %v3870_v56  ;;  %v9473_v19 = vadd.f32 %v3831_v59, %v3592_v39  ;;  %v3873_v63 = vmin.f32 %v9478_v11, 0.0 }
 0x83d   :  { %v5486_v12 = vadd.f32 -1.0, %v6447_v31  ;;  %v3833_v17 = vpop.f32.mrb[103].mxu1  ;;  %v6449_v32 = vpop.eup %6448  ;;  %v3916_v28 = vmul.f32 1.442695, %v3872_v62  ;;  %vm4028_vm5 = vcmp.gt.f32.partialorder %v9449_v29, 0.0  ;;  %vm4030_vm6 = vcmp.gt.f32.partialorder %v9460_v47, 0.0 }
 0x83e   :  { %6462 = vpow2.f32 %v3912_v30  ;;  %v3874_v5 = vmin.f32 %v9473_v19, 0.0  ;;  %v9489_v14 = vadd.f32 %v3833_v17, %v3592_v39  ;;  %v5487_v21 = vadd.f32 -1.0, %v6449_v32 }
 0x83f   :  { %v3988_v52 = vmul.f32 1.6732632, %v5486_v12  ;;  %v9475_v54 = vpop.f32.mrb[106].mxu0  ;;  %6464 = vpow2.f32 %v3906_v48  ;;  %v9480_v36 = vpop.f32.mrb[104].mxu1  ;;  %v3918_v56 = vmul.f32 1.442695, %v3873_v63 }
 0x840   :  { %v6451_v37 = vpop.eup %6450  ;;  %v9482_v22 = vpop.f32.mrb[107].mxu0  ;;  %6466 = vpow2.f32 %v3916_v28  ;;  %v3920_v44 = vmul.f32 1.442695, %v3874_v5  ;;  %v3875_v58 = vmin.f32 %v9489_v14, 0.0  ;;  %v3989_v8 = vmul.f32 1.6732632, %v5487_v21 }
 0x841   :  { %v6453_v51 = vpop.eup %6452  ;;  %v5490_v42 = vadd.f32 -1.0, %v6451_v37  ;;  %v9486_v24 = vpop.f32.mrb[105].mxu1  ;;  %v4052_v55 = vsel %vm4020_vm11, %v9423_v43, %v3988_v52  ;;  %6468 = vpow2.f32 %v3910_v27  ;;  %v3914_v43 = vmul.f32 1.442695, %v3871_v25 }
 0x842   :  { %v5488_v2 = vadd.f32 -1.0, %v6453_v51  ;;  %v6455_v33 = vpop.eup %6454  ;;  %v9494_v7 = vmul.f32 1.050701, %v4052_v55  ;;  %6470 = vpow2.f32 %v3920_v44  ;;  %v3922_v17 = vmul.f32 1.442695, %v3875_v58  ;;  %v3596_v21 = vpop.permute.xlu0 %3595 }
 0x843   :  { %v3992_v15 = vmul.f32 1.6732632, %v5490_v42  ;;  %v9497_v38 = vpop.f32.mrb[106].mxu1  ;;  %v5489_v3 = vadd.f32 -1.0, %v6455_v33  ;;  %6472 = vpow2.f32 %v3914_v43  ;;  %v4053_v27 = vsel %vm4021_vm12, %v9427_v9, %v3989_v8 }
 0x844   :  { %v3990_v53 = vmul.f32 1.6732632, %v5488_v2  ;;  %v6457_v40 = vpop.eup %6456  ;;  %v9502_v4 = vpop.f32.mrb[107].mxu1  ;;  %6474 = vpow2.f32 %v3918_v56  ;;  %vm4032_vm7 = vcmp.gt.f32.partialorder %v9463_v1, 0.0  ;;  %vm4034_vm8 = vcmp.gt.f32.partialorder %v9473_v19, 0.0 }
 0x845   :  { %v4056_v46 = vsel %vm4024_vm13, %v9431_v60, %v3992_v15  ;;  %v6459_v20 = vpop.eup %6458  ;;  %v5492_v10 = vadd.f32 -1.0, %v6457_v40  ;;  %v9506_v60 = vpop.f32.mrb[108].mxu0  ;;  %v3991_v62 = vmul.f32 1.6732632, %v5489_v3  ;;  %v9538_v15 = vmul.f32 1.050701, %v4053_v27 }
 0x846   :  { %v9499_v49 = vmul.f32 1.050701, %v4056_v46  ;;  %v6461_v61 = vpop.eup %6460  ;;  %v4054_v23 = vsel %vm4022_vm14, %v9435_v18, %v3990_v53  ;;  %v9513_v48 = vpop.f32.mrb[109].mxu0  ;;  %v5491_v59 = vadd.f32 -1.0, %v6459_v20  ;;  %6476 = vpow2.f32 %v3922_v17 }
 0x847   :  { %v3994_v39 = vmul.f32 1.6732632, %v5492_v10  ;;  %v9511_v31 = vpop.f32.mrb[108].mxu1  ;;  %v5494_v12 = vadd.f32 -1.0, %v6461_v61  ;;  %v9520_v52 = vpop.f32.mrb[110].mxu0  ;;  %v4055_v44 = vsel %vm4023_vm15, %v9439_v13, %v3991_v62  ;;  %v9549_v46 = vadd.f32 %v9465_v41, %v3596_v21 }
 0x848   :  { %v5972_v45 = vpack.c.bf16 %v9499_v49, %v9494_v7  ;;  %v6463_v6 = vpop.eup %6462  ;;  %v9518_v32 = vpop.f32.mrb[109].mxu1  ;;  %v9522_v37 = vmul.f32 1.050701, %v4054_v23  ;;  %v3993_v55 = vmul.f32 1.6732632, %v5491_v59  ;;  %v9554_v3 = vadd.f32 %v9480_v36, %v3596_v21 }
 0x849   :  { %v6465_v30 = vpop.eup %6464  ;;  %v4058_v18 = vsel %vm4026_vm1, %v9447_v35, %v3994_v39  ;;  %v3996_v42 = vmul.f32 1.6732632, %v5494_v12  ;;  %v5496_v35 = vadd.f32 -1.0, %v6463_v6  ;;  %v9536_v9 = vpop.f32.mrb[111].mxu0  ;;  %v9557_v10 = vadd.f32 %v9470_v16, %v3596_v21 }
 0x84a   :  { %v6467_v28 = vpop.eup %6466  ;;  %v9527_v51 = vmul.f32 1.050701, %v4058_v18  ;;  %v5493_v2 = vadd.f32 -1.0, %v6465_v30  ;;  %v9560_v58 = vadd.f32 %v9486_v24, %v3596_v21  ;;  %v3876_v8 = vmin.f32 %v9549_v46, 0.0  ;;  %v3600_v18 = vpop.permute.xlu1 %3599 }
 0x84b   :  { %v5498_v25 = vadd.f32 -1.0, %v6467_v28  ;;  %v9534_v33 = vpop.f32.mrb[110].mxu1  ;;  %v6469_v53 = vpop.eup %6468  ;;  %v4060_v63 = vsel %vm4028_vm5, %v9449_v29, %v3996_v42  ;;  %v3998_v20 = vmul.f32 1.6732632, %v5496_v35  ;;  %v4057_v29 = vsel %vm4025_vm2, %v9437_v57, %v3993_v55 }
 0x84c   :  { %v5988_v5 = vpack.c.bf16 %v9527_v51, %v9522_v37  ;;  %v9551_v43 = vpop.f32.mrb[111].mxu1  ;;  %v6471_v13 = vpop.eup %6470  ;;  %v3995_v61 = vmul.f32 1.6732632, %v5493_v2  ;;  %v9569_v36 = vmul.f32 1.050701, %v4060_v63  ;;  %v3878_v24 = vmin.f32 %v9554_v3, 0.0 }
 0x84d   :  { %v4000_v40 = vmul.f32 1.6732632, %v5498_v25  ;;  %v5500_v16 = vadd.f32 -1.0, %v6471_v13  ;;  %v5495_v39 = vadd.f32 -1.0, %v6469_v53  ;;  %vm4029_vm9 = vcmp.gt.f32.partialorder %v9456_v26, 0.0  ;;  %v6473_v59 = vpop.eup %6472  ;;  %v3604_v13 = vpop.permute.xlu0 %3603 }
 0x84e   :  { %v3924_v56 = vmul.f32 1.442695, %v3876_v8  ;;  %v3877_v57 = vmin.f32 %v9557_v10, 0.0  ;;  %v3879_v6 = vmin.f32 %v9560_v58, 0.0  ;;  %v3928_v62 = vmul.f32 1.442695, %v3878_v24  ;;  %v6475_v42 = vpop.eup %6474 }
 0x84f   :  { %v4064_v41 = vsel %vm4032_vm7, %v9463_v1, %v4000_v40  ;;  %v4062_v1 = vsel %vm4030_vm6, %v9460_v47, %v3998_v20  ;;  %v4002_v30 = vmul.f32 1.6732632, %v5500_v16  ;;  %v4059_v17 = vsel %vm4027_vm3, %v9451_v34, %v3995_v61 }
 0x850   :  { %v9571_v23 = vmul.f32 1.050701, %v4064_v41  ;;  %6478 = vpow2.f32 %v3924_v56  ;;  %v3926_v28 = vmul.f32 1.442695, %v3877_v57  ;;  %v3930_v27 = vmul.f32 1.442695, %v3879_v6  ;;  %v6477_v21 = vpop.eup %6476 }
 0x851   :  { %v4066_v35 = vsel %vm4034_vm8, %v9473_v19, %v4002_v30  ;;  %6480 = vpow2.f32 %v3928_v62  ;;  %v9589_v47 = vadd.f32 %v9475_v54, %v3600_v18  ;;  %v9592_v25 = vadd.f32 %v9497_v38, %v3600_v18 }
 0x852   :  { %v5976_v12 = vpack.c.bf16 %v9571_v23, %v9569_v36  ;;  %v9594_v55 = vmul.f32 1.050701, %v4062_v1  ;;  %vm4031_vm10 = vcmp.gt.f32.partialorder %v9468_v0, 0.0  ;;  %v9597_v34 = vmul.f32 1.050701, %v4066_v35 }
 0x853   :  { %6482 = vpow2.f32 %v3926_v28  ;;  %v9600_v2 = vadd.f32 %v9482_v22, %v3600_v18  ;;  %v3997_v53 = vmul.f32 1.6732632, %v5495_v39  ;;  %v5497_v19 = vadd.f32 -1.0, %v6473_v59 }
 0x854   :  { %vm4033_vm11 = vcmp.gt.f32.partialorder %v9478_v11, 0.0  ;;  %6484 = vpow2.f32 %v3930_v27  ;;  %v3880_v54 = vmin.f32 %v9589_v47, 0.0  ;;  %v9604_v38 = vmul.f32 1.050701, %v4055_v44  ;;  %v9637_v27 = vpop.permute.xlu1 %3607 }
 0x855   :  { %v5992_v63 = vpack.c.bf16 %v9597_v34, %v9594_v55  ;;  %v5499_v40 = vadd.f32 -1.0, %v6475_v42  ;;  %v3882_v20 = vmin.f32 %v9592_v25, 0.0  ;;  %v9609_v61 = vmul.f32 1.050701, %v4057_v29 }
 0x856   :  { %v9611_v22 = vmul.f32 1.050701, %v4059_v17  ;;  %v3932_v41 = vmul.f32 1.442695, %v3880_v54  ;;  %v9614_v8 = vadd.f32 %v9502_v4, %v3600_v18  ;;  %v5501_v16 = vadd.f32 -1.0, %v6477_v21 }
 0x857   :  { %v3936_v24 = vmul.f32 1.442695, %v3882_v20  ;;  %v3881_v44 = vmin.f32 %v9600_v2, 0.0  ;;  %v9618_v39 = vadd.f32 %v9506_v60, %v3604_v13  ;;  %v9623_v56 = vsel %vm4029_vm9, %v9456_v26, %v3997_v53 }
 0x858   :  { %v3999_v29 = vmul.f32 1.6732632, %v5497_v19  ;;  %6486 = vpow2.f32 %v3932_v41  ;;  %v3883_v57 = vmin.f32 %v9614_v8, 0.0  ;;  %v4001_v6 = vmul.f32 1.6732632, %v5499_v40 }
 0x859   :  { %6488 = vpow2.f32 %v3936_v24  ;;  %v3934_v4 = vmul.f32 1.442695, %v3881_v44  ;;  %v3884_v59 = vmin.f32 %v9618_v39, 0.0  ;;  %vm4035_vm12 = vcmp.gt.f32.partialorder %v9489_v14, 0.0 }
 0x85a   :  { %v3938_v1 = vmul.f32 1.442695, %v3883_v57  ;;  %v9629_v60 = vadd.f32 %v9511_v31, %v3604_v13  ;;  %v9632_v30 = vadd.f32 %v9513_v48, %v3604_v13  ;;  %v6479_v26 = vpop.eup %6478  ;;  %v4003_v62 = vmul.f32 1.6732632, %v5501_v16 }
 0x85b   :  { %6490 = vpow2.f32 %v3934_v4  ;;  %v3940_v18 = vmul.f32 1.442695, %v3884_v59  ;;  %v9635_v17 = vadd.f32 %v9518_v32, %v3604_v13  ;;  %v6481_v28 = vpop.eup %6480  ;;  %v9642_v42 = vsel %vm4031_vm10, %v9468_v0, %v3999_v29 }
 0x85c   :  { %v5502_v31 = vadd.f32 -1.0, %v6479_v26  ;;  %6492 = vpow2.f32 %v3938_v1  ;;  %v3886_v48 = vmin.f32 %v9629_v60, 0.0  ;;  %v4065_v21 = vsel %vm4033_vm11, %v9478_v11, %v4001_v6 }
 0x85d   :  { %v6483_v35 = vpop.eup %6482  ;;  %v5504_v53 = vadd.f32 -1.0, %v6481_v28  ;;  %v3885_v32 = vmin.f32 %v9632_v30, 0.0  ;;  %v9651_v19 = vadd.f32 %v9520_v52, %v9637_v27  ;;  %6494 = vpow2.f32 %v3940_v18 }
 0x85e   :  { %v6485_v54 = vpop.eup %6484  ;;  %v4004_v40 = vmul.f32 1.6732632, %v5502_v31  ;;  %v5503_v0 = vadd.f32 -1.0, %v6483_v35  ;;  %v3944_v20 = vmul.f32 1.442695, %v3886_v48  ;;  %v4067_v13 = vsel %vm4035_vm12, %v9489_v14, %v4003_v62 }
 0x85f   :  { %vm4036_vm13 = vcmp.gt.f32.partialorder %v9549_v46, 0.0  ;;  %v4006_v41 = vmul.f32 1.6732632, %v5504_v53  ;;  %v3887_v11 = vmin.f32 %v9635_v17, 0.0  ;;  %vm4038_vm14 = vcmp.gt.f32.partialorder %v9554_v3, 0.0 }
 0x860   :  { %v4068_v16 = vsel %vm4036_vm13, %v9549_v46, %v4004_v40  ;;  %v5505_v52 = vadd.f32 -1.0, %v6485_v54  ;;  %vm4040_vm15 = vcmp.gt.f32.partialorder %v9589_v47, 0.0  ;;  %v9661_v24 = vmul.f32 1.050701, %v4065_v21 }
 0x861   :  { %vm4042_vm1 = vcmp.gt.f32.partialorder %v9592_v25, 0.0  ;;  %vm4041_vm2 = vcmp.gt.f32.partialorder %v9600_v2, 0.0  ;;  %v3942_v44 = vmul.f32 1.442695, %v3885_v32  ;;  %v9665_v29 = vmul.f32 1.050701, %v4067_v13 }
 0x862   :  { %v6487_v14 = vpop.eup %6486  ;;  %v4005_v57 = vmul.f32 1.6732632, %v5503_v0  ;;  %vm4037_vm3 = vcmp.gt.f32.partialorder %v9557_v10, 0.0  ;;  %vm4043_vm5 = vcmp.gt.f32.partialorder %v9614_v8, 0.0  ;;  %6496 = vpow2.f32 %v3944_v20 }
 0x863   :  { %v3888_v46 = vmin.f32 %v9651_v19, 0.0  ;;  %v6489_v6 = vpop.eup %6488  ;;  %v9670_v4 = vmul.f32 1.050701, %v4068_v16  ;;  %v4070_v59 = vsel %vm4038_vm14, %v9554_v3, %v4006_v41  ;;  %vm4039_vm6 = vcmp.gt.f32.partialorder %v9560_v58, 0.0 }
 0x864   :  { %v5506_v1 = vadd.f32 -1.0, %v6487_v14  ;;  %v3946_v26 = vmul.f32 1.442695, %v3887_v11  ;;  %v4007_v62 = vmul.f32 1.6732632, %v5505_v52  ;;  %v5508_v18 = vadd.f32 -1.0, %v6489_v6 }
 0x865   :  { %v3948_v28 = vmul.f32 1.442695, %v3888_v46  ;;  %v9678_v31 = vadd.f32 %v9534_v33, %v9637_v27  ;;  %v6491_v48 = vpop.eup %6490  ;;  %6498 = vpow2.f32 %v3942_v44  ;;  %v9682_v21 = vadd.f32 %v9536_v9, %v9637_v27 }
 0x866   :  { %v4008_v35 = vmul.f32 1.6732632, %v5506_v1  ;;  %v5970_v3 = vpack.c.bf16 %v9609_v61, %v9538_v15  ;;  %v6493_v53 = vpop.eup %6492  ;;  %v4010_v32 = vmul.f32 1.6732632, %v5508_v18  ;;  %v5507_v54 = vadd.f32 -1.0, %v6491_v48 }
 0x867   :  { %6500 = vpow2.f32 %v3948_v28  ;;  %v3890_v40 = vmin.f32 %v9678_v31, 0.0  ;;  %v9687_v0 = vmul.f32 1.050701, %v4070_v59  ;;  %v5509_v20 = vadd.f32 -1.0, %v6493_v53  ;;  %v6495_v9 = vpop.eup %6494 }
 0x868   :  { %v4072_v33 = vsel %vm4040_vm15, %v9589_v47, %v4008_v35  ;;  %v3889_v13 = vmin.f32 %v9682_v21, 0.0  ;;  %5971 = vmatprep.subr.bf16.mxu0 %v5970_v3  ;;  %v4074_v15 = vsel %vm4042_vm1, %v9592_v25, %v4010_v32  ;;  %v4009_v61 = vmul.f32 1.6732632, %v5507_v54 }
 0x869   :  { %v4104_v41 = vmul.f32 1.050701, %v4072_v33  ;;  %6502 = vpow2.f32 %v3946_v26  ;;  %5973 = vmatpush1.bf16.msra.mxu0 %v5972_v45  ;;  %v4106_v11 = vmul.f32 1.050701, %v4074_v15  ;;  %v4011_v16 = vmul.f32 1.6732632, %v5509_v20 }
 0x86a   :  { %v3952_v52 = vmul.f32 1.442695, %v3890_v40  ;;  %v5986_v47 = vpack.c.bf16 %v9611_v22, %v9604_v38  ;;  %v4073_v14 = vsel %vm4041_vm2, %v9600_v2, %v4009_v61  ;;  %v3950_v46 = vmul.f32 1.442695, %v3889_v13 }
 0x86b   :  { %v5980_v44 = vpack.c.bf16 %v4104_v41, %v9670_v4  ;;  %v9707_v25 = vadd.f32 %v9551_v43, %v9637_v27  ;;  %v4069_v7 = vsel %vm4037_vm3, %v9557_v10, %v4005_v57  ;;  %v5996_v49 = vpack.c.bf16 %v4106_v11, %v9687_v0 }
 0x86c   :  { %v4075_v45 = vsel %vm4043_vm5, %v9614_v8, %v4011_v16  ;;  %v5510_v38 = vadd.f32 -1.0, %v6495_v9  ;;  %5987 = vmatprep.subr.bf16.mxu1 %v5986_v47  ;;  %v6497_v22 = vpop.eup %6496  ;;  %v4071_v2 = vsel %vm4039_vm6, %v9560_v58, %v4007_v62  ;;  %v4105_v6 = vmul.f32 1.050701, %v4073_v14 }
 0x86d   :  { %6504 = vpow2.f32 %v3952_v52  ;;  %5989 = vmatpush1.bf16.msra.mxu1 %v5988_v5  ;;  %v4093_v43 = vmul.f32 1.050701, %v9623_v56  ;;  %v4095_v10 = vmul.f32 1.050701, %v9642_v42  ;;  %v4107_v27 = vmul.f32 1.050701, %v4075_v45 }
 0x86e   :  { %6506 = vpow2.f32 %v3950_v46  ;;  %v4101_v8 = vmul.f32 1.050701, %v4069_v7  ;;  %v3891_v57 = vmin.f32 %v9707_v25, 0.0  ;;  %v4103_v59 = vmul.f32 1.050701, %v4071_v2  ;;  %v5520_v46 = vld [vmem:[%s10420_s1 + $0x1d0] sm:$0xff] }
 0x86f   :  { %v6499_v4 = vpop.eup %6498  ;;  %v4012_v1 = vmul.f32 1.6732632, %v5510_v38  ;;  %v5974_v58 = vpack.c.bf16 %v9661_v24, %v4093_v43  ;;  %v5990_v26 = vpack.c.bf16 %v9665_v29, %v4095_v10  ;;  %v5512_v51 = vadd.f32 -1.0, %v6497_v22  ;;  %v5522_v7 = vld [vmem:[%s10420_s1 + $0x1e0] sm:$0xff]  ;;  %v5524_v45 = vld [vmem:[%s10420_s1 + $0x1f0] sm:$0xff]  ;;  %v5525_v38 = vld [vmem:[%s10420_s1 + $0x1f8] sm:$0xff] }
 0x870   :  { %v3954_v18 = vmul.f32 1.442695, %v3891_v57  ;;  %v5978_v37 = vpack.c.bf16 %v4105_v6, %v4101_v8  ;;  %v5994_v56 = vpack.c.bf16 %v4107_v27, %v4103_v59  ;;  %vm4044_vm7 = vcmp.gt.f32.partialorder %v9618_v39, 0.0  ;;  %v6598_v2 = vld [vmem:[%s10421_s2] sm:$0xff]  ;;  %v6599_v6 = vld [vmem:[%s10421_s2 + $0x8] sm:$0xff]  ;;  %v6600_v43 = vld [vmem:[%s10421_s2 + $0x10] sm:$0xff]  ;;  %v4127_v27 = vpop.permute.xlu0 %4126  ;;  %v4131_v57 = vpop.permute.xlu1 %4130 }
 0x871   :  { %v6501_v62 = vpop.eup %6500  ;;  %5975 = vmatprep.subr.bf16.mxu0 %v5974_v58  ;;  %5991 = vmatprep.subr.bf16.mxu1 %v5990_v26  ;;  %v5511_v28 = vadd.f32 -1.0, %v6499_v4  ;;  %v4076_v24 = vsel %vm4044_vm7, %v9618_v39, %v4012_v1  ;;  %vm4048_vm8 = vcmp.gt.f32.partialorder %v9651_v19, 0.0  ;;  %v4014_v48 = vmul.f32 1.6732632, %v5512_v51  ;;  %v6601_v10 = vld [vmem:[%s10421_s2 + $0x18] sm:$0xff] }
 0x872   :  { %v5514_v5 = vadd.f32 -1.0, %v6501_v62  ;;  %6508 = vpow2.f32 %v3954_v18  ;;  %5977 = vmatpush1.bf16.msra.mxu0 %v5976_v12  ;;  %5993 = vmatpush1.bf16.msra.mxu1 %v5992_v63  ;;  %v4108_v53 = vmul.f32 1.050701, %v4076_v24  ;;  %vm4046_vm9 = vcmp.gt.f32.partialorder %v9629_v60, 0.0 }
 0x873   :  { %v6503_v42 = vpop.eup %6502  ;;  %5979 = vmatprep.subr.bf16.mxu0 %v5978_v37  ;;  %5995 = vmatprep.subr.bf16.mxu1 %v5994_v56  ;;  %v4013_v32 = vmul.f32 1.6732632, %v5511_v28  ;;  %v4078_v63 = vsel %vm4046_vm9, %v9629_v60, %v4014_v48  ;;  %vm4045_vm10 = vcmp.gt.f32.partialorder %v9632_v30, 0.0  ;;  %vm4050_vm11 = vcmp.gt.f32.partialorder %v9678_v31, 0.0 }
 0x874   :  { %v4016_v29 = vmul.f32 1.6732632, %v5514_v5  ;;  %v5513_v23 = vadd.f32 -1.0, %v6503_v42  ;;  %vm4049_vm12 = vcmp.gt.f32.partialorder %v9682_v21, 0.0  ;;  %v4110_v13 = vmul.f32 1.050701, %v4078_v63 }
 0x875   :  { %vm4047_vm13 = vcmp.gt.f32.partialorder %v9635_v17, 0.0  ;;  %vm4051_vm14 = vcmp.gt.f32.partialorder %v9707_v25, 0.0  ;;  %v6611_v22 = vmov 8  }
 0x876   :  { %v4080_v35 = vsel %vm4048_vm8, %v9651_v19, %v4016_v29  ;;  %5981 = vmatpush1.bf16.msra.mxu0 %v5980_v44  ;;  %5997 = vmatpush1.bf16.msra.mxu1 %v5996_v49  ;;  %v4077_v19 = vsel %vm4045_vm10, %v9632_v30, %v4013_v32  ;;  %v4015_v0 = vmul.f32 1.6732632, %v5513_v23  ;;  %v5523_v49 = vld [vmem:[%s10420_s1 + $0x1e8] sm:$0xff]  ;;  %v4135_v29 = vpop.permute.xlu1 %4134 }
 0x877   :  { %v6505_v3 = vpop.eup %6504  ;;  %v4112_v54 = vmul.f32 1.050701, %v4080_v35  ;;  %v4109_v15 = vmul.f32 1.050701, %v4077_v19  ;;  %6060 = vset.pattern.permute.xlu1 %v6611_v22  ;;  %6061 = vset.pattern.permute.xlu0 %v6611_v22 }
 0x878   :  { %v6507_v36 = vpop.eup %6506  ;;  %v5516_v12 = vadd.f32 -1.0, %v6505_v3  ;;  %v4079_v30 = vsel %vm4047_vm13, %v9635_v17, %v4015_v0  ;;  %v5519_v17 = vld [vmem:[%s10420_s1 + $0x1c8] sm:$0xff]  ;;  %4669 = vperm.xlu1 %6060, %v6598_v2   ;;  %4673 = vperm.xlu0 %6061, %v6599_v6  }
 0x879   :  { %v5984_v55 = vpack.c.bf16 %v4112_v54, %v4108_v53  ;;  %v5515_v34 = vadd.f32 -1.0, %v6507_v36  ;;  %v4111_v47 = vmul.f32 1.050701, %v4079_v30 }
 0x87a   :  { %v4018_v39 = vmul.f32 1.6732632, %v5516_v12 }
 0x87b   :  { %v4017_v40 = vmul.f32 1.6732632, %v5515_v34 }
 0x87c   :  { %v4082_v33 = vsel %vm4050_vm11, %v9678_v31, %v4018_v39  ;;  %v6509_v20 = vpop.eup %6508  ;;  %4677 = vperm.xlu1 %6060, %v6600_v43  }
 0x87d   :  { %v4114_v9 = vmul.f32 1.050701, %v4082_v33  ;;  %v4081_v41 = vsel %vm4049_vm12, %v9682_v21, %v4017_v40  ;;  %v5517_v61 = vadd.f32 -1.0, %v6509_v20  ;;  %v5518_v21 = vld [vmem:[%s10420_s1 + $0x1c0] sm:$0xff] }
 0x87e   :  { %v4113_v60 = vmul.f32 1.050701, %v4081_v41 }
 0x87f   :  { %v6000_v11 = vpack.c.bf16 %v4114_v9, %v4110_v13  ;;  %v4019_v16 = vmul.f32 1.6732632, %v5517_v61 }
 0x880   :  { %v5982_v52 = vpack.c.bf16 %v4113_v60, %v4109_v15  ;;  %4681 = vperm.xlu1 %6060, %v6601_v10  }
 0x881   :  { %v4083_v31 = vsel %vm4051_vm14, %v9707_v25, %v4019_v16  ;;  %v5521_v25 = vld [vmem:[%s10420_s1 + $0x1d8] sm:$0xff] }
 0x882   :  { %5983 = vmatprep.subr.bf16.mxu0 %v5982_v52  ;;  %v4115_v44 = vmul.f32 1.050701, %v4083_v31  ;;  %v4139_v52 = vpop.permute.xlu0 %4138 }
 0x883   :  { %5985 = vmatpush1.bf16.msra.mxu0 %v5984_v55 }
 0x884   :  { %v5998_v14 = vpack.c.bf16 %v4115_v44, %v4111_v47 }
 0x886   :  { %5526 = vmatmul.mubr.msk.f32.vlgmr.msra.gmra.mrb[112].mxu0 %vm874_vm4, %v5518_v21  ;;  %5999 = vmatprep.subr.bf16.mxu1 %v5998_v14 }
 0x887   :  { %4251 = vmatprep.mubr.f32.mxu0 %v6603_v50  ;;  %6001 = vmatpush1.bf16.msra.mxu1 %v6000_v11 }
 0x88a   :  { %5527 = vmatmul.mubr.msk.f32.gmra.mrb[114].mxu0 %vm874_vm4, %v5519_v17  ;;  %5534 = vmatmul.mubr.msk.f32.vlgmr.msra.gmra.mrb[112].mxu1 %vm874_vm4, %v5518_v21 }
 0x88b   :  { %4257 = vmatprep.mubr.f32.mxu0 %v6603_v50  ;;  %4364 = vmatprep.mubr.f32.mxu1 %v6603_v50 }
 0x88e   :  { %5528 = vmatmul.mubr.msk.f32.gmra.mrb[116].mxu0 %vm874_vm4, %v5520_v46  ;;  %5535 = vmatmul.mubr.msk.f32.gmra.mrb[114].mxu1 %vm874_vm4, %v5519_v17 }
 0x88f   :  { %4263 = vmatprep.mubr.f32.mxu0 %v6603_v50  ;;  %4370 = vmatprep.mubr.f32.mxu1 %v6603_v50 }
 0x892   :  { %5529 = vmatmul.mubr.msk.f32.gmra.mrb[118].mxu0 %vm874_vm4, %v5521_v25  ;;  %5536 = vmatmul.mubr.msk.f32.gmra.mrb[116].mxu1 %vm874_vm4, %v5520_v46 }
 0x893   :  { %4269 = vmatprep.mubr.f32.mxu0 %v6603_v50  ;;  %4376 = vmatprep.mubr.f32.mxu1 %v6603_v50 }
 0x896   :  { %5530 = vmatmul.mubr.msk.f32.gmra.mrb[120].mxu0 %vm874_vm4, %v5522_v7  ;;  %5537 = vmatmul.mubr.msk.f32.gmra.mrb[118].mxu1 %vm874_vm4, %v5521_v25 }
 0x897   :  { %4275 = vmatprep.mubr.f32.mxu0 %v6603_v50  ;;  %4382 = vmatprep.mubr.f32.mxu1 %v6603_v50 }
 0x89a   :  { %5531 = vmatmul.mubr.msk.f32.gmra.mrb[122].mxu0 %vm874_vm4, %v5523_v49  ;;  %5538 = vmatmul.mubr.msk.f32.gmra.mrb[120].mxu1 %vm874_vm4, %v5522_v7 }
 0x89b   :  { %4281 = vmatprep.mubr.f32.mxu0 %v6603_v50  ;;  %4388 = vmatprep.mubr.f32.mxu1 %v6603_v50 }
 0x89e   :  { %5532 = vmatmul.mubr.msk.f32.gmra.mrb[124].mxu0 %vm874_vm4, %v5524_v45  ;;  %5539 = vmatmul.mubr.msk.f32.gmra.mrb[122].mxu1 %vm874_vm4, %v5523_v49 }
 0x89f   :  { %4287 = vmatprep.mubr.f32.mxu0 %v6603_v50  ;;  %4394 = vmatprep.mubr.f32.mxu1 %v6603_v50 }
 0x8a2   :  { %5533 = vmatmul.mubr.msk.f32.gmra.mrb[126].mxu0 %vm874_vm4, %v5525_v38  ;;  %5540 = vmatmul.mubr.msk.f32.gmra.mrb[124].mxu1 %vm874_vm4, %v5524_v45 }
 0x8a3   :  { %4760 = vmatprep.mubr.f32.mxu0 %v6603_v50  ;;  %4400 = vmatprep.mubr.f32.mxu1 %v6603_v50 }
 0x8a6   :  { %5541 = vmatmul.mubr.msk.f32.gmra.mrb[126].mxu1 %vm874_vm4, %v5525_v38 }
 0x8a7   :  { %4849 = vmatprep.mubr.f32.mxu1 %v6603_v50 }
 0x959   :  { %v4247_v8 = vpop.f32.mrb[112].mxu0 }
 0x95a   :  { %v9817_v4 = vadd.f32 %v4247_v8, %v4127_v27  ;;  %v4249_v59 = vpop.f32.mrb[113].mxu0 }
 0x95b   :  { %v9819_v1 = vadd.f32 %v4249_v59, %v4127_v27 }
 0x95c   :  { %v4407_v58 = vmin.f32 %v9817_v4, 0.0  ;;  %vm4567_vm15 = vcmp.gt.f32.partialorder %v9817_v4, 0.0 }
 0x95d   :  { %v4408_v26 = vmin.f32 %v9819_v1, 0.0  ;;  %v4253_v62 = vpop.f32.mrb[114].mxu0  ;;  %v4360_v37 = vpop.f32.mrb[112].mxu1  ;;  %vm4568_vm3 = vcmp.gt.f32.partialorder %v9819_v1, 0.0 }
 0x95e   :  { %v4439_v18 = vmul.f32 1.442695, %v4407_v58  ;;  %v9823_v51 = vadd.f32 %v4253_v62, %v4131_v57  ;;  %v4255_v5 = vpop.f32.mrb[115].mxu0  ;;  %v9825_v56 = vadd.f32 %v4360_v37, %v4127_v27  ;;  %v4362_v28 = vpop.f32.mrb[113].mxu1 }
 0x95f   :  { %v4441_v42 = vmul.f32 1.442695, %v4408_v26  ;;  %v9827_v24 = vadd.f32 %v4255_v5, %v4131_v57  ;;  %v9829_v48 = vadd.f32 %v4362_v28, %v4127_v27 }
 0x960   :  { %6510 = vpow2.f32 %v4439_v18  ;;  %v4411_v35 = vmin.f32 %v9823_v51, 0.0  ;;  %v4409_v3 = vmin.f32 %v9825_v56, 0.0  ;;  %vm4571_vm1 = vcmp.gt.f32.partialorder %v9823_v51, 0.0 }
 0x961   :  { %v4259_v53 = vpop.f32.mrb[116].mxu0  ;;  %v4410_v32 = vmin.f32 %v9829_v48, 0.0  ;;  %v4366_v36 = vpop.f32.mrb[114].mxu1  ;;  %v4412_v23 = vmin.f32 %v9827_v24, 0.0  ;;  %6512 = vpow2.f32 %v4441_v42  ;;  %vm4569_vm2 = vcmp.gt.f32.partialorder %v9825_v56, 0.0 }
 0x962   :  { %v4447_v54 = vmul.f32 1.442695, %v4411_v35  ;;  %v4443_v12 = vmul.f32 1.442695, %v4409_v3  ;;  %v9835_v55 = vadd.f32 %v4366_v36, %v4131_v57  ;;  %v4368_v34 = vpop.f32.mrb[115].mxu1  ;;  %v9837_v63 = vadd.f32 %v4259_v53, %v4135_v29  ;;  %v4261_v39 = vpop.f32.mrb[117].mxu0 }
 0x963   :  { %v4445_v19 = vmul.f32 1.442695, %v4410_v32  ;;  %v9839_v40 = vadd.f32 %v4368_v34, %v4131_v57  ;;  %v4449_v13 = vmul.f32 1.442695, %v4412_v23  ;;  %v9844_v15 = vadd.f32 %v4261_v39, %v4135_v29 }
 0x964   :  { %6514 = vpow2.f32 %v4447_v54  ;;  %v4413_v0 = vmin.f32 %v9835_v55, 0.0  ;;  %v4415_v33 = vmin.f32 %v9837_v63, 0.0  ;;  %vm4570_vm5 = vcmp.gt.f32.partialorder %v9829_v48, 0.0 }
 0x965   :  { %6516 = vpow2.f32 %v4443_v12  ;;  %v4265_v20 = vpop.f32.mrb[118].mxu0  ;;  %v4414_v9 = vmin.f32 %v9839_v40, 0.0  ;;  %v4372_v41 = vpop.f32.mrb[116].mxu1  ;;  %v4416_v17 = vmin.f32 %v9844_v15, 0.0  ;;  %vm4573_vm6 = vcmp.gt.f32.partialorder %v9835_v55, 0.0 }
 0x966   :  { %v4267_v60 = vpop.f32.mrb[119].mxu0  ;;  %6518 = vpow2.f32 %v4445_v19  ;;  %v4451_v61 = vmul.f32 1.442695, %v4413_v0  ;;  %v4455_v11 = vmul.f32 1.442695, %v4415_v33  ;;  %v9846_v30 = vadd.f32 %v4372_v41, %v4135_v29  ;;  %v4374_v16 = vpop.f32.mrb[117].mxu1 }
 0x967   :  { %v9849_v47 = vadd.f32 %v4265_v20, %v4139_v52  ;;  %v4453_v14 = vmul.f32 1.442695, %v4414_v9  ;;  %v9854_v46 = vadd.f32 %v4374_v16, %v4135_v29  ;;  %v4457_v57 = vmul.f32 1.442695, %v4416_v17 }
 0x968   :  { %6520 = vpow2.f32 %v4451_v61  ;;  %v4417_v31 = vmin.f32 %v9846_v30, 0.0  ;;  %v9864_v59 = vadd.f32 %v4267_v60, %v4139_v52  ;;  %vm4572_vm7 = vcmp.gt.f32.partialorder %v9827_v24, 0.0 }
 0x969   :  { %v9851_v44 = vpop.f32.mrb[120].mxu0  ;;  %6522 = vpow2.f32 %v4449_v13  ;;  %v4378_v25 = vpop.f32.mrb[118].mxu1  ;;  %v4419_v38 = vmin.f32 %v9849_v47, 0.0  ;;  %v4418_v37 = vmin.f32 %v9854_v46, 0.0  ;;  %vm4574_vm8 = vcmp.gt.f32.partialorder %v9839_v40, 0.0 }
 0x96a   :  { %v6511_v21 = vpop.eup %6510  ;;  %v9856_v7 = vpop.f32.mrb[121].mxu0  ;;  %6524 = vpow2.f32 %v4455_v11  ;;  %v4459_v45 = vmul.f32 1.442695, %v4417_v31  ;;  %v9859_v10 = vadd.f32 %v4378_v25, %v4139_v52  ;;  %v4420_v23 = vmin.f32 %v9864_v59, 0.0 }
 0x96b   :  { %v5542_v49 = vadd.f32 -1.0, %v6511_v21  ;;  %v4380_v22 = vpop.f32.mrb[119].mxu1  ;;  %v6513_v2 = vpop.eup %6512  ;;  %v4463_v43 = vmul.f32 1.442695, %v4419_v38  ;;  %vm4575_vm9 = vcmp.gt.f32.partialorder %v9837_v63, 0.0  ;;  %vm4577_vm10 = vcmp.gt.f32.partialorder %v9846_v30, 0.0 }
 0x96c   :  { %6526 = vpow2.f32 %v4459_v45  ;;  %v4421_v5 = vmin.f32 %v9859_v10, 0.0  ;;  %v9875_v35 = vadd.f32 %v4380_v22, %v4139_v52  ;;  %v5543_v53 = vadd.f32 -1.0, %v6513_v2 }
 0x96d   :  { %v4535_v6 = vmul.f32 1.6732632, %v5542_v49  ;;  %v9861_v27 = vpop.f32.mrb[122].mxu0  ;;  %6528 = vpow2.f32 %v4453_v14  ;;  %v9866_v58 = vpop.f32.mrb[120].mxu1  ;;  %v4465_v31 = vmul.f32 1.442695, %v4420_v23 }
 0x96e   :  { %v6515_v8 = vpop.eup %6514  ;;  %v9868_v26 = vpop.f32.mrb[123].mxu0  ;;  %6530 = vpow2.f32 %v4463_v43  ;;  %v4467_v36 = vmul.f32 1.442695, %v4421_v5  ;;  %v4422_v9 = vmin.f32 %v9875_v35, 0.0  ;;  %v4536_v61 = vmul.f32 1.6732632, %v5543_v53 }
 0x96f   :  { %v6517_v62 = vpop.eup %6516  ;;  %v5546_v18 = vadd.f32 -1.0, %v6515_v8  ;;  %v9872_v42 = vpop.f32.mrb[121].mxu1  ;;  %v4599_v28 = vsel %vm4567_vm15, %v9817_v4, %v4535_v6  ;;  %6532 = vpow2.f32 %v4457_v57  ;;  %v4461_v4 = vmul.f32 1.442695, %v4418_v37 }
 0x970   :  { %v5544_v29 = vadd.f32 -1.0, %v6517_v62  ;;  %v6519_v3 = vpop.eup %6518  ;;  %v9880_v34 = vmul.f32 1.050701, %v4599_v28  ;;  %6534 = vpow2.f32 %v4467_v36  ;;  %v4469_v22 = vmul.f32 1.442695, %v4422_v9  ;;  %v4143_v53 = vpop.permute.xlu1 %4142 }
 0x971   :  { %v4539_v32 = vmul.f32 1.6732632, %v5546_v18  ;;  %v9883_v19 = vpop.f32.mrb[122].mxu1  ;;  %v5545_v33 = vadd.f32 -1.0, %v6519_v3  ;;  %6536 = vpow2.f32 %v4461_v4  ;;  %v4600_v57 = vsel %vm4568_vm3, %v9819_v1, %v4536_v61 }
 0x972   :  { %v4537_v54 = vmul.f32 1.6732632, %v5544_v29  ;;  %v6521_v12 = vpop.eup %6520  ;;  %v9888_v41 = vpop.f32.mrb[123].mxu1  ;;  %6538 = vpow2.f32 %v4465_v31  ;;  %vm4579_vm11 = vcmp.gt.f32.partialorder %v9849_v47, 0.0  ;;  %vm4581_vm12 = vcmp.gt.f32.partialorder %v9859_v10, 0.0 }
 0x973   :  { %v4603_v39 = vsel %vm4571_vm1, %v9823_v51, %v4539_v32  ;;  %v6523_v0 = vpop.eup %6522  ;;  %v5548_v13 = vadd.f32 -1.0, %v6521_v12  ;;  %v9892_v51 = vpop.f32.mrb[124].mxu0  ;;  %v4538_v38 = vmul.f32 1.6732632, %v5545_v33  ;;  %v9926_v32 = vmul.f32 1.050701, %v4600_v57 }
 0x974   :  { %v9885_v20 = vmul.f32 1.050701, %v4603_v39  ;;  %v6525_v60 = vpop.eup %6524  ;;  %v4601_v11 = vsel %vm4569_vm2, %v9825_v56, %v4537_v54  ;;  %v9901_v14 = vpop.f32.mrb[125].mxu0  ;;  %v5547_v25 = vadd.f32 -1.0, %v6523_v0  ;;  %6540 = vpow2.f32 %v4469_v22 }
 0x975   :  { %v4541_v52 = vmul.f32 1.6732632, %v5548_v13  ;;  %v9899_v21 = vpop.f32.mrb[124].mxu1  ;;  %v5550_v49 = vadd.f32 -1.0, %v6525_v60  ;;  %v9908_v6 = vpop.f32.mrb[126].mxu0  ;;  %v4602_v36 = vsel %vm4570_vm5, %v9829_v48, %v4538_v38  ;;  %v9937_v39 = vadd.f32 %v9851_v44, %v4143_v53 }
 0x976   :  { %v6004_v16 = vpack.c.bf16 %v9885_v20, %v9880_v34  ;;  %v6527_v17 = vpop.eup %6526  ;;  %v9906_v2 = vpop.f32.mrb[125].mxu1  ;;  %v9910_v8 = vmul.f32 1.050701, %v4601_v11  ;;  %v4540_v28 = vmul.f32 1.6732632, %v5547_v25  ;;  %v9942_v33 = vadd.f32 %v9866_v58, %v4143_v53 }
 0x977   :  { %v6529_v45 = vpop.eup %6528  ;;  %v4605_v56 = vsel %vm4573_vm6, %v9835_v55, %v4541_v52  ;;  %v4543_v18 = vmul.f32 1.6732632, %v5550_v49  ;;  %v5552_v55 = vadd.f32 -1.0, %v6527_v17  ;;  %v9924_v1 = vpop.f32.mrb[127].mxu0  ;;  %v9945_v13 = vadd.f32 %v9856_v7, %v4143_v53 }
 0x978   :  { %v6531_v43 = vpop.eup %6530  ;;  %v9915_v62 = vmul.f32 1.050701, %v4605_v56  ;;  %v5549_v29 = vadd.f32 -1.0, %v6529_v45  ;;  %v9948_v9 = vadd.f32 %v9872_v42, %v4143_v53  ;;  %v4423_v61 = vmin.f32 %v9937_v39, 0.0  ;;  %v4147_v56 = vpop.permute.xlu0 %4146 }
 0x979   :  { %v5554_v37 = vadd.f32 -1.0, %v6531_v43  ;;  %v9922_v3 = vpop.f32.mrb[126].mxu1  ;;  %v6533_v54 = vpop.eup %6532  ;;  %v4607_v23 = vsel %vm4575_vm9, %v9837_v63, %v4543_v18  ;;  %v4545_v0 = vmul.f32 1.6732632, %v5552_v55  ;;  %v4604_v63 = vsel %vm4572_vm7, %v9827_v24, %v4540_v28 }
 0x97a   :  { %v6020_v5 = vpack.c.bf16 %v9915_v62, %v9910_v8  ;;  %v9939_v4 = vpop.f32.mrb[127].mxu1  ;;  %v6535_v48 = vpop.eup %6534  ;;  %v4542_v60 = vmul.f32 1.6732632, %v5549_v29  ;;  %v9957_v58 = vmul.f32 1.050701, %v4607_v23  ;;  %v4425_v42 = vmin.f32 %v9942_v33, 0.0 }
 0x97b   :  { %v4547_v12 = vmul.f32 1.6732632, %v5554_v37  ;;  %v5556_v7 = vadd.f32 -1.0, %v6535_v48  ;;  %v5551_v52 = vadd.f32 -1.0, %v6533_v54  ;;  %vm4576_vm13 = vcmp.gt.f32.partialorder %v9844_v15, 0.0  ;;  %v6537_v25 = vpop.eup %6536  ;;  %v4151_v48 = vpop.permute.xlu1 %4150 }
 0x97c   :  { %v4471_v31 = vmul.f32 1.442695, %v4423_v61  ;;  %v4424_v24 = vmin.f32 %v9945_v13, 0.0  ;;  %v4426_v17 = vmin.f32 %v9948_v9, 0.0  ;;  %v4475_v38 = vmul.f32 1.442695, %v4425_v42  ;;  %v6539_v18 = vpop.eup %6538 }
 0x97d   :  { %v4611_v44 = vsel %vm4579_vm11, %v9849_v47, %v4547_v12  ;;  %v4609_v47 = vsel %vm4577_vm10, %v9846_v30, %v4545_v0  ;;  %v4549_v45 = vmul.f32 1.6732632, %v5556_v7  ;;  %v4606_v22 = vsel %vm4574_vm8, %v9839_v40, %v4542_v60 }
 0x97e   :  { %v9959_v11 = vmul.f32 1.050701, %v4611_v44  ;;  %6542 = vpow2.f32 %v4471_v31  ;;  %v4473_v43 = vmul.f32 1.442695, %v4424_v24  ;;  %v4477_v57 = vmul.f32 1.442695, %v4426_v17  ;;  %v6541_v53 = vpop.eup %6540 }
 0x97f   :  { %v4613_v55 = vsel %vm4581_vm12, %v9859_v10, %v4549_v45  ;;  %6544 = vpow2.f32 %v4475_v38  ;;  %v9977_v30 = vadd.f32 %v9861_v27, %v4147_v56  ;;  %v9980_v37 = vadd.f32 %v9883_v19, %v4147_v56 }
 0x980   :  { %v6008_v49 = vpack.c.bf16 %v9959_v11, %v9957_v58  ;;  %v9982_v28 = vmul.f32 1.050701, %v4609_v47  ;;  %vm4578_vm14 = vcmp.gt.f32.partialorder %v9854_v46, 0.0  ;;  %v9985_v40 = vmul.f32 1.050701, %v4613_v55 }
 0x981   :  { %6546 = vpow2.f32 %v4473_v43  ;;  %v9988_v29 = vadd.f32 %v9868_v26, %v4147_v56  ;;  %v4544_v54 = vmul.f32 1.6732632, %v5551_v52  ;;  %v5553_v10 = vadd.f32 -1.0, %v6537_v25 }
 0x982   :  { %vm4580_vm15 = vcmp.gt.f32.partialorder %v9864_v59, 0.0  ;;  %6548 = vpow2.f32 %v4477_v57  ;;  %v4427_v27 = vmin.f32 %v9977_v30, 0.0  ;;  %v9992_v19 = vmul.f32 1.050701, %v4602_v36  ;;  %v10025_v57 = vpop.permute.xlu0 %4154 }
 0x983   :  { %v6024_v23 = vpack.c.bf16 %v9985_v40, %v9982_v28  ;;  %v5555_v12 = vadd.f32 -1.0, %v6539_v18  ;;  %v4429_v0 = vmin.f32 %v9980_v37, 0.0  ;;  %v9997_v60 = vmul.f32 1.050701, %v4604_v63 }
 0x984   :  { %v9999_v26 = vmul.f32 1.050701, %v4606_v22  ;;  %v4479_v44 = vmul.f32 1.442695, %v4427_v27  ;;  %v10002_v61 = vadd.f32 %v9888_v41, %v4147_v56  ;;  %v5557_v7 = vadd.f32 -1.0, %v6541_v53 }
 0x985   :  { %v4483_v42 = vmul.f32 1.442695, %v4429_v0  ;;  %v4428_v36 = vmin.f32 %v9988_v29, 0.0  ;;  %v10006_v52 = vadd.f32 %v9892_v51, %v4151_v48  ;;  %v10011_v31 = vsel %vm4576_vm13, %v9844_v15, %v4544_v54 }
 0x986   :  { %v4546_v63 = vmul.f32 1.6732632, %v5553_v10  ;;  %6550 = vpow2.f32 %v4479_v44  ;;  %v4430_v24 = vmin.f32 %v10002_v61, 0.0  ;;  %v4548_v17 = vmul.f32 1.6732632, %v5555_v12 }
 0x987   :  { %6552 = vpow2.f32 %v4483_v42  ;;  %v4481_v41 = vmul.f32 1.442695, %v4428_v36  ;;  %v4431_v25 = vmin.f32 %v10006_v52, 0.0  ;;  %vm4582_vm1 = vcmp.gt.f32.partialorder %v9875_v35, 0.0 }
 0x988   :  { %v4485_v47 = vmul.f32 1.442695, %v4430_v24  ;;  %v10017_v51 = vadd.f32 %v9899_v21, %v4151_v48  ;;  %v10020_v45 = vadd.f32 %v9901_v14, %v4151_v48  ;;  %v6543_v15 = vpop.eup %6542  ;;  %v4550_v38 = vmul.f32 1.6732632, %v5557_v7 }
 0x989   :  { %6554 = vpow2.f32 %v4481_v41  ;;  %v4487_v56 = vmul.f32 1.442695, %v4431_v25  ;;  %v10023_v22 = vadd.f32 %v9906_v2, %v4151_v48  ;;  %v6545_v43 = vpop.eup %6544  ;;  %v10030_v18 = vsel %vm4578_vm14, %v9854_v46, %v4546_v63 }
 0x98a   :  { %v5558_v21 = vadd.f32 -1.0, %v6543_v15  ;;  %6556 = vpow2.f32 %v4485_v47  ;;  %v4433_v14 = vmin.f32 %v10017_v51, 0.0  ;;  %v4612_v53 = vsel %vm4580_vm15, %v9864_v59, %v4548_v17 }
 0x98b   :  { %v6547_v55 = vpop.eup %6546  ;;  %v5560_v54 = vadd.f32 -1.0, %v6545_v43  ;;  %v4432_v2 = vmin.f32 %v10020_v45, 0.0  ;;  %v10039_v10 = vadd.f32 %v9908_v6, %v10025_v57  ;;  %6558 = vpow2.f32 %v4487_v56 }
 0x98c   :  { %v6549_v27 = vpop.eup %6548  ;;  %v4551_v12 = vmul.f32 1.6732632, %v5558_v21  ;;  %v5559_v46 = vadd.f32 -1.0, %v6547_v55  ;;  %v4491_v0 = vmul.f32 1.442695, %v4433_v14  ;;  %v4614_v48 = vsel %vm4582_vm1, %v9875_v35, %v4550_v38 }
 0x98d   :  { %vm4583_vm2 = vcmp.gt.f32.partialorder %v9937_v39, 0.0  ;;  %v4553_v44 = vmul.f32 1.6732632, %v5560_v54  ;;  %v4434_v59 = vmin.f32 %v10023_v22, 0.0  ;;  %vm4585_vm3 = vcmp.gt.f32.partialorder %v9942_v33, 0.0 }
 0x98e   :  { %v4615_v7 = vsel %vm4583_vm2, %v9937_v39, %v4551_v12  ;;  %v5561_v6 = vadd.f32 -1.0, %v6549_v27  ;;  %vm4587_vm5 = vcmp.gt.f32.partialorder %v9977_v30, 0.0  ;;  %v10049_v42 = vmul.f32 1.050701, %v4612_v53 }
 0x98f   :  { %vm4589_vm6 = vcmp.gt.f32.partialorder %v9980_v37, 0.0  ;;  %vm4588_vm7 = vcmp.gt.f32.partialorder %v9988_v29, 0.0  ;;  %v4489_v36 = vmul.f32 1.442695, %v4432_v2  ;;  %v10053_v63 = vmul.f32 1.050701, %v4614_v48 }
 0x990   :  { %v6551_v35 = vpop.eup %6550  ;;  %v4552_v24 = vmul.f32 1.6732632, %v5559_v46  ;;  %vm4584_vm8 = vcmp.gt.f32.partialorder %v9945_v13, 0.0  ;;  %vm4590_vm9 = vcmp.gt.f32.partialorder %v10002_v61, 0.0  ;;  %6560 = vpow2.f32 %v4491_v0 }
 0x991   :  { %v4435_v39 = vmin.f32 %v10039_v10, 0.0  ;;  %v6553_v17 = vpop.eup %6552  ;;  %v10058_v41 = vmul.f32 1.050701, %v4615_v7  ;;  %v4617_v25 = vsel %vm4585_vm3, %v9942_v33, %v4553_v44  ;;  %vm4586_vm10 = vcmp.gt.f32.partialorder %v9948_v9, 0.0 }
 0x992   :  { %v5562_v47 = vadd.f32 -1.0, %v6551_v35  ;;  %v4493_v15 = vmul.f32 1.442695, %v4434_v59  ;;  %v4554_v38 = vmul.f32 1.6732632, %v5561_v6  ;;  %v5564_v56 = vadd.f32 -1.0, %v6553_v17 }
 0x993   :  { %v4495_v43 = vmul.f32 1.442695, %v4435_v39  ;;  %v10066_v21 = vadd.f32 %v9922_v3, %v10025_v57  ;;  %v6555_v14 = vpop.eup %6554  ;;  %6562 = vpow2.f32 %v4489_v36  ;;  %v10070_v53 = vadd.f32 %v9924_v1, %v10025_v57 }
 0x994   :  { %v4555_v55 = vmul.f32 1.6732632, %v5562_v47  ;;  %v6002_v33 = vpack.c.bf16 %v9997_v60, %v9926_v32  ;;  %v6557_v54 = vpop.eup %6556  ;;  %v4557_v2 = vmul.f32 1.6732632, %v5564_v56  ;;  %v5563_v27 = vadd.f32 -1.0, %v6555_v14 }
 0x995   :  { %6564 = vpow2.f32 %v4495_v43  ;;  %v4437_v12 = vmin.f32 %v10066_v21, 0.0  ;;  %v10075_v46 = vmul.f32 1.050701, %v4617_v25  ;;  %v5565_v0 = vadd.f32 -1.0, %v6557_v54  ;;  %v6559_v1 = vpop.eup %6558 }
 0x996   :  { %v4619_v3 = vsel %vm4587_vm5, %v9977_v30, %v4555_v55  ;;  %v4436_v48 = vmin.f32 %v10070_v53, 0.0  ;;  %6003 = vmatprep.subr.bf16.mxu0 %v6002_v33  ;;  %v4621_v32 = vsel %vm4589_vm6, %v9980_v37, %v4557_v2  ;;  %v4556_v60 = vmul.f32 1.6732632, %v5563_v27 }
 0x997   :  { %v4651_v44 = vmul.f32 1.050701, %v4619_v3  ;;  %6566 = vpow2.f32 %v4493_v15  ;;  %6005 = vmatpush1.bf16.msra.mxu0 %v6004_v16  ;;  %v4653_v59 = vmul.f32 1.050701, %v4621_v32  ;;  %v4558_v7 = vmul.f32 1.6732632, %v5565_v0 }
 0x998   :  { %v4499_v6 = vmul.f32 1.442695, %v4437_v12  ;;  %v6018_v30 = vpack.c.bf16 %v9999_v26, %v9992_v19  ;;  %v4620_v35 = vsel %vm4588_vm7, %v9988_v29, %v4556_v60  ;;  %v4497_v39 = vmul.f32 1.442695, %v4436_v48 }
 0x999   :  { %v6012_v36 = vpack.c.bf16 %v4651_v44, %v10058_v41  ;;  %v10095_v37 = vadd.f32 %v9939_v4, %v10025_v57  ;;  %v4616_v34 = vsel %vm4584_vm8, %v9945_v13, %v4552_v24  ;;  %v6028_v20 = vpack.c.bf16 %v4653_v59, %v10075_v46 }
 0x99a   :  { %v4622_v16 = vsel %vm4590_vm9, %v10002_v61, %v4558_v7  ;;  %v5566_v19 = vadd.f32 -1.0, %v6559_v1  ;;  %6019 = vmatprep.subr.bf16.mxu1 %v6018_v30  ;;  %v6561_v26 = vpop.eup %6560  ;;  %v4618_v29 = vsel %vm4586_vm10, %v9948_v9, %v4554_v38  ;;  %v4652_v17 = vmul.f32 1.050701, %v4620_v35 }
 0x99b   :  { %6568 = vpow2.f32 %v4499_v6  ;;  %6021 = vmatpush1.bf16.msra.mxu1 %v6020_v5  ;;  %v4640_v4 = vmul.f32 1.050701, %v10011_v31  ;;  %v4642_v13 = vmul.f32 1.050701, %v10030_v18  ;;  %v4654_v57 = vmul.f32 1.050701, %v4622_v16 }
 0x99c   :  { %6570 = vpow2.f32 %v4497_v39  ;;  %v4648_v61 = vmul.f32 1.050701, %v4616_v34  ;;  %v4438_v24 = vmin.f32 %v10095_v37, 0.0  ;;  %v4650_v25 = vmul.f32 1.050701, %v4618_v29  ;;  %v5576_v39 = vld [vmem:[%s10420_s1 + $0x210] sm:$0xff]  ;;  %v4670_v34 = vpop.permute.xlu1 %4669  ;;  %v4674_v29 = vpop.permute.xlu0 %4673 }
 0x99d   :  { %v6563_v41 = vpop.eup %6562  ;;  %v4559_v47 = vmul.f32 1.6732632, %v5566_v19  ;;  %v6006_v9 = vpack.c.bf16 %v10049_v42, %v4640_v4  ;;  %v6022_v15 = vpack.c.bf16 %v10053_v63, %v4642_v13  ;;  %v5568_v62 = vadd.f32 -1.0, %v6561_v26 }
 0x99e   :  { %v4501_v56 = vmul.f32 1.442695, %v4438_v24  ;;  %v6010_v8 = vpack.c.bf16 %v4652_v17, %v4648_v61  ;;  %v6026_v31 = vpack.c.bf16 %v4654_v57, %v4650_v25  ;;  %vm4591_vm11 = vcmp.gt.f32.partialorder %v10006_v52, 0.0 }
 0x99f   :  { %v6565_v38 = vpop.eup %6564  ;;  %6007 = vmatprep.subr.bf16.mxu0 %v6006_v9  ;;  %6023 = vmatprep.subr.bf16.mxu1 %v6022_v15  ;;  %v5567_v43 = vadd.f32 -1.0, %v6563_v41  ;;  %v4623_v42 = vsel %vm4591_vm11, %v10006_v52, %v4559_v47  ;;  %vm4595_vm12 = vcmp.gt.f32.partialorder %v10039_v10, 0.0  ;;  %v4561_v14 = vmul.f32 1.6732632, %v5568_v62 }
 0x9a0   :  { %v5570_v5 = vadd.f32 -1.0, %v6565_v38  ;;  %6572 = vpow2.f32 %v4501_v56  ;;  %6009 = vmatpush1.bf16.msra.mxu0 %v6008_v49  ;;  %6025 = vmatpush1.bf16.msra.mxu1 %v6024_v23  ;;  %v4655_v54 = vmul.f32 1.050701, %v4623_v42  ;;  %vm4593_vm13 = vcmp.gt.f32.partialorder %v10017_v51, 0.0  ;;  %v4678_v61 = vpop.permute.xlu1 %4677 }
 0x9a1   :  { %v6567_v18 = vpop.eup %6566  ;;  %6011 = vmatprep.subr.bf16.mxu0 %v6010_v8  ;;  %6027 = vmatprep.subr.bf16.mxu1 %v6026_v31  ;;  %v4560_v2 = vmul.f32 1.6732632, %v5567_v43  ;;  %v4625_v23 = vsel %vm4593_vm13, %v10017_v51, %v4561_v14  ;;  %vm4592_vm14 = vcmp.gt.f32.partialorder %v10020_v45, 0.0  ;;  %vm4597_vm15 = vcmp.gt.f32.partialorder %v10066_v21, 0.0 }
 0x9a2   :  { %v4563_v63 = vmul.f32 1.6732632, %v5570_v5  ;;  %v5569_v11 = vadd.f32 -1.0, %v6567_v18  ;;  %vm4596_vm1 = vcmp.gt.f32.partialorder %v10070_v53, 0.0  ;;  %v4657_v48 = vmul.f32 1.050701, %v4625_v23 }
 0x9a3   :  { %vm4594_vm2 = vcmp.gt.f32.partialorder %v10023_v22, 0.0  ;;  %vm4598_vm3 = vcmp.gt.f32.partialorder %v10095_v37, 0.0 }
 0x9a4   :  { %v4627_v55 = vsel %vm4595_vm12, %v10039_v10, %v4563_v63  ;;  %6013 = vmatpush1.bf16.msra.mxu0 %v6012_v36  ;;  %6029 = vmatpush1.bf16.msra.mxu1 %v6028_v20  ;;  %v4624_v10 = vsel %vm4592_vm14, %v10020_v45, %v4560_v2  ;;  %v4562_v46 = vmul.f32 1.6732632, %v5569_v11  ;;  %v4682_v56 = vpop.permute.xlu1 %4681 }
 0x9a5   :  { %v6569_v33 = vpop.eup %6568  ;;  %v4659_v27 = vmul.f32 1.050701, %v4627_v55  ;;  %v4656_v32 = vmul.f32 1.050701, %v4624_v10 }
 0x9a6   :  { %v6571_v58 = vpop.eup %6570  ;;  %v5572_v49 = vadd.f32 -1.0, %v6569_v33  ;;  %v4626_v45 = vsel %vm4594_vm2, %v10023_v22, %v4562_v46  ;;  %v5575_v22 = vld [vmem:[%s10420_s1 + $0x208] sm:$0xff] }
 0x9a7   :  { %v6016_v28 = vpack.c.bf16 %v4659_v27, %v4655_v54  ;;  %v5571_v40 = vadd.f32 -1.0, %v6571_v58  ;;  %v4658_v30 = vmul.f32 1.050701, %v4626_v45 }
 0x9a8   :  { %v4565_v52 = vmul.f32 1.6732632, %v5572_v49 }
 0x9a9   :  { %v4564_v12 = vmul.f32 1.6732632, %v5571_v40 }
 0x9aa   :  { %v4629_v3 = vsel %vm4597_vm15, %v10066_v21, %v4565_v52  ;;  %v6573_v0 = vpop.eup %6572 }
 0x9ab   :  { %v4661_v1 = vmul.f32 1.050701, %v4629_v3  ;;  %v4628_v44 = vsel %vm4596_vm1, %v10070_v53, %v4564_v12  ;;  %v5573_v60 = vadd.f32 -1.0, %v6573_v0  ;;  %v5574_v53 = vld [vmem:[%s10420_s1 + $0x200] sm:$0xff] }
 0x9ac   :  { %v4660_v51 = vmul.f32 1.050701, %v4628_v44 }
 0x9ad   :  { %v6032_v59 = vpack.c.bf16 %v4661_v1, %v4657_v48  ;;  %v4566_v7 = vmul.f32 1.6732632, %v5573_v60 }
 0x9ae   :  { %v6014_v6 = vpack.c.bf16 %v4660_v51, %v4656_v32 }
 0x9af   :  { %v4630_v21 = vsel %vm4598_vm3, %v10095_v37, %v4566_v7  ;;  %v5577_v37 = vld [vmem:[%s10420_s1 + $0x218] sm:$0xff] }
 0x9b0   :  { %6015 = vmatprep.subr.bf16.mxu0 %v6014_v6  ;;  %v4662_v36 = vmul.f32 1.050701, %v4630_v21 }
 0x9b1   :  { %6017 = vmatpush1.bf16.msra.mxu0 %v6016_v28 }
 0x9b2   :  { %v6030_v35 = vpack.c.bf16 %v4662_v36, %v4658_v30 }
 0x9b4   :  { %5578 = vmatmul.mubr.msk.f32.vlgmr.msra.gmra.mrb[128].mxu0 %vm874_vm4, %v5574_v53  ;;  %6031 = vmatprep.subr.bf16.mxu1 %v6030_v35 }
 0x9b5   :  { %4766 = vmatprep.mubr.f32.mxu0 %v6603_v50  ;;  %6033 = vmatpush1.bf16.msra.mxu1 %v6032_v59 }
 0x9b8   :  { %5579 = vmatmul.mubr.msk.f32.gmra.mrb[130].mxu0 %vm874_vm4, %v5575_v22  ;;  %5582 = vmatmul.mubr.msk.f32.vlgmr.msra.gmra.mrb[128].mxu1 %vm874_vm4, %v5574_v53 }
 0x9b9   :  { %4772 = vmatprep.mubr.f32.mxu0 %v6603_v50  ;;  %4855 = vmatprep.mubr.f32.mxu1 %v6603_v50 }
 0x9bc   :  { %5580 = vmatmul.mubr.msk.f32.gmra.mrb[132].mxu0 %vm874_vm4, %v5576_v39  ;;  %5583 = vmatmul.mubr.msk.f32.gmra.mrb[130].mxu1 %vm874_vm4, %v5575_v22 }
 0x9bd   :  { %4778 = vmatprep.mubr.f32.mxu0 %v6603_v50  ;;  %4861 = vmatprep.mubr.f32.mxu1 %v6603_v50 }
 0x9c0   :  { %5581 = vmatmul.mubr.msk.f32.gmra.mrb[134].mxu0 %vm874_vm4, %v5577_v37  ;;  %5584 = vmatmul.mubr.msk.f32.gmra.mrb[132].mxu1 %vm874_vm4, %v5576_v39 }
 0x9c1   :  { %4867 = vmatprep.mubr.f32.mxu1 %v6603_v50 }
 0x9c4   :  { %5585 = vmatmul.mubr.msk.f32.gmra.mrb[134].mxu1 %vm874_vm4, %v5577_v37 }
 0xa87   :  { %v4762_v20 = vpop.f32.mrb[128].mxu0 }
 0xa88   :  { %v4763_v16 = vadd.f32 %v4762_v20, %v4670_v34  ;;  %v4764_v19 = vpop.f32.mrb[129].mxu0 }
 0xa89   :  { %v4765_v26 = vadd.f32 %v4764_v19, %v4670_v34 }
 0xa8a   :  { %4874 = vxpose.xlu0.b32.start [1/4] (short) %v4763_v16, 128 }
 0xa8b   :  { %v4768_v17 = vpop.f32.mrb[130].mxu0  ;;  %4906 = vxpose.xlu1.b32.start [1/4] (short) %v4765_v26, 128  ;;  %v4851_v13 = vpop.f32.mrb[128].mxu1 }
 0xa8c   :  { %v4769_v4 = vadd.f32 %v4768_v17, %v4674_v29  ;;  %v4770_v57 = vpop.f32.mrb[131].mxu0  ;;  %v4853_v41 = vpop.f32.mrb[129].mxu1  ;;  %v4852_v14 = vadd.f32 %v4851_v13, %v4670_v34 }
 0xa8d   :  { %v4771_v24 = vadd.f32 %v4770_v57, %v4674_v29  ;;  %v4854_v55 = vadd.f32 %v4853_v41, %v4670_v34 }
 0xa8e   :  { %4875 = vxpose.xlu0.b32.cont [2/4] (short) %v4769_v4, 128 }
 0xa8f   :  { %v4774_v25 = vpop.f32.mrb[132].mxu0  ;;  %4907 = vxpose.xlu1.b32.cont [2/4] (short) %v4771_v24, 128  ;;  %v4857_v50 = vpop.f32.mrb[130].mxu1 }
 0xa90   :  { %v4775_v47 = vadd.f32 %v4774_v25, %v4678_v61  ;;  %v4776_v9 = vpop.f32.mrb[133].mxu0  ;;  %v4859_v15 = vpop.f32.mrb[131].mxu1  ;;  %v4858_v33 = vadd.f32 %v4857_v50, %v4674_v29 }
 0xa91   :  { %v4777_v38 = vadd.f32 %v4776_v9, %v4678_v61  ;;  %v4860_v54 = vadd.f32 %v4859_v15, %v4674_v29 }
 0xa92   :  { %4876 = vxpose.xlu0.b32.cont [3/4] (short) %v4775_v47, 128 }
 0xa93   :  { %v4780_v8 = vpop.f32.mrb[134].mxu0  ;;  %4908 = vxpose.xlu1.b32.cont [3/4] (short) %v4777_v38, 128  ;;  %v4863_v62 = vpop.f32.mrb[132].mxu1 }
 0xa94   :  { %v4781_v5 = vadd.f32 %v4780_v8, %v4682_v56  ;;  %v4782_v31 = vpop.f32.mrb[135].mxu0  ;;  %v4865_v18 = vpop.f32.mrb[133].mxu1  ;;  %v4864_v2 = vadd.f32 %v4863_v62, %v4678_v61 }
 0xa95   :  { %v4783_v43 = vadd.f32 %v4782_v31, %v4682_v56  ;;  %v4866_v27 = vadd.f32 %v4865_v18, %v4678_v61 }
 0xa96   :  { %4877 = vxpose.xlu0.b32.end [4/4] (short) %v4781_v5, 128 }
 0xa97   :  { %4909 = vxpose.xlu1.b32.end [4/4] (short) %v4783_v43, 128  ;;  %v4869_v42 = vpop.f32.mrb[134].mxu1 }
 0xa98   :  { %v4871_v63 = vpop.f32.mrb[135].mxu1  ;;  %v4870_v58 = vadd.f32 %v4869_v42, %v4682_v56 }
 0xa99   :  { %v4872_v11 = vadd.f32 %v4871_v63, %v4682_v56 }
 0xac7   :  { %4938 = vxpose.xlu0.b32.start [1/4] (short) %v4852_v14, 128 }
 0xac8   :  { %4970 = vxpose.xlu1.b32.start [1/4] (short) %v4854_v55, 128 }
 0xacb   :  { %4939 = vxpose.xlu0.b32.cont [2/4] (short) %v4858_v33, 128 }
 0xacc   :  { %4971 = vxpose.xlu1.b32.cont [2/4] (short) %v4860_v54, 128 }
 0xacf   :  { %4940 = vxpose.xlu0.b32.cont [3/4] (short) %v4864_v2, 128 }
 0xad0   :  { %4972 = vxpose.xlu1.b32.cont [3/4] (short) %v4866_v27, 128 }
 0xad3   :  { %4941 = vxpose.xlu0.b32.end [4/4] (short) %v4870_v58, 128 }
 0xad4   :  { %4973 = vxpose.xlu1.b32.end [4/4] (short) %v4872_v11, 128 }
 0xb0a   :  { %v4890_v49 = vpop.trf.xlu0 }
 0xb0b   :  { %v4922_v28 = vpop.trf.xlu1  ;;  %5002 = vst.msk [vmem:[%s10422_s3] sm:$0xff] %vm134_vm0, %v4890_v49 }
 0xb0c   :  { %5018 = vst.msk [vmem:[%s10422_s3 + $0x80] sm:$0xff] %vm134_vm0, %v4922_v28 }
 0xb0e   :  { %v4891_v40 = vpop.trf.xlu0 }
 0xb0f   :  { %v4923_v23 = vpop.trf.xlu1  ;;  %5003 = vst.msk [vmem:[%s10422_s3 + $0x8] sm:$0xff] %vm134_vm0, %v4891_v40 }
 0xb10   :  { %5019 = vst.msk [vmem:[%s10422_s3 + $0x88] sm:$0xff] %vm134_vm0, %v4923_v23 }
 0xb12   :  { %v4892_v52 = vpop.trf.xlu0 }
 0xb13   :  { %v4924_v10 = vpop.trf.xlu1  ;;  %5004 = vst.msk [vmem:[%s10422_s3 + $0x10] sm:$0xff] %vm134_vm0, %v4892_v52 }
 0xb14   :  { %5020 = vst.msk [vmem:[%s10422_s3 + $0x90] sm:$0xff] %vm134_vm0, %v4924_v10 }
 0xb16   :  { %v4893_v12 = vpop.trf.xlu0 }
 0xb17   :  { %v4925_v46 = vpop.trf.xlu1  ;;  %5005 = vst.msk [vmem:[%s10422_s3 + $0x18] sm:$0xff] %vm134_vm0, %v4893_v12 }
 0xb18   :  { %5021 = vst.msk [vmem:[%s10422_s3 + $0x98] sm:$0xff] %vm134_vm0, %v4925_v46 }
 0xb1a   :  { %v4894_v3 = vpop.trf.xlu0 }
 0xb1b   :  { %v4926_v0 = vpop.trf.xlu1  ;;  %5006 = vst.msk [vmem:[%s10422_s3 + $0x20] sm:$0xff] %vm134_vm0, %v4894_v3 }
 0xb1c   :  { %5022 = vst.msk [vmem:[%s10422_s3 + $0xa0] sm:$0xff] %vm134_vm0, %v4926_v0 }
 0xb1e   :  { %v4895_v48 = vpop.trf.xlu0 }
 0xb1f   :  { %v4927_v1 = vpop.trf.xlu1  ;;  %5007 = vst.msk [vmem:[%s10422_s3 + $0x28] sm:$0xff] %vm134_vm0, %v4895_v48 }
 0xb20   :  { %5023 = vst.msk [vmem:[%s10422_s3 + $0xa8] sm:$0xff] %vm134_vm0, %v4927_v1 }
 0xb22   :  { %v4896_v44 = vpop.trf.xlu0 }
 0xb23   :  { %v4928_v32 = vpop.trf.xlu1  ;;  %5008 = vst.msk [vmem:[%s10422_s3 + $0x30] sm:$0xff] %vm134_vm0, %v4896_v44 }
 0xb24   :  { %5024 = vst.msk [vmem:[%s10422_s3 + $0xb0] sm:$0xff] %vm134_vm0, %v4928_v32 }
 0xb26   :  { %v4897_v51 = vpop.trf.xlu0 }
 0xb27   :  { %v4929_v60 = vpop.trf.xlu1  ;;  %5009 = vst.msk [vmem:[%s10422_s3 + $0x38] sm:$0xff] %vm134_vm0, %v4897_v51 }
 0xb28   :  { %5025 = vst.msk [vmem:[%s10422_s3 + $0xb8] sm:$0xff] %vm134_vm0, %v4929_v60 }
 0xb2a   :  { %v4898_v59 = vpop.trf.xlu0 }
 0xb2b   :  { %v4930_v45 = vpop.trf.xlu1  ;;  %5010 = vst.msk [vmem:[%s10422_s3 + $0x40] sm:$0xff] %vm134_vm0, %v4898_v59 }
 0xb2c   :  { %5026 = vst.msk [vmem:[%s10422_s3 + $0xc0] sm:$0xff] %vm134_vm0, %v4930_v45 }
 0xb2e   :  { %v4899_v7 = vpop.trf.xlu0 }
 0xb2f   :  { %v4931_v6 = vpop.trf.xlu1  ;;  %5011 = vst.msk [vmem:[%s10422_s3 + $0x48] sm:$0xff] %vm134_vm0, %v4899_v7 }
 0xb30   :  { %5027 = vst.msk [vmem:[%s10422_s3 + $0xc8] sm:$0xff] %vm134_vm0, %v4931_v6 }
 0xb32   :  { %v4900_v21 = vpop.trf.xlu0 }
 0xb33   :  { %v4932_v30 = vpop.trf.xlu1  ;;  %5012 = vst.msk [vmem:[%s10422_s3 + $0x50] sm:$0xff] %vm134_vm0, %v4900_v21 }
 0xb34   :  { %5028 = vst.msk [vmem:[%s10422_s3 + $0xd0] sm:$0xff] %vm134_vm0, %v4932_v30 }
 0xb36   :  { %v4901_v36 = vpop.trf.xlu0 }
 0xb37   :  { %v4933_v53 = vpop.trf.xlu1  ;;  %5013 = vst.msk [vmem:[%s10422_s3 + $0x58] sm:$0xff] %vm134_vm0, %v4901_v36 }
 0xb38   :  { %5029 = vst.msk [vmem:[%s10422_s3 + $0xd8] sm:$0xff] %vm134_vm0, %v4933_v53 }
 0xb3a   :  { %v4902_v35 = vpop.trf.xlu0 }
 0xb3b   :  { %v4934_v22 = vpop.trf.xlu1  ;;  %5014 = vst.msk [vmem:[%s10422_s3 + $0x60] sm:$0xff] %vm134_vm0, %v4902_v35 }
 0xb3c   :  { %5030 = vst.msk [vmem:[%s10422_s3 + $0xe0] sm:$0xff] %vm134_vm0, %v4934_v22 }
 0xb3e   :  { %v4903_v39 = vpop.trf.xlu0 }
 0xb3f   :  { %v4935_v37 = vpop.trf.xlu1  ;;  %5015 = vst.msk [vmem:[%s10422_s3 + $0x68] sm:$0xff] %vm134_vm0, %v4903_v39 }
 0xb40   :  { %5031 = vst.msk [vmem:[%s10422_s3 + $0xe8] sm:$0xff] %vm134_vm0, %v4935_v37 }
 0xb42   :  { %v4904_v34 = vpop.trf.xlu0 }
 0xb43   :  { %v4936_v20 = vpop.trf.xlu1  ;;  %5016 = vst.msk [vmem:[%s10422_s3 + $0x70] sm:$0xff] %vm134_vm0, %v4904_v34 }
 0xb44   :  { %5032 = vst.msk [vmem:[%s10422_s3 + $0xf0] sm:$0xff] %vm134_vm0, %v4936_v20 }
 0xb46   :  { %v4905_v16 = vpop.trf.xlu0 }
 0xb47   :  { %v4937_v19 = vpop.trf.xlu1  ;;  %5017 = vst.msk [vmem:[%s10422_s3 + $0x78] sm:$0xff] %vm134_vm0, %v4905_v16 }
 0xb48   :  { %5033 = vst.msk [vmem:[%s10422_s3 + $0xf8] sm:$0xff] %vm134_vm0, %v4937_v19 }
 0xb4a   :  { %v4954_v26 = vpop.trf.xlu0 }
 0xb4b   :  { %v4986_v29 = vpop.trf.xlu1  ;;  %5034 = vst.msk [vmem:[%s10422_s3 + $0x100] sm:$0xff] %vm134_vm0, %v4954_v26 }
 0xb4c   :  { %5050 = vst.msk [vmem:[%s10422_s3 + $0x180] sm:$0xff] %vm134_vm0, %v4986_v29 }
 0xb4e   :  { %v4955_v17 = vpop.trf.xlu0 }
 0xb4f   :  { %v4987_v4 = vpop.trf.xlu1  ;;  %5035 = vst.msk [vmem:[%s10422_s3 + $0x108] sm:$0xff] %vm134_vm0, %v4955_v17 }
 0xb50   :  { %5051 = vst.msk [vmem:[%s10422_s3 + $0x188] sm:$0xff] %vm134_vm0, %v4987_v4 }
 0xb52   :  { %v4956_v13 = vpop.trf.xlu0 }
 0xb53   :  { %v4988_v57 = vpop.trf.xlu1  ;;  %5036 = vst.msk [vmem:[%s10422_s3 + $0x110] sm:$0xff] %vm134_vm0, %v4956_v13 }
 0xb54   :  { %5052 = vst.msk [vmem:[%s10422_s3 + $0x190] sm:$0xff] %vm134_vm0, %v4988_v57 }
 0xb56   :  { %v4957_v61 = vpop.trf.xlu0 }
 0xb57   :  { %v4989_v24 = vpop.trf.xlu1  ;;  %5037 = vst.msk [vmem:[%s10422_s3 + $0x118] sm:$0xff] %vm134_vm0, %v4957_v61 }
 0xb58   :  { %5053 = vst.msk [vmem:[%s10422_s3 + $0x198] sm:$0xff] %vm134_vm0, %v4989_v24 }
 0xb5a   :  { %v4958_v41 = vpop.trf.xlu0 }
 0xb5b   :  { %v4990_v25 = vpop.trf.xlu1  ;;  %5038 = vst.msk [vmem:[%s10422_s3 + $0x120] sm:$0xff] %vm134_vm0, %v4958_v41 }
 0xb5c   :  { %5054 = vst.msk [vmem:[%s10422_s3 + $0x1a0] sm:$0xff] %vm134_vm0, %v4990_v25 }
 0xb5e   :  { %v4959_v50 = vpop.trf.xlu0 }
 0xb5f   :  { %v4991_v47 = vpop.trf.xlu1  ;;  %5039 = vst.msk [vmem:[%s10422_s3 + $0x128] sm:$0xff] %vm134_vm0, %v4959_v50 }
 0xb60   :  { %5055 = vst.msk [vmem:[%s10422_s3 + $0x1a8] sm:$0xff] %vm134_vm0, %v4991_v47 }
 0xb62   :  { %v4960_v9 = vpop.trf.xlu0 }
 0xb63   :  { %v4992_v15 = vpop.trf.xlu1  ;;  %5040 = vst.msk [vmem:[%s10422_s3 + $0x130] sm:$0xff] %vm134_vm0, %v4960_v9 }
 0xb64   :  { %5056 = vst.msk [vmem:[%s10422_s3 + $0x1b0] sm:$0xff] %vm134_vm0, %v4992_v15 }
 0xb66   :  { %v4961_v38 = vpop.trf.xlu0 }
 0xb67   :  { %v4993_v56 = vpop.trf.xlu1  ;;  %5041 = vst.msk [vmem:[%s10422_s3 + $0x138] sm:$0xff] %vm134_vm0, %v4961_v38 }
 0xb68   :  { %5057 = vst.msk [vmem:[%s10422_s3 + $0x1b8] sm:$0xff] %vm134_vm0, %v4993_v56 }
 0xb6a   :  { %v4962_v8 = vpop.trf.xlu0 }
 0xb6b   :  { %v4994_v62 = vpop.trf.xlu1  ;;  %5042 = vst.msk [vmem:[%s10422_s3 + $0x140] sm:$0xff] %vm134_vm0, %v4962_v8 }
 0xb6c   :  { %5058 = vst.msk [vmem:[%s10422_s3 + $0x1c0] sm:$0xff] %vm134_vm0, %v4994_v62 }
 0xb6e   :  { %v4963_v5 = vpop.trf.xlu0 }
 0xb6f   :  { %v4995_v31 = vpop.trf.xlu1  ;;  %5043 = vst.msk [vmem:[%s10422_s3 + $0x148] sm:$0xff] %vm134_vm0, %v4963_v5 }
 0xb70   :  { %5059 = vst.msk [vmem:[%s10422_s3 + $0x1c8] sm:$0xff] %vm134_vm0, %v4995_v31 }
 0xb72   :  { %v4964_v18 = vpop.trf.xlu0 }
 0xb73   :  { %v4996_v43 = vpop.trf.xlu1  ;;  %5044 = vst.msk [vmem:[%s10422_s3 + $0x150] sm:$0xff] %vm134_vm0, %v4964_v18 }
 0xb74   :  { %5060 = vst.msk [vmem:[%s10422_s3 + $0x1d0] sm:$0xff] %vm134_vm0, %v4996_v43 }
 0xb76   :  { %v4965_v42 = vpop.trf.xlu0 }
 0xb77   :  { %v4997_v63 = vpop.trf.xlu1  ;;  %5045 = vst.msk [vmem:[%s10422_s3 + $0x158] sm:$0xff] %vm134_vm0, %v4965_v42 }
 0xb78   :  { %5061 = vst.msk [vmem:[%s10422_s3 + $0x1d8] sm:$0xff] %vm134_vm0, %v4997_v63 }
 0xb7a   :  { %v4966_v14 = vpop.trf.xlu0 }
 0xb7b   :  { %v4998_v55 = vpop.trf.xlu1  ;;  %5046 = vst.msk [vmem:[%s10422_s3 + $0x160] sm:$0xff] %vm134_vm0, %v4966_v14 }
 0xb7c   :  { %5062 = vst.msk [vmem:[%s10422_s3 + $0x1e0] sm:$0xff] %vm134_vm0, %v4998_v55 }
 0xb7e   :  { %v4967_v33 = vpop.trf.xlu0 }
 0xb7f   :  { %v4999_v54 = vpop.trf.xlu1  ;;  %5047 = vst.msk [vmem:[%s10422_s3 + $0x168] sm:$0xff] %vm134_vm0, %v4967_v33 }
 0xb80   :  { %5063 = vst.msk [vmem:[%s10422_s3 + $0x1e8] sm:$0xff] %vm134_vm0, %v4999_v54 }
 0xb82   :  { %v4968_v2 = vpop.trf.xlu0 }
 0xb83   :  { %v5000_v27 = vpop.trf.xlu1  ;;  %5048 = vst.msk [vmem:[%s10422_s3 + $0x170] sm:$0xff] %vm134_vm0, %v4968_v2 }
 0xb84   :  { %5064 = vst.msk [vmem:[%s10422_s3 + $0x1f0] sm:$0xff] %vm134_vm0, %v5000_v27 }
 0xb86   :  { %v4969_v58 = vpop.trf.xlu0 }
 0xb87   :  { %v5001_v11 = vpop.trf.xlu1  ;;  %5049 = vst.msk [vmem:[%s10422_s3 + $0x178] sm:$0xff] %vm134_vm0, %v4969_v58 }
 0xb88   :  { %5065 = vst.msk [vmem:[%s10422_s3 + $0x1f8] sm:$0xff] %vm134_vm0, %v5001_v11 }

</bundles_post_ra>
